<compile_context>
chip_gen: v7x
topology: tpu7x:2x2x1
jax: 0.10.0
libtpu: 0.0.40
codegen_flags: <defaults>
</compile_context>

<pallas_src>
import functools

import jax
import jax.numpy as jnp
from jax.experimental import pallas as pl
from jax.experimental.pallas import tpu as pltpu


# ----------------------------------------------------------------------------
# Fused IMDB kernel: one image per grid step, everything stays in VMEM.
# ----------------------------------------------------------------------------
def _imdb_fused_kernel(x_ref,
                       w1_ref, w2_ref, w3_ref, w4_ref,
                       b1_ref, b2_ref, b3_ref, b4_ref,
                       g_ref, r_ref,
                       du1w_ref, du1b_ref, du2w_ref, du2b_ref,
                       w5_ref, b5_ref,
                       o_ref,
                       scr,
                       *, H, W, C):
    f32 = jnp.float32
    bf16 = jnp.bfloat16
    WC = W * C
    PC = (W + 2) * C

    # Zero ONLY the 1-pixel halo of the padded scratch.  The interior is fully
    # overwritten before every conv and the halo is never dirtied.  Done every
    # step (no program_id gating) so it is megacore-safe.
    scr[0:1, :] = jnp.zeros((1, PC), bf16)
    scr[H + 1:H + 2, :] = jnp.zeros((1, PC), bf16)
    scr[1:H + 1, 0:C] = jnp.zeros((H, C), bf16)
    scr[1:H + 1, (W + 1) * C:PC] = jnp.zeros((H, C), bf16)

    x = x_ref[0]                                    # (H, W*C) f32, lane-dense

    def conv3x3(w_ref, b_row, act):
        # scr holds the zero-padded, lane-dense bf16 input (H+2, (W+2)*C).
        # 3x3 conv = 3 banded matmuls (one per ky row shift); bf16 operands,
        # f32 accumulation.
        acc = jnp.zeros((H, WC), f32)
        for ky in range(3):
            acc = acc + jnp.dot(scr[ky:ky + H, :], w_ref[ky],
                                preferred_element_type=f32)
        y = acc + b_row
        if act:
            y = jnp.maximum(y, 0.05 * y)            # LeakyReLU(0.05)
        return y                                     # (H, W*C) f32

    # --- distillation chain -------------------------------------------------
    scr[1:H + 1, C:(W + 1) * C] = x.astype(bf16)
    a1 = conv3x3(w1_ref, b1_ref[...], True)
    # distilled channels of a1 -> concat channels [0, dc)  (block-diag gather)
    out_cat = jnp.dot(a1, g_ref[0], preferred_element_type=f32)

    scr[1:H + 1, C:(W + 1) * C] = a1.astype(bf16)
    a2 = conv3x3(w2_ref, b2_ref[...], True)          # distilled rows of w2 are 0
    out_cat = out_cat + jnp.dot(a2, g_ref[1], preferred_element_type=f32)

    scr[1:H + 1, C:(W + 1) * C] = a2.astype(bf16)
    a3 = conv3x3(w3_ref, b3_ref[...], True)
    out_cat = out_cat + jnp.dot(a3, g_ref[2], preferred_element_type=f32)

    scr[1:H + 1, C:(W + 1) * C] = a3.astype(bf16)
    # c4's banded weight already places its outputs at concat channels
    # [3*dc, 4*dc) and b4 is pre-placed/tiled, so it adds straight into out_cat.
    out_cat = out_cat + conv3x3(w4_ref, b4_ref[...], False)

    # --- CCA: single-pass stats (sum & sum-of-squares) + 1x1 squeeze/excite --
    inv_hw = 1.0 / (H * W)
    # per-channel sums over (h, w): group-sum over w via the tiled-identity R.
    sums = jnp.sum(jnp.dot(out_cat, r_ref[...], preferred_element_type=f32),
                   axis=0, keepdims=True)                        # (1, C)
    sumsq = jnp.sum(jnp.dot(out_cat * out_cat, r_ref[...],
                            preferred_element_type=f32),
                    axis=0, keepdims=True)                       # (1, C)
    m = sums * inv_hw
    var = jnp.maximum(sumsq * inv_hw - m * m, 0.0)
    y = m + jnp.sqrt(var)                                        # mean + contrast
    z = jnp.maximum(
        jnp.dot(y, du1w_ref[...], preferred_element_type=f32) + du1b_ref[...],
        0.0)
    # du2 weight/bias arrive pre-tiled to (cr, W*C)/(1, W*C): s_row is already
    # in the lane-dense layout, no in-kernel channel broadcast needed.
    s_row = jax.nn.sigmoid(
        jnp.dot(z, du2w_ref[...], preferred_element_type=f32) + du2b_ref[...])

    # --- channel-attention scale -> 1x1 conv (c5, block-diag) -> residual ----
    scaled = out_cat * s_row
    y5 = jnp.dot(scaled.astype(bf16), w5_ref[...],
                 preferred_element_type=f32) + b5_ref[...]
    o_ref[...] = (y5 + x).reshape(1, H, WC)


# ----------------------------------------------------------------------------
# Wrapper: layout plumbing + precomputed lane-dense weight operands.
# ----------------------------------------------------------------------------
def imdb_forward(x_nchw, p, dc):
    N, C, H, W = x_nchw.shape
    assert 4 * dc == C, "IMDB requires concat width (4*dc) == in_channels"
    f32, bf16 = jnp.float32, jnp.bfloat16

    # NCHW -> lane-dense (N, H, W*C): last dim W*C is a multiple of 128, so the
    # kernel's loads/stores are unmasked (pure layout plumbing outside kernel).
    x = jnp.transpose(x_nchw, (0, 2, 3, 1)).astype(f32).reshape(N, H, W * C)

    def band(w_hwio):
        # (3, 3, Cin, Cout) -> (3, (W+2)*Cin, W*Cout) banded matrices:
        # B[ky, v*Cin+ci, w*Cout+co] = w[ky, v-w, ci, co] for v-w in {0,1,2}.
        cin, cout = w_hwio.shape[2], w_hwio.shape[3]
        w_idx = jnp.arange(W)[:, None, None]
        v_idx = jnp.arange(W + 2)[None, :, None]
        k_idx = jnp.arange(3)[None, None, :]
        sel = (v_idx == w_idx + k_idx).astype(f32)               # (W, W+2, 3)
        b = jnp.einsum('wvk,ykio->yviwo', sel, w_hwio.astype(f32))
        return b.reshape(3, (W + 2) * cin, W * cout)

    def blockdiag(w2d):
        # (Cin, Cout) -> (W*Cin, W*Cout) block-diagonal (per-pixel 1x1 matmul).
        cin, cout = w2d.shape
        eye = jnp.eye(W, dtype=f32)
        return jnp.einsum('vw,io->viwo', eye, w2d.astype(f32)).reshape(
            W * cin, W * cout)

    # Fold the distilled/remaining split into the conv weights: zero rows for
    # the distilled input channels of c2/c3/c4 -> no in-kernel channel split.
    w2e = jnp.pad(p['c2_w'], ((0, 0), (0, 0), (dc, 0), (0, 0)))
    w3e = jnp.pad(p['c3_w'], ((0, 0), (0, 0), (dc, 0), (0, 0)))
    # c4 additionally places its dc outputs at concat channels [3*dc, 4*dc).
    w4e = jnp.pad(p['c4_w'], ((0, 0), (0, 0), (dc, 0), (3 * dc, 0)))

    B1 = band(p['c1_w']).astype(bf16)
    B2 = band(w2e).astype(bf16)
    B3 = band(w3e).astype(bf16)
    B4 = band(w4e).astype(bf16)
    B5 = blockdiag(p['c5_w']).astype(bf16)

    # Block-diag gather matrices (exact 0/1, kept f32): place channels [0, dc)
    # of conv_i's activation at concat channels [i*dc, (i+1)*dc).
    def gather_mat(i):
        P = jnp.pad(jnp.eye(dc, dtype=f32),
                    ((0, C - dc), (i * dc, C - (i + 1) * dc)))
        return blockdiag(P)
    G = jnp.stack([gather_mat(0), gather_mat(1), gather_mat(2)])   # (3, WC, WC)

    # Per-channel group-sum over w for the CCA statistics.
    R = jnp.tile(jnp.eye(C, dtype=f32), (W, 1))                    # (W*C, C)

    # Biases / CCA weights pre-tiled into the lane-dense layout.
    b1_t = jnp.tile(p['c1_b'].astype(f32), (1, W))
    b2_t = jnp.tile(p['c2_b'].astype(f32), (1, W))
    b3_t = jnp.tile(p['c3_b'].astype(f32), (1, W))
    b4_t = jnp.tile(jnp.pad(p['c4_b'].astype(f32), ((0, 0), (3 * dc, 0))),
                    (1, W))
    b5_t = jnp.tile(p['c5_b'].astype(f32), (1, W))
    du1_w = p['du1_w'].astype(f32)
    du1_b = p['du1_b'].astype(f32)
    du2_w_t = jnp.tile(p['du2_w'].astype(f32), (1, W))
    du2_b_t = jnp.tile(p['du2_b'].astype(f32), (1, W))

    kernel = functools.partial(_imdb_fused_kernel, H=H, W=W, C=C)

    # TODO(synk): for production channel counts, single-buffer these constant
    # operands with pipeline_mode=pl.Buffered(1) to free VMEM headroom; at this
    # size all constants are ~3 MiB even double-buffered, well inside the limit.
    def const_spec(a):
        if a.ndim == 2:
            return pl.BlockSpec(a.shape, lambda n: (0, 0))
        assert a.ndim == 3
        return pl.BlockSpec(a.shape, lambda n: (0, 0, 0))

    consts = [B1, B2, B3, B4, b1_t, b2_t, b3_t, b4_t, G, R,
              du1_w, du1_b, du2_w_t, du2_b_t, B5, b5_t]

    # TODO(synk): production SR sizes need a row-tiled two-pass variant
    # (stats pass + scale/c5/residual pass) with grid=(N, H//TH) both
    # 'parallel' and tiles sized for v7x's 64 MiB VMEM; the fused global CCA
    # statistics prevent row tiling inside this single-pass kernel.
    y = pl.pallas_call(
        kernel,
        out_shape=jax.ShapeDtypeStruct((N, H, W * C), f32),
        grid=(N,),
        in_specs=[pl.BlockSpec((1, H, W * C), lambda n: (n, 0, 0))]
                 + [const_spec(a) for a in consts],
        out_specs=pl.BlockSpec((1, H, W * C), lambda n: (n, 0, 0)),
        scratch_shapes=[pltpu.VMEM((H + 2, (W + 2) * C), bf16)],
        compiler_params=pltpu.CompilerParams(
            dimension_semantics=("parallel",)),
    )(x, *consts)

    return jnp.transpose(y.reshape(N, H, W, C), (0, 3, 1, 2))      # back to NCHW


# ----------------------------------------------------------------------------
# Pure-JAX reference (f32, HIGHEST precision) for numerical sanity checking.
# ----------------------------------------------------------------------------
def _leaky(x):
    return jnp.maximum(x, 0.05 * x)


def imdb_reference(x_nchw, p, dc):
    hp = jax.lax.Precision.HIGHEST
    x = jnp.transpose(x_nchw, (0, 2, 3, 1)).astype(jnp.float32)

    def c3(x, w, b):
        y = jax.lax.conv_general_dilated(
            x, w, (1, 1), 'SAME',
            dimension_numbers=('NHWC', 'HWIO', 'NHWC'), precision=hp)
        return y + b.reshape(1, 1, 1, -1)

    out_c1 = _leaky(c3(x, p['c1_w'], p['c1_b']))
    d1, r1 = out_c1[..., :dc], out_c1[..., dc:]
    out_c2 = _leaky(c3(r1, p['c2_w'], p['c2_b']))
    d2, r2 = out_c2[..., :dc], out_c2[..., dc:]
    out_c3 = _leaky(c3(r2, p['c3_w'], p['c3_b']))
    d3, r3 = out_c3[..., :dc], out_c3[..., dc:]
    out_c4 = c3(r3, p['c4_w'], p['c4_b'])
    out = jnp.concatenate([d1, d2, d3, out_c4], axis=-1)

    m = jnp.mean(out, axis=(1, 2), keepdims=True)
    std = jnp.sqrt(jnp.mean((out - m) ** 2, axis=(1, 2), keepdims=True))
    y = m + std
    z = jnp.maximum(jnp.einsum('nijc,cd->nijd', y, p['du1_w'], precision=hp)
                    + p['du1_b'].reshape(1, 1, 1, -1), 0.0)
    s = jax.nn.sigmoid(jnp.einsum('nijc,cd->nijd', z, p['du2_w'], precision=hp)
                       + p['du2_b'].reshape(1, 1, 1, -1))
    out = out * s
    y5 = (jnp.einsum('nhwc,cd->nhwd', out, p['c5_w'], precision=hp)
          + p['c5_b'].reshape(1, 1, 1, -1) + x)
    return jnp.transpose(y5, (0, 3, 1, 2))


# ----------------------------------------------------------------------------
# Deterministic parameter init (shapes per the PyTorch __init__).
# ----------------------------------------------------------------------------
def init_params(key, in_channels, dc, rc, reduction=4):
    cca_c = dc * 4
    cr = max(1, cca_c // reduction)
    ks = jax.random.split(key, 14)

    def w3(k, cin, cout):
        return jax.random.normal(k, (3, 3, cin, cout), jnp.float32) * 0.1

    def bias(k, cout):
        return jax.random.normal(k, (1, cout), jnp.float32) * 0.05

    return {
        'c1_w': w3(ks[0], in_channels, in_channels), 'c1_b': bias(ks[1], in_channels),
        'c2_w': w3(ks[2], rc, in_channels),          'c2_b': bias(ks[3], in_channels),
        'c3_w': w3(ks[4], rc, in_channels),          'c3_b': bias(ks[5], in_channels),
        'c4_w': w3(ks[6], rc, dc),                   'c4_b': bias(ks[7], dc),
        'c5_w': jax.random.normal(ks[8], (in_channels, in_channels), jnp.float32) * 0.1,
        'c5_b': bias(ks[9], in_channels),
        'du1_w': jax.random.normal(ks[10], (cca_c, cr), jnp.float32) * 0.1,
        'du1_b': bias(ks[11], cr),
        'du2_w': jax.random.normal(ks[12], (cr, cca_c), jnp.float32) * 0.1,
        'du2_b': bias(ks[13], cca_c),
    }


if __name__ == "__main__":
    N, C, H, W = 2, 16, 16, 16
    distillation_rate = 0.25
    dc = int(C * distillation_rate)        # 4
    rc = C - dc                            # 12

    key = jax.random.PRNGKey(0)
    kx, kp = jax.random.split(key)
    x = jax.random.normal(kx, (N, C, H, W), jnp.float32)
    params = init_params(kp, C, dc, rc)

    fwd = jax.jit(functools.partial(imdb_forward, dc=dc))
    out = jax.block_until_ready(fwd(x, params))
    ref = jax.block_until_ready(imdb_reference(x, params, dc))

    assert out.shape == (N, C, H, W)
    max_err = float(jnp.max(jnp.abs(out - ref)))
    # bf16 MXU operands (f32 accumulation) vs. an f32-HIGHEST reference:
    # expected quantization error is O(1e-3..1e-2) absolute at these activation
    # magnitudes; a real wiring bug shows up as O(0.1..1).
    assert max_err < 2e-2, f"mismatch vs reference: {max_err}"
    print("KERNEL_OK")
</pallas_src>

<mosaic_0001>
module attributes {stable_mosaic.version = 11 : i64} {
  func.func @_imdb_fused_kernel(%arg0: i32, %arg1: memref<1x16x256xf32, #tpu.memory_space<vmem>>, %arg2: memref<3x288x256xbf16, #tpu.memory_space<vmem>>, %arg3: memref<3x288x256xbf16, #tpu.memory_space<vmem>>, %arg4: memref<3x288x256xbf16, #tpu.memory_space<vmem>>, %arg5: memref<3x288x256xbf16, #tpu.memory_space<vmem>>, %arg6: memref<1x256xf32, #tpu.memory_space<vmem>>, %arg7: memref<1x256xf32, #tpu.memory_space<vmem>>, %arg8: memref<1x256xf32, #tpu.memory_space<vmem>>, %arg9: memref<1x256xf32, #tpu.memory_space<vmem>>, %arg10: memref<3x256x256xf32, #tpu.memory_space<vmem>>, %arg11: memref<256x16xf32, #tpu.memory_space<vmem>>, %arg12: memref<16x4xf32, #tpu.memory_space<vmem>>, %arg13: memref<1x4xf32, #tpu.memory_space<vmem>>, %arg14: memref<4x256xf32, #tpu.memory_space<vmem>>, %arg15: memref<1x256xf32, #tpu.memory_space<vmem>>, %arg16: memref<256x256xbf16, #tpu.memory_space<vmem>>, %arg17: memref<1x256xf32, #tpu.memory_space<vmem>>, %arg18: memref<1x16x256xf32, #tpu.memory_space<vmem>>, %arg19: memref<18x288xbf16, #tpu.memory_space<vmem>>) attributes {dimension_semantics = [#tpu.dimension_semantics<parallel>], iteration_bounds = array<i64: 2>, scalar_prefetch = 0 : i64, scratch_operands = 1 : i64, tpu.core_type = #tpu.core_type<tc>, window_params = [{transform_indices = @transform_0, window_bounds = array<i64: 1, 16, 256>}, {pipeline_mode = #tpu.pipeline_mode<synchronous>, transform_indices = @transform_1, window_bounds = array<i64: 3, 288, 256>}, {pipeline_mode = #tpu.pipeline_mode<synchronous>, transform_indices = @transform_2, window_bounds = array<i64: 3, 288, 256>}, {pipeline_mode = #tpu.pipeline_mode<synchronous>, transform_indices = @transform_3, window_bounds = array<i64: 3, 288, 256>}, {pipeline_mode = #tpu.pipeline_mode<synchronous>, transform_indices = @transform_4, window_bounds = array<i64: 3, 288, 256>}, {pipeline_mode = #tpu.pipeline_mode<synchronous>, transform_indices = @transform_5, window_bounds = array<i64: 1, 256>}, {pipeline_mode = #tpu.pipeline_mode<synchronous>, transform_indices = @transform_6, window_bounds = array<i64: 1, 256>}, {pipeline_mode = #tpu.pipeline_mode<synchronous>, transform_indices = @transform_7, window_bounds = array<i64: 1, 256>}, {pipeline_mode = #tpu.pipeline_mode<synchronous>, transform_indices = @transform_8, window_bounds = array<i64: 1, 256>}, {pipeline_mode = #tpu.pipeline_mode<synchronous>, transform_indices = @transform_9, window_bounds = array<i64: 3, 256, 256>}, {pipeline_mode = #tpu.pipeline_mode<synchronous>, transform_indices = @transform_10, window_bounds = array<i64: 256, 16>}, {pipeline_mode = #tpu.pipeline_mode<synchronous>, transform_indices = @transform_11, window_bounds = array<i64: 16, 4>}, {pipeline_mode = #tpu.pipeline_mode<synchronous>, transform_indices = @transform_12, window_bounds = array<i64: 1, 4>}, {pipeline_mode = #tpu.pipeline_mode<synchronous>, transform_indices = @transform_13, window_bounds = array<i64: 4, 256>}, {pipeline_mode = #tpu.pipeline_mode<synchronous>, transform_indices = @transform_14, window_bounds = array<i64: 1, 256>}, {pipeline_mode = #tpu.pipeline_mode<synchronous>, transform_indices = @transform_15, window_bounds = array<i64: 256, 256>}, {pipeline_mode = #tpu.pipeline_mode<synchronous>, transform_indices = @transform_16, window_bounds = array<i64: 1, 256>}, {transform_indices = @transform_17, window_bounds = array<i64: 1, 16, 256>}]} {
    %cst = arith.constant 0.000000e+00 : bf16
    %0 = vector.broadcast %cst : bf16 to vector<1x288xbf16>
    %c0 = arith.constant 0 : index
    %c0_0 = arith.constant 0 : index
    %1 = vector.load %arg19[%c0, %c0_0] : memref<18x288xbf16, #tpu.memory_space<vmem>>, vector<1x288xbf16>
    tpu.vector_store %arg19[%c0, %c0_0], %0 {strides = array<i32>} : memref<18x288xbf16, #tpu.memory_space<vmem>>, vector<1x288xbf16>,
    %cst_1 = arith.constant 0.000000e+00 : bf16
    %2 = vector.broadcast %cst_1 : bf16 to vector<1x288xbf16>
    %c17 = arith.constant 17 : index
    %c0_2 = arith.constant 0 : index
    %3 = vector.load %arg19[%c17, %c0_2] : memref<18x288xbf16, #tpu.memory_space<vmem>>, vector<1x288xbf16>
    tpu.vector_store %arg19[%c17, %c0_2], %2 {strides = array<i32>} : memref<18x288xbf16, #tpu.memory_space<vmem>>, vector<1x288xbf16>,
    %cst_3 = arith.constant 0.000000e+00 : bf16
    %4 = vector.broadcast %cst_3 : bf16 to vector<16x16xbf16>
    %c1 = arith.constant 1 : index
    %c0_4 = arith.constant 0 : index
    %5 = vector.load %arg19[%c1, %c0_4] : memref<18x288xbf16, #tpu.memory_space<vmem>>, vector<16x16xbf16>
    tpu.vector_store %arg19[%c1, %c0_4], %4 {strides = array<i32>} : memref<18x288xbf16, #tpu.memory_space<vmem>>, vector<16x16xbf16>,
    %cst_5 = arith.constant 0.000000e+00 : bf16
    %6 = vector.broadcast %cst_5 : bf16 to vector<16x16xbf16>
    %c1_6 = arith.constant 1 : index
    %c272 = arith.constant 272 : index
    %7 = vector.load %arg19[%c1_6, %c272] : memref<18x288xbf16, #tpu.memory_space<vmem>>, vector<16x16xbf16>
    tpu.vector_store %arg19[%c1_6, %c272], %6 {strides = array<i32>} : memref<18x288xbf16, #tpu.memory_space<vmem>>, vector<16x16xbf16>,
    %c0_7 = arith.constant 0 : index
    %c0_8 = arith.constant 0 : index
    %c0_9 = arith.constant 0 : index
    %8 = vector.load %arg1[%c0_7, %c0_8, %c0_9] : memref<1x16x256xf32, #tpu.memory_space<vmem>>, vector<1x16x256xf32>
    %9 = vector.shape_cast %8 : vector<1x16x256xf32> to vector<16x256xf32>
    %10 = arith.truncf %9 : vector<16x256xf32> to vector<16x256xbf16>
    %c1_10 = arith.constant 1 : index
    %c16 = arith.constant 16 : index
    %11 = vector.load %arg19[%c1_10, %c16] : memref<18x288xbf16, #tpu.memory_space<vmem>>, vector<16x256xbf16>
    tpu.vector_store %arg19[%c1_10, %c16], %10 {strides = array<i32>} : memref<18x288xbf16, #tpu.memory_space<vmem>>, vector<16x256xbf16>,
    %c0_11 = arith.constant 0 : index
    %c0_12 = arith.constant 0 : index
    %12 = vector.load %arg6[%c0_11, %c0_12] : memref<1x256xf32, #tpu.memory_space<vmem>>, vector<1x256xf32>
    %cst_13 = arith.constant 0.000000e+00 : f32
    %13 = vector.broadcast %cst_13 : f32 to vector<16x256xf32>
    %c0_14 = arith.constant 0 : index
    %c0_15 = arith.constant 0 : index
    %14 = vector.load %arg19[%c0_14, %c0_15] : memref<18x288xbf16, #tpu.memory_space<vmem>>, vector<16x288xbf16>
    %c0_16 = arith.constant 0 : index
    %c0_17 = arith.constant 0 : index
    %c0_18 = arith.constant 0 : index
    %15 = vector.load %arg2[%c0_16, %c0_17, %c0_18] : memref<3x288x256xbf16, #tpu.memory_space<vmem>>, vector<1x288x256xbf16>
    %16 = vector.shape_cast %15 : vector<1x288x256xbf16> to vector<288x256xbf16>
    %cst_19 = arith.constant dense<0.000000e+00> : vector<16x256xf32>
    %17 = tpu.matmul %14, %16, %cst_19 {dimension_numbers = #tpu.dot_dimension_numbers<[1], [0], [0], [1], [0, 0, 1, 1], [], []>} : vector<16x288xbf16>, vector<288x256xbf16>, vector<16x256xf32> -> vector<16x256xf32>
    %18 = arith.addf %13, %17 : vector<16x256xf32>
    %c1_20 = arith.constant 1 : index
    %c0_21 = arith.constant 0 : index
    %19 = vector.load %arg19[%c1_20, %c0_21] : memref<18x288xbf16, #tpu.memory_space<vmem>>, vector<16x288xbf16>
    %c1_22 = arith.constant 1 : index
    %c0_23 = arith.constant 0 : index
    %c0_24 = arith.constant 0 : index
    %20 = vector.load %arg2[%c1_22, %c0_23, %c0_24] : memref<3x288x256xbf16, #tpu.memory_space<vmem>>, vector<1x288x256xbf16>
    %21 = vector.shape_cast %20 : vector<1x288x256xbf16> to vector<288x256xbf16>
    %cst_25 = arith.constant dense<0.000000e+00> : vector<16x256xf32>
    %22 = tpu.matmul %19, %21, %cst_25 {dimension_numbers = #tpu.dot_dimension_numbers<[1], [0], [0], [1], [0, 0, 1, 1], [], []>} : vector<16x288xbf16>, vector<288x256xbf16>, vector<16x256xf32> -> vector<16x256xf32>
    %23 = arith.addf %18, %22 : vector<16x256xf32>
    %c2 = arith.constant 2 : index
    %c0_26 = arith.constant 0 : index
    %24 = vector.load %arg19[%c2, %c0_26] : memref<18x288xbf16, #tpu.memory_space<vmem>>, vector<16x288xbf16>
    %c2_27 = arith.constant 2 : index
    %c0_28 = arith.constant 0 : index
    %c0_29 = arith.constant 0 : index
    %25 = vector.load %arg2[%c2_27, %c0_28, %c0_29] : memref<3x288x256xbf16, #tpu.memory_space<vmem>>, vector<1x288x256xbf16>
    %26 = vector.shape_cast %25 : vector<1x288x256xbf16> to vector<288x256xbf16>
    %cst_30 = arith.constant dense<0.000000e+00> : vector<16x256xf32>
    %27 = tpu.matmul %24, %26, %cst_30 {dimension_numbers = #tpu.dot_dimension_numbers<[1], [0], [0], [1], [0, 0, 1, 1], [], []>} : vector<16x288xbf16>, vector<288x256xbf16>, vector<16x256xf32> -> vector<16x256xf32>
    %28 = arith.addf %23, %27 : vector<16x256xf32>
    %29 = vector.broadcast %12 : vector<1x256xf32> to vector<16x256xf32>
    %30 = arith.addf %28, %29 : vector<16x256xf32>
    %cst_31 = arith.constant 5.000000e-02 : f32
    %31 = vector.broadcast %cst_31 : f32 to vector<16x256xf32>
    %32 = arith.mulf %31, %30 : vector<16x256xf32>
    %33 = arith.maximumf %30, %32 : vector<16x256xf32>
    %c0_32 = arith.constant 0 : index
    %c0_33 = arith.constant 0 : index
    %c0_34 = arith.constant 0 : index
    %34 = vector.load %arg10[%c0_32, %c0_33, %c0_34] : memref<3x256x256xf32, #tpu.memory_space<vmem>>, vector<1x256x256xf32>
    %35 = vector.shape_cast %34 : vector<1x256x256xf32> to vector<256x256xf32>
    %cst_35 = arith.constant dense<0.000000e+00> : vector<16x256xf32>
    %36 = tpu.matmul %33, %35, %cst_35 {dimension_numbers = #tpu.dot_dimension_numbers<[1], [0], [0], [1], [0, 0, 1, 1], [], []>} : vector<16x256xf32>, vector<256x256xf32>, vector<16x256xf32> -> vector<16x256xf32>
    %37 = arith.truncf %33 : vector<16x256xf32> to vector<16x256xbf16>
    %c1_36 = arith.constant 1 : index
    %c16_37 = arith.constant 16 : index
    %38 = vector.load %arg19[%c1_36, %c16_37] : memref<18x288xbf16, #tpu.memory_space<vmem>>, vector<16x256xbf16>
    tpu.vector_store %arg19[%c1_36, %c16_37], %37 {strides = array<i32>} : memref<18x288xbf16, #tpu.memory_space<vmem>>, vector<16x256xbf16>,
    %c0_38 = arith.constant 0 : index
    %c0_39 = arith.constant 0 : index
    %39 = vector.load %arg7[%c0_38, %c0_39] : memref<1x256xf32, #tpu.memory_space<vmem>>, vector<1x256xf32>
    %cst_40 = arith.constant 0.000000e+00 : f32
    %40 = vector.broadcast %cst_40 : f32 to vector<16x256xf32>
    %c0_41 = arith.constant 0 : index
    %c0_42 = arith.constant 0 : index
    %41 = vector.load %arg19[%c0_41, %c0_42] : memref<18x288xbf16, #tpu.memory_space<vmem>>, vector<16x288xbf16>
    %c0_43 = arith.constant 0 : index
    %c0_44 = arith.constant 0 : index
    %c0_45 = arith.constant 0 : index
    %42 = vector.load %arg3[%c0_43, %c0_44, %c0_45] : memref<3x288x256xbf16, #tpu.memory_space<vmem>>, vector<1x288x256xbf16>
    %43 = vector.shape_cast %42 : vector<1x288x256xbf16> to vector<288x256xbf16>
    %cst_46 = arith.constant dense<0.000000e+00> : vector<16x256xf32>
    %44 = tpu.matmul %41, %43, %cst_46 {dimension_numbers = #tpu.dot_dimension_numbers<[1], [0], [0], [1], [0, 0, 1, 1], [], []>} : vector<16x288xbf16>, vector<288x256xbf16>, vector<16x256xf32> -> vector<16x256xf32>
    %45 = arith.addf %40, %44 : vector<16x256xf32>
    %c1_47 = arith.constant 1 : index
    %c0_48 = arith.constant 0 : index
    %46 = vector.load %arg19[%c1_47, %c0_48] : memref<18x288xbf16, #tpu.memory_space<vmem>>, vector<16x288xbf16>
    %c1_49 = arith.constant 1 : index
    %c0_50 = arith.constant 0 : index
    %c0_51 = arith.constant 0 : index
    %47 = vector.load %arg3[%c1_49, %c0_50, %c0_51] : memref<3x288x256xbf16, #tpu.memory_space<vmem>>, vector<1x288x256xbf16>
    %48 = vector.shape_cast %47 : vector<1x288x256xbf16> to vector<288x256xbf16>
    %cst_52 = arith.constant dense<0.000000e+00> : vector<16x256xf32>
    %49 = tpu.matmul %46, %48, %cst_52 {dimension_numbers = #tpu.dot_dimension_numbers<[1], [0], [0], [1], [0, 0, 1, 1], [], []>} : vector<16x288xbf16>, vector<288x256xbf16>, vector<16x256xf32> -> vector<16x256xf32>
    %50 = arith.addf %45, %49 : vector<16x256xf32>
    %c2_53 = arith.constant 2 : index
    %c0_54 = arith.constant 0 : index
    %51 = vector.load %arg19[%c2_53, %c0_54] : memref<18x288xbf16, #tpu.memory_space<vmem>>, vector<16x288xbf16>
    %c2_55 = arith.constant 2 : index
    %c0_56 = arith.constant 0 : index
    %c0_57 = arith.constant 0 : index
    %52 = vector.load %arg3[%c2_55, %c0_56, %c0_57] : memref<3x288x256xbf16, #tpu.memory_space<vmem>>, vector<1x288x256xbf16>
    %53 = vector.shape_cast %52 : vector<1x288x256xbf16> to vector<288x256xbf16>
    %cst_58 = arith.constant dense<0.000000e+00> : vector<16x256xf32>
    %54 = tpu.matmul %51, %53, %cst_58 {dimension_numbers = #tpu.dot_dimension_numbers<[1], [0], [0], [1], [0, 0, 1, 1], [], []>} : vector<16x288xbf16>, vector<288x256xbf16>, vector<16x256xf32> -> vector<16x256xf32>
    %55 = arith.addf %50, %54 : vector<16x256xf32>
    %56 = vector.broadcast %39 : vector<1x256xf32> to vector<16x256xf32>
    %57 = arith.addf %55, %56 : vector<16x256xf32>
    %cst_59 = arith.constant 5.000000e-02 : f32
    %58 = vector.broadcast %cst_59 : f32 to vector<16x256xf32>
    %59 = arith.mulf %58, %57 : vector<16x256xf32>
    %60 = arith.maximumf %57, %59 : vector<16x256xf32>
    %c1_60 = arith.constant 1 : index
    %c0_61 = arith.constant 0 : index
    %c0_62 = arith.constant 0 : index
    %61 = vector.load %arg10[%c1_60, %c0_61, %c0_62] : memref<3x256x256xf32, #tpu.memory_space<vmem>>, vector<1x256x256xf32>
    %62 = vector.shape_cast %61 : vector<1x256x256xf32> to vector<256x256xf32>
    %cst_63 = arith.constant dense<0.000000e+00> : vector<16x256xf32>
    %63 = tpu.matmul %60, %62, %cst_63 {dimension_numbers = #tpu.dot_dimension_numbers<[1], [0], [0], [1], [0, 0, 1, 1], [], []>} : vector<16x256xf32>, vector<256x256xf32>, vector<16x256xf32> -> vector<16x256xf32>
    %64 = arith.addf %36, %63 : vector<16x256xf32>
    %65 = arith.truncf %60 : vector<16x256xf32> to vector<16x256xbf16>
    %c1_64 = arith.constant 1 : index
    %c16_65 = arith.constant 16 : index
    %66 = vector.load %arg19[%c1_64, %c16_65] : memref<18x288xbf16, #tpu.memory_space<vmem>>, vector<16x256xbf16>
    tpu.vector_store %arg19[%c1_64, %c16_65], %65 {strides = array<i32>} : memref<18x288xbf16, #tpu.memory_space<vmem>>, vector<16x256xbf16>,
    %c0_66 = arith.constant 0 : index
    %c0_67 = arith.constant 0 : index
    %67 = vector.load %arg8[%c0_66, %c0_67] : memref<1x256xf32, #tpu.memory_space<vmem>>, vector<1x256xf32>
    %cst_68 = arith.constant 0.000000e+00 : f32
    %68 = vector.broadcast %cst_68 : f32 to vector<16x256xf32>
    %c0_69 = arith.constant 0 : index
    %c0_70 = arith.constant 0 : index
    %69 = vector.load %arg19[%c0_69, %c0_70] : memref<18x288xbf16, #tpu.memory_space<vmem>>, vector<16x288xbf16>
    %c0_71 = arith.constant 0 : index
    %c0_72 = arith.constant 0 : index
    %c0_73 = arith.constant 0 : index
    %70 = vector.load %arg4[%c0_71, %c0_72, %c0_73] : memref<3x288x256xbf16, #tpu.memory_space<vmem>>, vector<1x288x256xbf16>
    %71 = vector.shape_cast %70 : vector<1x288x256xbf16> to vector<288x256xbf16>
    %cst_74 = arith.constant dense<0.000000e+00> : vector<16x256xf32>
    %72 = tpu.matmul %69, %71, %cst_74 {dimension_numbers = #tpu.dot_dimension_numbers<[1], [0], [0], [1], [0, 0, 1, 1], [], []>} : vector<16x288xbf16>, vector<288x256xbf16>, vector<16x256xf32> -> vector<16x256xf32>
    %73 = arith.addf %68, %72 : vector<16x256xf32>
    %c1_75 = arith.constant 1 : index
    %c0_76 = arith.constant 0 : index
    %74 = vector.load %arg19[%c1_75, %c0_76] : memref<18x288xbf16, #tpu.memory_space<vmem>>, vector<16x288xbf16>
    %c1_77 = arith.constant 1 : index
    %c0_78 = arith.constant 0 : index
    %c0_79 = arith.constant 0 : index
    %75 = vector.load %arg4[%c1_77, %c0_78, %c0_79] : memref<3x288x256xbf16, #tpu.memory_space<vmem>>, vector<1x288x256xbf16>
    %76 = vector.shape_cast %75 : vector<1x288x256xbf16> to vector<288x256xbf16>
    %cst_80 = arith.constant dense<0.000000e+00> : vector<16x256xf32>
    %77 = tpu.matmul %74, %76, %cst_80 {dimension_numbers = #tpu.dot_dimension_numbers<[1], [0], [0], [1], [0, 0, 1, 1], [], []>} : vector<16x288xbf16>, vector<288x256xbf16>, vector<16x256xf32> -> vector<16x256xf32>
    %78 = arith.addf %73, %77 : vector<16x256xf32>
    %c2_81 = arith.constant 2 : index
    %c0_82 = arith.constant 0 : index
    %79 = vector.load %arg19[%c2_81, %c0_82] : memref<18x288xbf16, #tpu.memory_space<vmem>>, vector<16x288xbf16>
    %c2_83 = arith.constant 2 : index
    %c0_84 = arith.constant 0 : index
    %c0_85 = arith.constant 0 : index
    %80 = vector.load %arg4[%c2_83, %c0_84, %c0_85] : memref<3x288x256xbf16, #tpu.memory_space<vmem>>, vector<1x288x256xbf16>
    %81 = vector.shape_cast %80 : vector<1x288x256xbf16> to vector<288x256xbf16>
    %cst_86 = arith.constant dense<0.000000e+00> : vector<16x256xf32>
    %82 = tpu.matmul %79, %81, %cst_86 {dimension_numbers = #tpu.dot_dimension_numbers<[1], [0], [0], [1], [0, 0, 1, 1], [], []>} : vector<16x288xbf16>, vector<288x256xbf16>, vector<16x256xf32> -> vector<16x256xf32>
    %83 = arith.addf %78, %82 : vector<16x256xf32>
    %84 = vector.broadcast %67 : vector<1x256xf32> to vector<16x256xf32>
    %85 = arith.addf %83, %84 : vector<16x256xf32>
    %cst_87 = arith.constant 5.000000e-02 : f32
    %86 = vector.broadcast %cst_87 : f32 to vector<16x256xf32>
    %87 = arith.mulf %86, %85 : vector<16x256xf32>
    %88 = arith.maximumf %85, %87 : vector<16x256xf32>
    %c2_88 = arith.constant 2 : index
    %c0_89 = arith.constant 0 : index
    %c0_90 = arith.constant 0 : index
    %89 = vector.load %arg10[%c2_88, %c0_89, %c0_90] : memref<3x256x256xf32, #tpu.memory_space<vmem>>, vector<1x256x256xf32>
    %90 = vector.shape_cast %89 : vector<1x256x256xf32> to vector<256x256xf32>
    %cst_91 = arith.constant dense<0.000000e+00> : vector<16x256xf32>
    %91 = tpu.matmul %88, %90, %cst_91 {dimension_numbers = #tpu.dot_dimension_numbers<[1], [0], [0], [1], [0, 0, 1, 1], [], []>} : vector<16x256xf32>, vector<256x256xf32>, vector<16x256xf32> -> vector<16x256xf32>
    %92 = arith.addf %64, %91 : vector<16x256xf32>
    %93 = arith.truncf %88 : vector<16x256xf32> to vector<16x256xbf16>
    %c1_92 = arith.constant 1 : index
    %c16_93 = arith.constant 16 : index
    %94 = vector.load %arg19[%c1_92, %c16_93] : memref<18x288xbf16, #tpu.memory_space<vmem>>, vector<16x256xbf16>
    tpu.vector_store %arg19[%c1_92, %c16_93], %93 {strides = array<i32>} : memref<18x288xbf16, #tpu.memory_space<vmem>>, vector<16x256xbf16>,
    %c0_94 = arith.constant 0 : index
    %c0_95 = arith.constant 0 : index
    %95 = vector.load %arg9[%c0_94, %c0_95] : memref<1x256xf32, #tpu.memory_space<vmem>>, vector<1x256xf32>
    %cst_96 = arith.constant 0.000000e+00 : f32
    %96 = vector.broadcast %cst_96 : f32 to vector<16x256xf32>
    %c0_97 = arith.constant 0 : index
    %c0_98 = arith.constant 0 : index
    %97 = vector.load %arg19[%c0_97, %c0_98] : memref<18x288xbf16, #tpu.memory_space<vmem>>, vector<16x288xbf16>
    %c0_99 = arith.constant 0 : index
    %c0_100 = arith.constant 0 : index
    %c0_101 = arith.constant 0 : index
    %98 = vector.load %arg5[%c0_99, %c0_100, %c0_101] : memref<3x288x256xbf16, #tpu.memory_space<vmem>>, vector<1x288x256xbf16>
    %99 = vector.shape_cast %98 : vector<1x288x256xbf16> to vector<288x256xbf16>
    %cst_102 = arith.constant dense<0.000000e+00> : vector<16x256xf32>
    %100 = tpu.matmul %97, %99, %cst_102 {dimension_numbers = #tpu.dot_dimension_numbers<[1], [0], [0], [1], [0, 0, 1, 1], [], []>} : vector<16x288xbf16>, vector<288x256xbf16>, vector<16x256xf32> -> vector<16x256xf32>
    %101 = arith.addf %96, %100 : vector<16x256xf32>
    %c1_103 = arith.constant 1 : index
    %c0_104 = arith.constant 0 : index
    %102 = vector.load %arg19[%c1_103, %c0_104] : memref<18x288xbf16, #tpu.memory_space<vmem>>, vector<16x288xbf16>
    %c1_105 = arith.constant 1 : index
    %c0_106 = arith.constant 0 : index
    %c0_107 = arith.constant 0 : index
    %103 = vector.load %arg5[%c1_105, %c0_106, %c0_107] : memref<3x288x256xbf16, #tpu.memory_space<vmem>>, vector<1x288x256xbf16>
    %104 = vector.shape_cast %103 : vector<1x288x256xbf16> to vector<288x256xbf16>
    %cst_108 = arith.constant dense<0.000000e+00> : vector<16x256xf32>
    %105 = tpu.matmul %102, %104, %cst_108 {dimension_numbers = #tpu.dot_dimension_numbers<[1], [0], [0], [1], [0, 0, 1, 1], [], []>} : vector<16x288xbf16>, vector<288x256xbf16>, vector<16x256xf32> -> vector<16x256xf32>
    %106 = arith.addf %101, %105 : vector<16x256xf32>
    %c2_109 = arith.constant 2 : index
    %c0_110 = arith.constant 0 : index
    %107 = vector.load %arg19[%c2_109, %c0_110] : memref<18x288xbf16, #tpu.memory_space<vmem>>, vector<16x288xbf16>
    %c2_111 = arith.constant 2 : index
    %c0_112 = arith.constant 0 : index
    %c0_113 = arith.constant 0 : index
    %108 = vector.load %arg5[%c2_111, %c0_112, %c0_113] : memref<3x288x256xbf16, #tpu.memory_space<vmem>>, vector<1x288x256xbf16>
    %109 = vector.shape_cast %108 : vector<1x288x256xbf16> to vector<288x256xbf16>
    %cst_114 = arith.constant dense<0.000000e+00> : vector<16x256xf32>
    %110 = tpu.matmul %107, %109, %cst_114 {dimension_numbers = #tpu.dot_dimension_numbers<[1], [0], [0], [1], [0, 0, 1, 1], [], []>} : vector<16x288xbf16>, vector<288x256xbf16>, vector<16x256xf32> -> vector<16x256xf32>
    %111 = arith.addf %106, %110 : vector<16x256xf32>
    %112 = vector.broadcast %95 : vector<1x256xf32> to vector<16x256xf32>
    %113 = arith.addf %111, %112 : vector<16x256xf32>
    %114 = arith.addf %92, %113 : vector<16x256xf32>
    %c0_115 = arith.constant 0 : index
    %c0_116 = arith.constant 0 : index
    %115 = vector.load %arg11[%c0_115, %c0_116] : memref<256x16xf32, #tpu.memory_space<vmem>>, vector<256x16xf32>
    %cst_117 = arith.constant dense<0.000000e+00> : vector<16x16xf32>
    %116 = tpu.matmul %114, %115, %cst_117 {dimension_numbers = #tpu.dot_dimension_numbers<[1], [0], [0], [1], [0, 0, 1, 1], [], []>} : vector<16x256xf32>, vector<256x16xf32>, vector<16x16xf32> -> vector<16x16xf32>
    %cst_118 = arith.constant dense<0.000000e+00> : vector<16xf32>
    %117 = vector.multi_reduction <add>, %116, %cst_118 [0] : vector<16x16xf32> to vector<16xf32>
    %118 = vector.shape_cast %117 : vector<16xf32> to vector<1x16xf32>
    %119 = arith.mulf %114, %114 : vector<16x256xf32>
    %c0_119 = arith.constant 0 : index
    %c0_120 = arith.constant 0 : index
    %120 = vector.load %arg11[%c0_119, %c0_120] : memref<256x16xf32, #tpu.memory_space<vmem>>, vector<256x16xf32>
    %cst_121 = arith.constant dense<0.000000e+00> : vector<16x16xf32>
    %121 = tpu.matmul %119, %120, %cst_121 {dimension_numbers = #tpu.dot_dimension_numbers<[1], [0], [0], [1], [0, 0, 1, 1], [], []>} : vector<16x256xf32>, vector<256x16xf32>, vector<16x16xf32> -> vector<16x16xf32>
    %cst_122 = arith.constant dense<0.000000e+00> : vector<16xf32>
    %122 = vector.multi_reduction <add>, %121, %cst_122 [0] : vector<16x16xf32> to vector<16xf32>
    %123 = vector.shape_cast %122 : vector<16xf32> to vector<1x16xf32>
    %cst_123 = arith.constant 3.906250e-03 : f32
    %124 = vector.broadcast %cst_123 : f32 to vector<1x16xf32>
    %125 = arith.mulf %118, %124 : vector<1x16xf32>
    %cst_124 = arith.constant 3.906250e-03 : f32
    %126 = vector.broadcast %cst_124 : f32 to vector<1x16xf32>
    %127 = arith.mulf %123, %126 : vector<1x16xf32>
    %128 = arith.mulf %125, %125 : vector<1x16xf32>
    %129 = arith.subf %127, %128 : vector<1x16xf32>
    %cst_125 = arith.constant 0.000000e+00 : f32
    %130 = vector.broadcast %cst_125 : f32 to vector<1x16xf32>
    %131 = arith.maximumf %129, %130 : vector<1x16xf32>
    %132 = math.sqrt %131 : vector<1x16xf32>
    %133 = arith.addf %125, %132 : vector<1x16xf32>
    %c0_126 = arith.constant 0 : index
    %c0_127 = arith.constant 0 : index
    %134 = vector.load %arg12[%c0_126, %c0_127] : memref<16x4xf32, #tpu.memory_space<vmem>>, vector<16x4xf32>
    %cst_128 = arith.constant dense<0.000000e+00> : vector<1x4xf32>
    %135 = tpu.matmul %133, %134, %cst_128 {dimension_numbers = #tpu.dot_dimension_numbers<[1], [0], [0], [1], [0, 0, 1, 1], [], []>} : vector<1x16xf32>, vector<16x4xf32>, vector<1x4xf32> -> vector<1x4xf32>
    %c0_129 = arith.constant 0 : index
    %c0_130 = arith.constant 0 : index
    %136 = vector.load %arg13[%c0_129, %c0_130] : memref<1x4xf32, #tpu.memory_space<vmem>>, vector<1x4xf32>
    %137 = arith.addf %135, %136 : vector<1x4xf32>
    %cst_131 = arith.constant 0.000000e+00 : f32
    %138 = vector.broadcast %cst_131 : f32 to vector<1x4xf32>
    %139 = arith.maximumf %137, %138 : vector<1x4xf32>
    %c0_132 = arith.constant 0 : index
    %c0_133 = arith.constant 0 : index
    %140 = vector.load %arg14[%c0_132, %c0_133] : memref<4x256xf32, #tpu.memory_space<vmem>>, vector<4x256xf32>
    %cst_134 = arith.constant dense<0.000000e+00> : vector<1x256xf32>
    %141 = tpu.matmul %139, %140, %cst_134 {dimension_numbers = #tpu.dot_dimension_numbers<[1], [0], [0], [1], [0, 0, 1, 1], [], []>} : vector<1x4xf32>, vector<4x256xf32>, vector<1x256xf32> -> vector<1x256xf32>
    %c0_135 = arith.constant 0 : index
    %c0_136 = arith.constant 0 : index
    %142 = vector.load %arg15[%c0_135, %c0_136] : memref<1x256xf32, #tpu.memory_space<vmem>>, vector<1x256xf32>
    %143 = arith.addf %141, %142 : vector<1x256xf32>
    %144 = arith.negf %143 : vector<1x256xf32>
    %145 = math.exp %144 : vector<1x256xf32>
    %cst_137 = arith.constant 1.000000e+00 : f32
    %146 = vector.broadcast %cst_137 : f32 to vector<1x256xf32>
    %147 = arith.addf %146, %145 : vector<1x256xf32>
    %148 = arith.divf %146, %147 : vector<1x256xf32>
    %149 = vector.broadcast %148 : vector<1x256xf32> to vector<16x256xf32>
    %150 = arith.mulf %114, %149 : vector<16x256xf32>
    %151 = arith.truncf %150 : vector<16x256xf32> to vector<16x256xbf16>
    %c0_138 = arith.constant 0 : index
    %c0_139 = arith.constant 0 : index
    %152 = vector.load %arg16[%c0_138, %c0_139] : memref<256x256xbf16, #tpu.memory_space<vmem>>, vector<256x256xbf16>
    %cst_140 = arith.constant dense<0.000000e+00> : vector<16x256xf32>
    %153 = tpu.matmul %151, %152, %cst_140 {dimension_numbers = #tpu.dot_dimension_numbers<[1], [0], [0], [1], [0, 0, 1, 1], [], []>} : vector<16x256xbf16>, vector<256x256xbf16>, vector<16x256xf32> -> vector<16x256xf32>
    %c0_141 = arith.constant 0 : index
    %c0_142 = arith.constant 0 : index
    %154 = vector.load %arg17[%c0_141, %c0_142] : memref<1x256xf32, #tpu.memory_space<vmem>>, vector<1x256xf32>
    %155 = vector.broadcast %154 : vector<1x256xf32> to vector<16x256xf32>
    %156 = arith.addf %153, %155 : vector<16x256xf32>
    %157 = arith.addf %156, %9 : vector<16x256xf32>
    %158 = vector.shape_cast %157 : vector<16x256xf32> to vector<1x16x256xf32>
    %c0_143 = arith.constant 0 : index
    %c0_144 = arith.constant 0 : index
    %c0_145 = arith.constant 0 : index
    %159 = vector.load %arg18[%c0_143, %c0_144, %c0_145] : memref<1x16x256xf32, #tpu.memory_space<vmem>>, vector<1x16x256xf32>
    tpu.vector_store %arg18[%c0_143, %c0_144, %c0_145], %158 {strides = array<i32>} : memref<1x16x256xf32, #tpu.memory_space<vmem>>, vector<1x16x256xf32>,
    return
  }
  func.func @transform_0(%arg0: i32) -> (i32, i32, i32) {
    %c0_i32 = arith.constant 0 : i32
    %c0_i32_0 = arith.constant 0 : i32
    %c0_i32_1 = arith.constant 0 : i32
    return %arg0, %c0_i32, %c0_i32_0 : i32, i32, i32
  }
  func.func @transform_1(%arg0: i32) -> (i32, i32, i32) {
    %c0_i32 = arith.constant 0 : i32
    %c0_i32_0 = arith.constant 0 : i32
    %c0_i32_1 = arith.constant 0 : i32
    %c0_i32_2 = arith.constant 0 : i32
    return %c0_i32, %c0_i32_0, %c0_i32_1 : i32, i32, i32
  }
  func.func @transform_2(%arg0: i32) -> (i32, i32, i32) {
    %c0_i32 = arith.constant 0 : i32
    %c0_i32_0 = arith.constant 0 : i32
    %c0_i32_1 = arith.constant 0 : i32
    %c0_i32_2 = arith.constant 0 : i32
    return %c0_i32, %c0_i32_0, %c0_i32_1 : i32, i32, i32
  }
  func.func @transform_3(%arg0: i32) -> (i32, i32, i32) {
    %c0_i32 = arith.constant 0 : i32
    %c0_i32_0 = arith.constant 0 : i32
    %c0_i32_1 = arith.constant 0 : i32
    %c0_i32_2 = arith.constant 0 : i32
    return %c0_i32, %c0_i32_0, %c0_i32_1 : i32, i32, i32
  }
  func.func @transform_4(%arg0: i32) -> (i32, i32, i32) {
    %c0_i32 = arith.constant 0 : i32
    %c0_i32_0 = arith.constant 0 : i32
    %c0_i32_1 = arith.constant 0 : i32
    %c0_i32_2 = arith.constant 0 : i32
    return %c0_i32, %c0_i32_0, %c0_i32_1 : i32, i32, i32
  }
  func.func @transform_5(%arg0: i32) -> (i32, i32) {
    %c0_i32 = arith.constant 0 : i32
    %c0_i32_0 = arith.constant 0 : i32
    %c0_i32_1 = arith.constant 0 : i32
    return %c0_i32, %c0_i32_0 : i32, i32
  }
  func.func @transform_6(%arg0: i32) -> (i32, i32) {
    %c0_i32 = arith.constant 0 : i32
    %c0_i32_0 = arith.constant 0 : i32
    %c0_i32_1 = arith.constant 0 : i32
    return %c0_i32, %c0_i32_0 : i32, i32
  }
  func.func @transform_7(%arg0: i32) -> (i32, i32) {
    %c0_i32 = arith.constant 0 : i32
    %c0_i32_0 = arith.constant 0 : i32
    %c0_i32_1 = arith.constant 0 : i32
    return %c0_i32, %c0_i32_0 : i32, i32
  }
  func.func @transform_8(%arg0: i32) -> (i32, i32) {
    %c0_i32 = arith.constant 0 : i32
    %c0_i32_0 = arith.constant 0 : i32
    %c0_i32_1 = arith.constant 0 : i32
    return %c0_i32, %c0_i32_0 : i32, i32
  }
  func.func @transform_9(%arg0: i32) -> (i32, i32, i32) {
    %c0_i32 = arith.constant 0 : i32
    %c0_i32_0 = arith.constant 0 : i32
    %c0_i32_1 = arith.constant 0 : i32
    %c0_i32_2 = arith.constant 0 : i32
    return %c0_i32, %c0_i32_0, %c0_i32_1 : i32, i32, i32
  }
  func.func @transform_10(%arg0: i32) -> (i32, i32) {
    %c0_i32 = arith.constant 0 : i32
    %c0_i32_0 = arith.constant 0 : i32
    %c0_i32_1 = arith.constant 0 : i32
    return %c0_i32, %c0_i32_0 : i32, i32
  }
  func.func @transform_11(%arg0: i32) -> (i32, i32) {
    %c0_i32 = arith.constant 0 : i32
    %c0_i32_0 = arith.constant 0 : i32
    %c0_i32_1 = arith.constant 0 : i32
    return %c0_i32, %c0_i32_0 : i32, i32
  }
  func.func @transform_12(%arg0: i32) -> (i32, i32) {
    %c0_i32 = arith.constant 0 : i32
    %c0_i32_0 = arith.constant 0 : i32
    %c0_i32_1 = arith.constant 0 : i32
    return %c0_i32, %c0_i32_0 : i32, i32
  }
  func.func @transform_13(%arg0: i32) -> (i32, i32) {
    %c0_i32 = arith.constant 0 : i32
    %c0_i32_0 = arith.constant 0 : i32
    %c0_i32_1 = arith.constant 0 : i32
    return %c0_i32, %c0_i32_0 : i32, i32
  }
  func.func @transform_14(%arg0: i32) -> (i32, i32) {
    %c0_i32 = arith.constant 0 : i32
    %c0_i32_0 = arith.constant 0 : i32
    %c0_i32_1 = arith.constant 0 : i32
    return %c0_i32, %c0_i32_0 : i32, i32
  }
  func.func @transform_15(%arg0: i32) -> (i32, i32) {
    %c0_i32 = arith.constant 0 : i32
    %c0_i32_0 = arith.constant 0 : i32
    %c0_i32_1 = arith.constant 0 : i32
    return %c0_i32, %c0_i32_0 : i32, i32
  }
  func.func @transform_16(%arg0: i32) -> (i32, i32) {
    %c0_i32 = arith.constant 0 : i32
    %c0_i32_0 = arith.constant 0 : i32
    %c0_i32_1 = arith.constant 0 : i32
    return %c0_i32, %c0_i32_0 : i32, i32
  }
  func.func @transform_17(%arg0: i32) -> (i32, i32, i32) {
    %c0_i32 = arith.constant 0 : i32
    %c0_i32_0 = arith.constant 0 : i32
    %c0_i32_1 = arith.constant 0 : i32
    return %arg0, %c0_i32, %c0_i32_0 : i32, i32, i32
  }
}

</mosaic_0001>

<bundles_post_ra>
// kernel: tile.74
= control target key start
LH: loop header
LB: loop body
LE: loop exit
PB: predicated region body
PF: predicated region fallthrough
CT: control target
= control target key end

     0   :  { %s15_s6 = smov 3  ;;  %s18_s7 = smov 12  ;;  %vm20_vm0 = vcmask 1043458   ;;  %vm25_vm1 = vcmask 1045508   ;;  %vm30_vm2 = vcmask 1047558   ;;  %vm4_vm3 = vcmask 1047556   ;;  %s364_s0 = inlined_call_operand.vmem [shape: f32[4,16,16], index: 0, kind: input, shape index: {}]   ;;  %s365_s1 = inlined_call_operand.vmem [shape: f32[4,256], index: 1, kind: output, shape index: {}]  }
   0x1   :  { %v193_v0 = vld [vmem:[%s364_s0 + $0x7] ss:$16 sm:%s15_s6]   ;;  %s23_s12 = smov 48  ;;  %s28_s13 = smov 192  ;;  %vm6_vm4 = vcmask 130048   ;;  %vm34_vm5 = vcmask 1048448  }
   0x2   :  { %v194_v1 = vld [vmem:[%s364_s0 + $0x7] ss:$16 sm:%s18_s7]   ;;  %v195_v3 = vld [vmem:[%s364_s0 - $0x31] ss:$16 sm:%s23_s12]   ;;  %s63_s18 = smov 3  ;;  %s66_s21 = smov 12 }
   0x3   :  { %v21_v2 = vsel %vm20_vm0, %v194_v1, %v193_v0  ;;  %v196_v4 = vld [vmem:[%s364_s0 - $0x31] ss:$16 sm:%s28_s13]   ;;  %v201_v6 = vld [vmem:[%s364_s0 + $0x5] ss:$16 sm:%s63_s18]   ;;  %s71_s22 = smov 48  ;;  %s76_s27 = smov 192 }
   0x4   :  { %v26_v5 = vsel %vm25_vm1, %v195_v3, %v21_v2  ;;  %v202_v8 = vld [vmem:[%s364_s0 + $0x5] ss:$16 sm:%s66_s21]   ;;  %v203_v9 = vld [vmem:[%s364_s0 - $0x33] ss:$16 sm:%s71_s22]   ;;  %s229_s28 = smov 112   ;;  %s39_s2 = smov 3 }
   0x5   :  { %v31_v7 = vsel %vm30_vm2, %v196_v4, %v26_v5  ;;  %v69_v10 = vsel %vm20_vm0, %v202_v8, %v201_v6  ;;  %v204_v11 = vld [vmem:[%s364_s0 - $0x33] ss:$16 sm:%s76_s27]   ;;  %s42_s3 = smov 12  ;;  %v197_v13 = vld [vmem:[%s364_s0 + $0x6] ss:$16 sm:%s39_s2]   ;;  %s47_s8 = smov 48 }
   0x6   :  { %32 = vrot.lane.b32.xlu0 %v31_v7, %s229_s28  ;;  %v74_v12 = vsel %vm25_vm1, %v203_v9, %v69_v10  ;;  %v198_v14 = vld [vmem:[%s364_s0 + $0x6] ss:$16 sm:%s42_s3]   ;;  %s52_s9 = smov 192  ;;  %s87_s14 = smov 3  ;;  %vm58_vm6 = vcmask 917248   ;;  %vm82_vm7 = vcmask 786048  }
   0x7   :  { %v79_v15 = vsel %vm30_vm2, %v204_v11, %v74_v12  ;;  %v45_v16 = vsel %vm20_vm0, %v198_v14, %v197_v13  ;;  %v199_v17 = vld [vmem:[%s364_s0 - $0x32] ss:$16 sm:%s47_s8]   ;;  %s230_s15 = smov 80   ;;  %v205_v20 = vld [vmem:[%s364_s0 + $0x4] ss:$16 sm:%s87_s14]   ;;  %s90_s18 = smov 12 }
   0x8   :  { %v200_v18 = vld [vmem:[%s364_s0 - $0x32] ss:$16 sm:%s52_s9]   ;;  %80 = vrot.lane.b32.xlu1 %v79_v15, %s230_s15  ;;  %v50_v19 = vsel %vm25_vm1, %v199_v17, %v45_v16  ;;  %s95_s19 = smov 48  ;;  %s100_s24 = smov 192  ;;  %vm106_vm8 = vcmask 654848   ;;  %vm130_vm9 = vcmask 523648  }
   0x9   :  { %v55_v21 = vsel %vm30_vm2, %v200_v18, %v50_v19  ;;  %v206_v22 = vld [vmem:[%s364_s0 + $0x4] ss:$16 sm:%s90_s18]   ;;  %v207_v23 = vld [vmem:[%s364_s0 - $0x34] ss:$16 sm:%s95_s19]   ;;  %s231_s25 = smov 96   ;;  %s111_s28 = smov 3 }
   0xa   :  { %56 = vrot.lane.b32.xlu0 %v55_v21, %s231_s25  ;;  %v93_v24 = vsel %vm20_vm0, %v206_v22, %v205_v20  ;;  %v208_v25 = vld [vmem:[%s364_s0 - $0x34] ss:$16 sm:%s100_s24]   ;;  %s114_s29 = smov 12  ;;  %s119_s5 = smov 48  ;;  %vm154_vm10 = vcmask 392448   ;;  %vm178_vm11 = vcmask 261248  }
   0xb   :  { %v98_v26 = vsel %vm25_vm1, %v207_v23, %v93_v24  ;;  %v209_v27 = vld [vmem:[%s364_s0 + $0x3] ss:$16 sm:%s111_s28]   ;;  %s124_s6 = smov 192  ;;  %v211_v31 = vld [vmem:[%s364_s0 - $0x35] ss:$16 sm:%s119_s5]   ;;  %s135_s11 = smov 3 }
   0xc   :  { %v210_v28 = vld [vmem:[%s364_s0 + $0x3] ss:$16 sm:%s114_s29]   ;;  %v103_v29 = vsel %vm30_vm2, %v208_v25, %v98_v26  ;;  %v212_v32 = vld [vmem:[%s364_s0 - $0x35] ss:$16 sm:%s124_s6]   ;;  %s232_s12 = smov 64   ;;  %s138_s15 = smov 12 }
   0xd   :  { %v117_v30 = vsel %vm20_vm0, %v210_v28, %v209_v27  ;;  %104 = vrot.lane.b32.xlu1 %v103_v29, %s232_s12  ;;  %v213_v34 = vld [vmem:[%s364_s0 + $0x2] ss:$16 sm:%s135_s11]   ;;  %s143_s16 = smov 48  ;;  %s148_s21 = smov 192 }
   0xe   :  { %v122_v33 = vsel %vm25_vm1, %v211_v31, %v117_v30  ;;  %v214_v36 = vld [vmem:[%s364_s0 + $0x2] ss:$16 sm:%s138_s15]   ;;  %v215_v37 = vld [vmem:[%s364_s0 - $0x36] ss:$16 sm:%s143_s16]   ;;  %s233_s22 = smov 48   ;;  %s159_s25 = smov 3 }
   0xf   :  { %v127_v35 = vsel %vm30_vm2, %v212_v32, %v122_v33  ;;  %v141_v38 = vsel %vm20_vm0, %v214_v36, %v213_v34  ;;  %v216_v39 = vld [vmem:[%s364_s0 - $0x36] ss:$16 sm:%s148_s21]   ;;  %s162_s26 = smov 12  ;;  %v217_v41 = vld [vmem:[%s364_s0 + $0x1] ss:$16 sm:%s159_s25]   ;;  %s167_s2 = smov 48 }
  0x10   :  { %128 = vrot.lane.b32.xlu0 %v127_v35, %s233_s22  ;;  %v146_v40 = vsel %vm25_vm1, %v215_v37, %v141_v38  ;;  %v218_v42 = vld [vmem:[%s364_s0 + $0x1] ss:$16 sm:%s162_s26]   ;;  %s172_s3 = smov 192  ;;  %s234_s8 = smov 32  }
  0x11   :  { %v151_v43 = vsel %vm30_vm2, %v216_v39, %v146_v40  ;;  %v165_v44 = vsel %vm20_vm0, %v218_v42, %v217_v41  ;;  %v219_v45 = vld [vmem:[%s364_s0 - $0x37] ss:$16 sm:%s167_s2]   ;;  %v2_v48 = vld [vmem:[%s364_s0] ss:$8 sm:$0xf]  }
  0x12   :  { %v220_v46 = vld [vmem:[%s364_s0 - $0x37] ss:$16 sm:%s172_s3]   ;;  %152 = vrot.lane.b32.xlu1 %v151_v43, %s234_s8  ;;  %v170_v47 = vsel %vm25_vm1, %v219_v45, %v165_v44  ;;  %v3_v49 = vld [vmem:[%s364_s0] ss:$8 sm:$0xf0]   ;;  %s235_s0 = smov 16  }
  0x13   :  { %v175_v50 = vsel %vm30_vm2, %v220_v46, %v170_v47  ;;  %v5_v51 = vsel %vm4_vm3, %v3_v49, %v2_v48 }
  0x14   :  { %176 = vrot.lane.b32.xlu0 %v175_v50, %s235_s0  ;;  %7 = vst.msk [vmem:[#allocation0] ss:$8 sm:$0x3] %vm6_vm4, %v5_v51   ;;  %9 = vst.msk [vmem:[#allocation0 - $0xf] ss:$8 sm:$0xc] %vm6_vm4, %v5_v51  }
  0x15   :  { %11 = vst.msk [vmem:[#allocation0 - $0x1e] ss:$8 sm:$0x30] %vm6_vm4, %v5_v51   ;;  %13 = vst.msk [vmem:[#allocation0 - $0x2d] ss:$8 sm:$0xc0] %vm6_vm4, %v5_v51  }
  0x78   :  { %v33_v52 = vpop.permute.xlu0 %32  }
  0x79   :  { %35 = vst.msk [vmem:[#allocation0] sm:$0xf] %vm34_vm5, %v33_v52   ;;  %37 = vst.msk [vmem:[#allocation0 + $0x4] sm:$0xf0] %vm34_vm5, %v33_v52  }
  0x7a   :  { %v81_v53 = vpop.permute.xlu1 %80  }
  0x7c   :  { %v57_v54 = vpop.permute.xlu0 %56  }
  0x7d   :  { %59 = vst.msk [vmem:[#allocation0] sm:$0xf] %vm58_vm6, %v57_v54   ;;  %61 = vst.msk [vmem:[#allocation0 + $0x4] sm:$0xf0] %vm58_vm6, %v57_v54  }
  0x7e   :  { %83 = vst.msk [vmem:[#allocation0] sm:$0xf] %vm82_vm7, %v81_v53   ;;  %85 = vst.msk [vmem:[#allocation0 + $0x4] sm:$0xf0] %vm82_vm7, %v81_v53  }
  0x7f   :  { %v105_v55 = vpop.permute.xlu1 %104  }
  0x80   :  { %107 = vst.msk [vmem:[#allocation0] sm:$0xf] %vm106_vm8, %v105_v55   ;;  %109 = vst.msk [vmem:[#allocation0 + $0x4] sm:$0xf0] %vm106_vm8, %v105_v55  }
  0x82   :  { %v129_v56 = vpop.permute.xlu0 %128  }
  0x83   :  { %131 = vst.msk [vmem:[#allocation0] sm:$0xf] %vm130_vm9, %v129_v56   ;;  %133 = vst.msk [vmem:[#allocation0 + $0x4] sm:$0xf0] %vm130_vm9, %v129_v56  }
  0x84   :  { %v153_v57 = vpop.permute.xlu1 %152  }
  0x85   :  { %155 = vst.msk [vmem:[#allocation0] sm:$0xf] %vm154_vm10, %v153_v57   ;;  %157 = vst.msk [vmem:[#allocation0 + $0x4] sm:$0xf0] %vm154_vm10, %v153_v57  }
  0x86   :  { %v177_v58 = vpop.permute.xlu0 %176  }
  0x87   :  { %179 = vst.msk [vmem:[#allocation0] sm:$0xf] %vm178_vm11, %v177_v58   ;;  %181 = vst.msk [vmem:[#allocation0 + $0x4] sm:$0xf0] %vm178_vm11, %v177_v58  }
  0x8e   :  { %v185_v59 = vld [vmem:[#allocation0] sm:$0xf]  ;;  %v189_v60 = vld [vmem:[#allocation0 + $0x8] sm:$0xf] }
  0x8f   :  { %187 = vst [vmem:[%s365_s1] sm:$0xf] %v185_v59  ;;  %221 = vst [vmem:[%s365_s1 + $0x4] sm:$0xf] %v189_v60 }

// kernel: imdb_forward.1
= control target key start
LH: loop header
LB: loop body
LE: loop exit
PB: predicated region body
PF: predicated region fallthrough
CT: control target
= control target key end

     0   :  { %s8387_s24 = smov 0   ;;  %s10987_s0 = inlined_call_operand.vmem [shape: f32[2,16,256], index: 0, kind: input, shape index: {}]   ;;  %s10988_s1 = inlined_call_operand.vmem [shape: bf16[3,288,256], index: 1, kind: input, shape index: {}]   ;;  %s10989_s2 = inlined_call_operand.vmem [shape: bf16[3,288,256], index: 2, kind: input, shape index: {}]   ;;  %s10990_s3 = inlined_call_operand.vmem [shape: bf16[3,288,256], index: 3, kind: input, shape index: {}]   ;;  %s10991_s4 = inlined_call_operand.vmem [shape: bf16[3,288,256], index: 4, kind: input, shape index: {}]   ;;  %s10992_s5 = inlined_call_operand.vmem [shape: f32[1,256], index: 5, kind: input, shape index: {}]   ;;  %s10993_s6 = inlined_call_operand.vmem [shape: f32[1,256], index: 6, kind: input, shape index: {}]   ;;  %s10994_s7 = inlined_call_operand.vmem [shape: f32[1,256], index: 7, kind: input, shape index: {}]   ;;  %s10995_s8 = inlined_call_operand.vmem [shape: f32[1,256], index: 8, kind: input, shape index: {}]   ;;  %s10996_s9 = inlined_call_operand.vmem [shape: f32[3,256,256], index: 9, kind: input, shape index: {}]   ;;  %s10997_s10 = inlined_call_operand.vmem [shape: f32[256,16], index: 10, kind: input, shape index: {}]   ;;  %s10998_s11 = inlined_call_operand.vmem [shape: f32[16,4], index: 11, kind: input, shape index: {}]   ;;  %s10999_s12 = inlined_call_operand.vmem [shape: f32[1,4], index: 12, kind: input, shape index: {}]   ;;  %s11000_s13 = inlined_call_operand.vmem [shape: f32[4,256], index: 13, kind: input, shape index: {}]   ;;  %s11001_s14 = inlined_call_operand.vmem [shape: f32[1,256], index: 14, kind: input, shape index: {}]   ;;  %s11002_s15 = inlined_call_operand.vmem [shape: bf16[256,256], index: 15, kind: input, shape index: {}]   ;;  %s11003_s16 = inlined_call_operand.vmem [shape: f32[1,256], index: 16, kind: input, shape index: {}]   ;;  %s11004_s17 = inlined_call_operand.vmem [shape: f32[2,16,256], index: 17, kind: output, shape index: {}]  }
   0x1   :  { %11009 = sst [smem:[#allocation3_spill]] %s10987_s0 }
   0x2   :  { %11010 = sst [smem:[#allocation4_spill]] %s10988_s1 }
   0x3   :  { %11011 = sst [smem:[#allocation5_spill]] %s10989_s2 }
   0x4   :  { %11012 = sst [smem:[#allocation6_spill]] %s10992_s5 }
   0x5 LB: > { %s6134_s25 = sadd.s32 4294967295, %s8290_s24   ;;  %p6138_p0 = scmp.ge.s32.totalorder %s8290_s24, 1  ;;  %s8290_s24 = sphi %s8387_s24, %s27_s24  }
   0x6   : > { %p487_p1 = scmp.lt.s32.totalorder %s8290_s24, 3 }
   0x8   : > { %p488_p2 = pnand %p6138_p0, %p487_p1 }
   0x9   : > { %p539_p3 = scmp.lt.s32.totalorder (!%p488_p2), %s6134_s25, 1  ;;  %s11013_s28 = sld [smem:[#allocation4_spill]] (!%p488_p2)  ;;  %vm551_vm0 = vsmask.f32 (!%p488_p2), 256  ;;  %vm615_vm1 = vsmask.f32 (!%p488_p2), 4368 }
   0xa   : > { %491 = sbr.rel (%p488_p2) target bundleno = 3082 (0xc0a), region = 88  ;;  %s11014_s23 = sld [smem:[#allocation3_spill]] (!%p488_p2)  ;;  %vm550_vm2 = vcmask (!%p488_p2), 1040384   ;;  %vm553_vm3 = vcmask (!%p488_p2), 1044484   ;;  %vm8431_vm4 = vmor (!%p488_p2), %vm551_vm0, %vm615_vm1  ;;  %vm554_vm5 = vsmask.f32 (!%p488_p2), 4352 }
   0xb   : > { %vm8443_vm6 = vmand (!%p488_p2), %vm550_vm2, %vm551_vm0  ;;  %s11007_s27 = smov (!%p488_p2), 16   ;;  %vm560_vm7 = vcmask (!%p488_p2), 253952   ;;  %vm577_vm8 = vcmask (!%p488_p2), 125952   ;;  %vm589_vm9 = vcmask (!%p488_p2), 257152   ;;  %v557_v29 = vld [vmem:[#allocation2] sm:$0x11] (!%p488_p2) }
   0xc   : > { %vm8452_vm10 = vmand (!%p488_p2), %vm553_vm3, %vm554_vm5  ;;  %vm565_vm11 = vsmask.f32 (!%p488_p2), 7938  ;;  %v8293_v30 = vmov (!%p488_p2), 0   ;;  %v562_v32 = vld [vmem:[#allocation2 + $0x8] sm:$0x1] (!%p488_p2)  ;;  %s11033_s2 = sld [smem:[#allocation5_spill]] (!%p488_p2) }
   0xd   : > { %583 = vst.msk [vmem:[#allocation2 + $0xc] sm:$0xf] (!%p488_p2), %vm577_vm8, %v8293_v30  ;;  %1077 = vmatprep.mubr.bf16.mxu1 (!%p488_p2), %v8293_v30  ;;  %vm556_vm12 = vmor (!%p488_p2), %vm8452_vm10, %vm8443_vm6  ;;  %vm567_vm13 = vsmask.f32 (!%p488_p2), 7954  ;;  %v570_v36 = vld [vmem:[#allocation2 + $0x18] sm:$0x11] (!%p488_p2) }
   0xe   : > { %595 = vst.msk [vmem:[#allocation2 + $0x14] sm:$0xf] (!%p488_p2), %vm589_vm9, %v8293_v30  ;;  %v558_v34 = vsel (!%p488_p2), %vm556_vm12, 0, %v557_v29  ;;  %vm561_vm14 = vmand (!%p488_p2), %vm560_vm7, %vm551_vm0  ;;  %v574_v37 = vld [vmem:[#allocation2 + $0x20] sm:$0x1] (!%p488_p2)  ;;  %vm653_vm6 = vcmask (!%p488_p2), 1043584  }
   0xf   : > { %v7543_v0 = vld [vmem:[%s11013_s28 + $0x124] ss:$8 sps:$4 sm:$0xff] (!%p488_p2)   ;;  %v7545_v1 = vld [vmem:[%s11013_s28 + $0x120] ss:$8 sps:$4 sm:$0xff] (!%p488_p2)   ;;  %v7546_v2 = vld [vmem:[%s11013_s28 + $0x134] ss:$8 sps:$4 sm:$0xff] (!%p488_p2)  }
  0x10   : > { %1002 = vmatprep.subr.bf16.mxu0 (!%p488_p2), %v7543_v0  ;;  %v7548_v3 = vld [vmem:[%s11013_s28 + $0x130] ss:$8 sps:$4 sm:$0xff] (!%p488_p2)   ;;  %v7549_v4 = vld [vmem:[%s11013_s28 + $0x144] ss:$8 sps:$4 sm:$0xff] (!%p488_p2)   ;;  %v7551_v13 = vld [vmem:[%s11013_s28 + $0x140] ss:$8 sps:$4 sm:$0xff] (!%p488_p2)  }
  0x11   : > { %s11038_s25 = smov (!%p539_p3, %s6134_s25), 1  ;;  %1003 = vmatpush1.bf16.msra.mxu0 %v7545_v1  ;;  %v7552_v16 = vld [vmem:[%s11013_s28 + $0x154] ss:$8 sps:$4 sm:$0xff]   ;;  %v7554_v22 = vld [vmem:[%s11013_s28 + $0x150] ss:$8 sps:$4 sm:$0xff]   ;;  %v563_v35 = vsel %vm561_vm14, 0, %v562_v32  ;;  %vm566_vm15 = vmand %vm550_vm2, %vm565_vm11 }
  0x12   : > { %s11006_s19 = sshll.u32 %s11038_s25, 5  ;;  %1004 = vmatprep.subr.bf16.mxu0 %v7546_v2  ;;  %v7555_v25 = vld [vmem:[%s11013_s28 + $0x164] ss:$8 sps:$4 sm:$0xff]   ;;  %v7557_v31 = vld [vmem:[%s11013_s28 + $0x160] ss:$8 sps:$4 sm:$0xff]   ;;  %vm568_vm1 = vmand %vm553_vm3, %vm567_vm13  ;;  %vm655_vm12 = vcmask 1047556  }
  0x13   : > { %s8415_s26 = scalar_lea.vmem %s11014_s23, %s11006_s19  ;;  %v7558_v33 = vld [vmem:[%s11013_s28 + $0x174] ss:$8 sps:$4 sm:$0xff]   ;;  %559 = vst [vmem:[#allocation2] sm:$0x11] %v558_v34  ;;  %564 = vst [vmem:[#allocation2 + $0x8] sm:$0x1] %v563_v35 }
  0x14   : > { %v601_v5 = vld [vmem:[%s8415_s26] sm:$0xff]  ;;  %v602_v6 = vld [vmem:[%s8415_s26 + $0x8] sm:$0xff]  ;;  %v603_v7 = vld [vmem:[%s8415_s26 + $0x10] sm:$0xff]  ;;  %s11034_s5 = sld [smem:[#allocation6_spill]]  ;;  %s11035_s23 = smov 16  }
  0x15   : > { %v7089_v8 = vpack.c.bf16 %v602_v6, %v601_v5  ;;  %v604_v9 = vld [vmem:[%s8415_s26 + $0x18] sm:$0xff]  ;;  %1005 = vmatpush1.bf16.msra.mxu0 %v7548_v3  ;;  %vm569_vm5 = vmor %vm568_vm1, %vm566_vm15  ;;  %v7561_v39 = vld [vmem:[%s11013_s28 + $0x184] ss:$8 sps:$4 sm:$0xff]   ;;  %vm584_vm15 = vcmask 122880   ;;  %vm596_vm1 = vcmask 254080   ;;  %s11036_s0 = sshll.u32 %s11038_s25, 5 }
  0x16   : > { %v7090_v10 = vpack.c.bf16 %v604_v9, %v603_v7  ;;  %1006 = vmatprep.subr.bf16.mxu0 %v7549_v4  ;;  %v7560_v38 = vld [vmem:[%s11013_s28 + $0x170] ss:$8 sps:$4 sm:$0xff]   ;;  %v571_v40 = vsel %vm569_vm5, 0, %v570_v36  ;;  %vm573_vm2 = vmand %vm560_vm7, %vm565_vm11  ;;  %v7563_v44 = vld [vmem:[%s11013_s28 + $0x180] ss:$8 sps:$4 sm:$0xff]   ;;  %vm669_vm5 = vcmask 1040512   ;;  %s548_s18 = scalar_lea.vmem %s11004_s17, %s11036_s0 }
  0x17   : > { %v618_v11 = vshrl.u32 %v7089_v8, 16  ;;  %v621_v12 = vshll.u32 %v7089_v8, 16  ;;  %572 = vst [vmem:[#allocation2 + $0x18] sm:$0x11] %v571_v40  ;;  %v575_v41 = vsel %vm573_vm2, 0, %v574_v37  ;;  %vm8488_vm3 = vmand %vm577_vm8, %vm565_vm11 }
  0x18   : > { %v626_v14 = vshrl.u32 %v7090_v10, 16  ;;  %v629_v15 = vshll.u32 %v7090_v10, 16  ;;  %vm8494_vm14 = vmand %vm589_vm9, %vm565_vm11  ;;  %576 = vst [vmem:[#allocation2 + $0x20] sm:$0x1] %v575_v41  ;;  %v7564_v45 = vld [vmem:[%s11013_s28 + $0x194] ss:$8 sps:$4 sm:$0xff]  }
  0x19   : > { %v620_v17 = vrot.slane %v618_v11, 7  ;;  %1007 = vmatpush1.bf16.msra.mxu0 %v7551_v13  ;;  %vm654_vm7 = vmand %vm653_vm6, %vm565_vm11  ;;  %v7566_v47 = vld [vmem:[%s11013_s28 + $0x190] ss:$8 sps:$4 sm:$0xff]   ;;  %v7585_v53 = vld [vmem:[%s11013_s28 + $0x224] ss:$8 sps:$4 sm:$0xff]  }
  0x1a   : > { %v628_v18 = vrot.slane %v626_v14, 7  ;;  %1008 = vmatprep.subr.bf16.mxu0 %v7552_v16  ;;  %v579_v46 = vld [vmem:[#allocation2] sm:$0xf]  ;;  %vm656_vm9 = vmand %vm655_vm12, %vm567_vm13  ;;  %v591_v49 = vld [vmem:[#allocation2 + $0x8] sm:$0xf]  ;;  %1045 = vmatprep.subr.bf16.mxu1 %v7585_v53 }
  0x1b   : > { %v623_v19 = vor.u32 %v621_v12, %v620_v17  ;;  %v624_v20 = vrot.slane %v620_v17, 4  ;;  %v580_v48 = vsel %vm8488_vm3, 0, %v579_v46  ;;  %vm8513_vm11 = vmor %vm656_vm9, %vm654_vm7  ;;  %v592_v51 = vsel %vm8494_vm14, 0, %v591_v49  ;;  %v7567_v54 = vld [vmem:[%s11013_s28 + $0x1a4] ss:$8 sps:$4 sm:$0xff]  }
  0x1c   : > { %v633_v23 = vrot.slane %v628_v18, 4  ;;  %v631_v24 = vor.u32 %v629_v15, %v628_v18  ;;  %581 = vst [vmem:[#allocation2] sm:$0xf] %v580_v48  ;;  %vm8520_vm13 = vmand %vm584_vm15, %vm551_vm0  ;;  %v7589_v59 = vld [vmem:[%s11013_s28 + $0x220] ss:$8 sps:$4 sm:$0xff]   ;;  %vm1405_vm15 = vcmask 1046528  }
  0x1d   : > { %634 = vrot.lane.b32.xlu0 %v623_v19, %s11007_s27  ;;  %1009 = vmatpush1.bf16.msra.mxu0 %v7554_v22  ;;  %593 = vst [vmem:[#allocation2 + $0x8] sm:$0xf] %v592_v51  ;;  %vm597_vm2 = vmand %vm596_vm1, %vm551_vm0  ;;  %v7569_v60 = vld [vmem:[%s11013_s28 + $0x1a0] ss:$8 sps:$4 sm:$0xff]   ;;  %v7591_v62 = vld [vmem:[%s11013_s28 + $0x234] ss:$8 sps:$4 sm:$0xff]  }
  0x1e   : > { %638 = vrot.lane.b32.xlu1 %v633_v23, %s11007_s27  ;;  %v632_v27 = vsel %vm8431_vm4, %v624_v20, %v631_v24  ;;  %1010 = vmatprep.subr.bf16.mxu0 %v7555_v25  ;;  %v586_v55 = vld [vmem:[#allocation2 + $0x18] sm:$0x1]  ;;  %vm670_vm14 = vmand %vm669_vm5, %vm551_vm0  ;;  %v7570_v63 = vld [vmem:[%s11013_s28 + $0x1b4] ss:$8 sps:$4 sm:$0xff]   ;;  %vm643_vm0 = vcmask 130048   ;;  %vm5722_vm9 = vcmask 1043456  }
  0x1f   : > { %v587_v56 = vsel %vm8520_vm13, 0, %v586_v55  ;;  %v598_v57 = vld [vmem:[#allocation2 + $0x20] sm:$0x1]  ;;  %vm8536_vm7 = vmor %vm8452_vm10, %vm670_vm14  ;;  %1046 = vmatpush1.bf16.msra.mxu1 %v7589_v59  ;;  %v7595_v0 = vld [vmem:[%s11013_s28 + $0x230] ss:$8 sps:$4 sm:$0xff]   ;;  %vm5718_vm1 = vcmask 31744  }
  0x20   : > { %588 = vst [vmem:[#allocation2 + $0x18] sm:$0x1] %v587_v56  ;;  %v599_v61 = vsel %vm597_vm2, 0, %v598_v57  ;;  %1047 = vmatprep.subr.bf16.mxu1 %v7591_v62  ;;  %v7572_v1 = vld [vmem:[%s11013_s28 + $0x1b0] ss:$8 sps:$4 sm:$0xff]   ;;  %vm8605_vm10 = vmor %vm655_vm12, %vm653_vm6  ;;  %vm998_vm12 = vcmask 261120  }
  0x21   : > { %636 = vrot.lane.b32.xlu0 %v632_v27, %s11007_s27  ;;  %1011 = vmatpush1.bf16.msra.mxu0 %v7557_v31  ;;  %600 = vst [vmem:[#allocation2 + $0x20] sm:$0x1] %v599_v61  ;;  %v7601_v2 = vld [vmem:[%s11013_s28 + $0x104] ss:$8 sps:$4 sm:$0xff]   ;;  %v7575_v4 = vld [vmem:[%s11013_s28 + $0x1c0] ss:$8 sps:$4 sm:$0xff]  }
  0x22   : > { %1012 = vmatprep.subr.bf16.mxu0 %v7558_v33  ;;  %v7573_v3 = vld [vmem:[%s11013_s28 + $0x1c4] ss:$8 sps:$4 sm:$0xff]   ;;  %v7576_v5 = vld [vmem:[%s11013_s28 + $0x1d4] ss:$8 sps:$4 sm:$0xff]   ;;  %v7578_v6 = vld [vmem:[%s11013_s28 + $0x1d0] ss:$8 sps:$4 sm:$0xff]  }
  0x23   : > { %1048 = vmatpush1.bf16.msra.mxu1 %v7595_v0  ;;  %v7579_v7 = vld [vmem:[%s11013_s28 + $0x1e4] ss:$8 sps:$4 sm:$0xff]   ;;  %v7581_v8 = vld [vmem:[%s11013_s28 + $0x1e0] ss:$8 sps:$4 sm:$0xff]   ;;  %v7582_v9 = vld [vmem:[%s11013_s28 + $0x1f4] ss:$8 sps:$4 sm:$0xff]  }
  0x24   : > { %1315 = vmatprep.subr.bf16.mxu1 %v7601_v2  ;;  %v7584_v10 = vld [vmem:[%s11013_s28 + $0x1f0] ss:$8 sps:$4 sm:$0xff]   ;;  %v7587_v11 = vld [vmem:[%s11013_s28 + $0x204] ss:$8 sps:$4 sm:$0xff]   ;;  %v7590_v12 = vld [vmem:[%s11013_s28 + $0x200] ss:$8 sps:$4 sm:$0xff]  }
  0x25   : > { %1013 = vmatpush1.bf16.msra.mxu0 %v7560_v38  ;;  %v7593_v13 = vld [vmem:[%s11013_s28 + $0x214] ss:$8 sps:$4 sm:$0xff]   ;;  %v7596_v14 = vld [vmem:[%s11013_s28 + $0x210] ss:$8 sps:$4 sm:$0xff]   ;;  %v7605_v15 = vld [vmem:[%s11013_s28 + $0x4] ss:$8 sps:$4 sm:$0xff]  }
  0x26   : > { %1014 = vmatprep.subr.bf16.mxu0 %v7561_v39  ;;  %v658_v16 = vld [vmem:[#allocation2] sm:$0xff]  ;;  %v661_v17 = vld [vmem:[#allocation2 + $0x8] sm:$0xf]  ;;  %vm779_vm6 = vsmask.f32 7424 }
  0x27   : > { %v672_v20 = vld [vmem:[#allocation2 + $0x18] sm:$0x11]  ;;  %v7599_v56 = vld [vmem:[%s11013_s28 + $0x100] ss:$8 sps:$4 sm:$0xff]  }
  0x28   : > { %v675_v18 = vld [vmem:[#allocation2 + $0x20] sm:$0x1]  ;;  %v7609_v62 = vld [vmem:[%s11013_s28 + $0x114] ss:$8 sps:$4 sm:$0xff]  }
  0x29   : > { %1015 = vmatpush1.bf16.msra.mxu0 %v7563_v44  ;;  %v7603_v0 = vld [vmem:[%s11013_s28] ss:$8 sps:$4 sm:$0xff]  }
  0x2a   : > { %1016 = vmatprep.subr.bf16.mxu0 %v7564_v45  ;;  %v8062_v21 = vld [vmem:[%s10991_s4 + $0x160] ss:$8 sps:$4 sm:$0xff]  }
  0x2d   : > { %1017 = vmatpush1.bf16.msra.mxu0 %v7566_v47 }
  0x2e   : > { %1018 = vmatprep.subr.bf16.mxu0 %v7567_v54 }
  0x31   : > { %1019 = vmatpush1.bf16.msra.mxu0 %v7569_v60 }
  0x32   : > { %1020 = vmatprep.subr.bf16.mxu0 %v7570_v63 }
  0x35   : > { %1021 = vmatpush1.bf16.msra.mxu0 %v7572_v1 }
  0x36   : > { %1022 = vmatprep.subr.bf16.mxu0 %v7573_v3 }
  0x39   : > { %1023 = vmatpush1.bf16.msra.mxu0 %v7575_v4 }
  0x3a   : > { %1024 = vmatprep.subr.bf16.mxu0 %v7576_v5  ;;  %v7612_v5 = vld [vmem:[%s11013_s28 + $0x14] ss:$8 sps:$4 sm:$0xff]  }
  0x3d   : > { %1025 = vmatpush1.bf16.msra.mxu0 %v7578_v6 }
  0x3e   : > { %1026 = vmatprep.subr.bf16.mxu0 %v7579_v7 }
  0x41   : > { %1027 = vmatpush1.bf16.msra.mxu0 %v7581_v8 }
  0x42   : > { %1028 = vmatprep.subr.bf16.mxu0 %v7582_v9  ;;  %v7607_v9 = vld [vmem:[%s11013_s28 + $0x110] ss:$8 sps:$4 sm:$0xff]  }
  0x45   : > { %1029 = vmatpush1.bf16.msra.mxu0 %v7584_v10 }
  0x46   : > { %1030 = vmatprep.subr.bf16.mxu0 %v7587_v11  ;;  %v7615_v11 = vld [vmem:[%s11013_s28 + $0x344] ss:$8 sps:$4 sm:$0xff]  }
  0x49   : > { %1031 = vmatpush1.bf16.msra.mxu0 %v7590_v12 }
  0x4a   : > { %1032 = vmatprep.subr.bf16.mxu0 %v7593_v13  ;;  %v7610_v13 = vld [vmem:[%s11013_s28 + $0x10] ss:$8 sps:$4 sm:$0xff]  }
  0x4d   : > { %1033 = vmatpush1.bf16.msra.mxu0 %v7596_v14  ;;  %v7618_v14 = vld [vmem:[%s11013_s28 + $0x24] ss:$8 sps:$4 sm:$0xff]  }
  0x4e   : > { %1272 = vmatprep.subr.bf16.mxu0 %v7605_v15  ;;  %v7613_v15 = vld [vmem:[%s11013_s28 + $0x340] ss:$8 sps:$4 sm:$0xff]  }
  0x8f   : > { %v635_v19 = vpop.permute.xlu0 %634 }
  0x90   : > { %v640_v22 = vrot.slane %v635_v19, 4  ;;  %v639_v23 = vpop.permute.xlu1 %638 }
  0x91   : > { %v642_v24 = vrot.slane %v639_v23, 4 }
  0x92   : > { %v644_v25 = vsel %vm643_vm0, %v640_v22, %v635_v19  ;;  %v662_v26 = vsel %vm8488_vm3, %v640_v22, %v661_v17  ;;  %v7624_v19 = vld [vmem:[%s11013_s28 + $0x34] ss:$8 sps:$4 sm:$0xff]  }
  0x93   : > { %v659_v28 = vsel %vm8513_vm11, %v644_v25, %v658_v16  ;;  %663 = vst [vmem:[#allocation2 + $0x8] sm:$0xf] %v662_v26  ;;  %v646_v29 = vsel %vm643_vm0, %v642_v24, %v639_v23  ;;  %v676_v31 = vsel %vm8520_vm13, %v642_v24, %v675_v18  ;;  %v637_v32 = vpop.permute.xlu0 %636  ;;  %v7621_v16 = vld [vmem:[%s11013_s28 + $0x354] ss:$8 sps:$4 sm:$0xff]   ;;  %v7616_v18 = vld [vmem:[%s11013_s28 + $0x20] ss:$8 sps:$4 sm:$0xff]  }
  0x94   : > { %660 = vst [vmem:[#allocation2] sm:$0xff] %v659_v28  ;;  %v673_v33 = vsel %vm8536_vm7, %v646_v29, %v672_v20  ;;  %677 = vst [vmem:[#allocation2 + $0x20] sm:$0x1] %v676_v31  ;;  %v641_v34 = vrot.slane %v637_v32, 4  ;;  %v7619_v20 = vld [vmem:[%s11013_s28 + $0x350] ss:$8 sps:$4 sm:$0xff]  }
  0x95   : > { %674 = vst [vmem:[#allocation2 + $0x18] sm:$0x11] %v673_v33  ;;  %v7622_v23 = vld [vmem:[%s11013_s28 + $0x30] ss:$8 sps:$4 sm:$0xff]   ;;  %v7628_v24 = vld [vmem:[%s11013_s28 + $0x44] ss:$8 sps:$4 sm:$0xff]  }
  0x96   : > { %v645_v35 = vsel %vm643_vm0, %v641_v34, %v637_v32  ;;  %668 = vst.msk [vmem:[#allocation2 + $0x14] sm:$0xf] %vm577_vm8, %v641_v34  ;;  %v7631_v29 = vld [vmem:[%s11013_s28 + $0x54] ss:$8 sps:$4 sm:$0xff]   ;;  %v7629_v32 = vld [vmem:[%s11013_s28 + $0x50] ss:$8 sps:$4 sm:$0xff]  }
  0x97   : > { %667 = vst.msk [vmem:[#allocation2 + $0xc] sm:$0xff] %vm8605_vm10, %v645_v35  ;;  %v7634_v33 = vld [vmem:[%s11013_s28 + $0x64] ss:$8 sps:$4 sm:$0xff]   ;;  %v7632_v34 = vld [vmem:[%s11013_s28 + $0x60] ss:$8 sps:$4 sm:$0xff]  }
  0x98   : > { %v7637_v35 = vld [vmem:[%s11013_s28 + $0x74] ss:$8 sps:$4 sm:$0xff]  }
  0x9a   : > { %v680_v38 = vld [vmem:[#allocation2 + $0x8] sm:$0xf] }
  0x9b   : > { %v8620_v36 = vld [vmem:[#allocation2 + $0x20] ss:$0 sps:$4 sm:$0x11]   ;;  %v1359_v17 = vld [vmem:[#allocation2 + $0x8] sm:$0xe] }
  0x9c   : > { %v719_v37 = vld [vmem:[#allocation2 + $0x18] sm:$0x11]  ;;  %v812_v40 = vshll.u32 %v8620_v36, 16  ;;  %v1413_v26 = vrot.slane %v8620_v36, 1 }
  0x9d   : > { %v8622_v39 = vld [vmem:[#allocation2 + $0x14] sm:$0xf]  ;;  %v8625_v41 = vcombine.high %v719_v37, %v719_v37  ;;  %v8630_v45 = vcombine.low %v719_v37, %v719_v37  ;;  %v7635_v36 = vld [vmem:[%s11013_s28 + $0x70] ss:$8 sps:$4 sm:$0xff]   ;;  %v7640_v37 = vld [vmem:[%s11013_s28 + $0x84] ss:$8 sps:$4 sm:$0xff]  }
  0x9e   : > { %v6183_v43 = vcombine.low %v680_v38, %v8622_v39  ;;  %v8628_v44 = vld [vmem:[#allocation2 + $0xc] sm:$0xff]  ;;  %v814_v49 = vrot.slane %v812_v40, 1  ;;  %v6299_v22 = vcombine.low %v1359_v17, %v8622_v39  ;;  %v7638_v38 = vld [vmem:[%s11013_s28 + $0x80] ss:$8 sps:$4 sm:$0xff]   ;;  %v7643_v39 = vld [vmem:[%s11013_s28 + $0x94] ss:$8 sps:$4 sm:$0xff]  }
  0x9f   : > { %v6182_v46 = vcombine.high %v659_v28, %v8628_v44  ;;  %v8634_v47 = vcombine.low %v659_v28, %v8628_v44  ;;  %v800_v53 = vshll.u32 %v8625_v41, 16  ;;  %v788_v59 = vshll.u32 %v8630_v45, 16  ;;  %v7626_v28 = vld [vmem:[%s11013_s28 + $0x40] ss:$8 sps:$4 sm:$0xff]   ;;  %v7641_v40 = vld [vmem:[%s11013_s28 + $0x90] ss:$8 sps:$4 sm:$0xff]  }
  0xa0   : > { %v807_v48 = vshll.u32 %v6183_v43, 16  ;;  %v805_v54 = vshrl.u32 %v6183_v43, 16  ;;  %v1412_v25 = vrot.slane %v6299_v22, 1  ;;  %v7687_v17 = vld [vmem:[%s11013_s28 + $0x2c0] ss:$8 sps:$4 sm:$0xff]  }
  0xa1   : > { %v795_v51 = vshll.u32 %v6182_v46, 16  ;;  %v783_v57 = vshll.u32 %v8634_v47, 16  ;;  %v793_v60 = vshrl.u32 %v6182_v46, 16  ;;  %v781_v1 = vshrl.u32 %v8634_v47, 16  ;;  %v7693_v22 = vld [vmem:[%s11013_s28 + $0x2e0] ss:$8 sps:$4 sm:$0xff]  }
  0xa2   : > { %v809_v55 = vrot.slane %v807_v48, 1  ;;  %v802_v4 = vrot.slane %v800_v53, 1  ;;  %v790_v8 = vrot.slane %v788_v59, 1  ;;  %v1414_v31 = vsel %vm1405_vm15, %v1412_v25, %v1413_v26  ;;  %v7649_v48 = vld [vmem:[%s11013_s28 + $0xb4] ss:$8 sps:$4 sm:$0xff]  }
  0xa3   : > { %v797_v61 = vrot.slane %v795_v51, 1  ;;  %v785_v2 = vrot.slane %v783_v57, 1  ;;  %v7652_v51 = vld [vmem:[%s11013_s28 + $0xc4] ss:$8 sps:$4 sm:$0xff]   ;;  %v7650_v53 = vld [vmem:[%s11013_s28 + $0xc0] ss:$8 sps:$4 sm:$0xff]  }
  0xa4   : > { %v810_v63 = vor.u32 %v809_v55, %v805_v54  ;;  %v7655_v54 = vld [vmem:[%s11013_s28 + $0xd4] ss:$8 sps:$4 sm:$0xff]   ;;  %v7653_v55 = vld [vmem:[%s11013_s28 + $0xd0] ss:$8 sps:$4 sm:$0xff]   ;;  %v7656_v57 = vld [vmem:[%s11013_s28 + $0xe0] ss:$8 sps:$4 sm:$0xff]  }
  0xa5   : > { %v798_v3 = vor.u32 %v797_v61, %v793_v60  ;;  %v786_v7 = vor.u32 %v785_v2, %v781_v1  ;;  %v7661_v59 = vld [vmem:[%s11013_s28 + $0xf4] ss:$8 sps:$4 sm:$0xff]   ;;  %v8762_v60 = vld [vmem:[#allocation2] sm:$0xee]  ;;  %v1410_v1 = vrot.slane %v8625_v41, 1 }
  0xa6   : > { %v815_v6 = vsel %vm779_vm6, %v810_v63, %v814_v49  ;;  %v7647_v49 = vld [vmem:[%s11013_s28 + $0xb0] ss:$8 sps:$4 sm:$0xff]   ;;  %v6298_v61 = vcombine.high %v8762_v60, %v8628_v44  ;;  %v7664_v63 = vld [vmem:[%s11013_s28 + $0x244] ss:$8 sps:$4 sm:$0xff]   ;;  %v7662_v2 = vld [vmem:[%s11013_s28 + $0x240] ss:$8 sps:$4 sm:$0xff]  }
  0xa7   : > { %6223 = vmatmul.mubr.msk.bf16.vlgmr.msra.gmra.mrb[0].mxu1 %vm998_vm12, %v815_v6  ;;  %v803_v10 = vsel %vm779_vm6, %v798_v3, %v802_v4  ;;  %v791_v12 = vsel %vm779_vm6, %v786_v7, %v790_v8  ;;  %v7668_v3 = vld [vmem:[%s11013_s28 + $0x254] ss:$8 sps:$4 sm:$0xff]   ;;  %v7666_v41 = vld [vmem:[%s11013_s28 + $0x250] ss:$8 sps:$4 sm:$0xff]   ;;  %v7669_v6 = vld [vmem:[%s11013_s28 + $0x260] ss:$8 sps:$4 sm:$0xff]  }
  0xa8   : > { %1034 = vmatprep.mubr.bf16.mxu0 %v803_v10  ;;  %1316 = vmatpush1.bf16.msra.mxu1 %v7599_v56  ;;  %v7658_v56 = vld [vmem:[%s11013_s28 + $0xe4] ss:$8 sps:$4 sm:$0xff]   ;;  %v7672_v7 = vld [vmem:[%s11013_s28 + $0x270] ss:$8 sps:$4 sm:$0xff]   ;;  %v7680_v10 = vld [vmem:[%s11013_s28 + $0x294] ss:$8 sps:$4 sm:$0xff]  }
  0xa9   : > { %1035 = vmatmul.mubr.bf16.vlgmr.msra.gmra.mrb[0].mxu0 %v791_v12  ;;  %1317 = vmatprep.subr.bf16.mxu1 %v7609_v62  ;;  %v7659_v62 = vld [vmem:[%s11013_s28 + $0xf0] ss:$8 sps:$4 sm:$0xff]   ;;  %v7677_v8 = vld [vmem:[%s11013_s28 + $0x284] ss:$8 sps:$4 sm:$0xff]   ;;  %v7699_v26 = vld [vmem:[%s11013_s28 + $0x300] ss:$8 sps:$4 sm:$0xff]  }
  0xaa   : > { %1273 = vmatpush1.bf16.msra.mxu0 %v7603_v0  ;;  %1304 = vmatprep.mubr.bf16.mxu0 %v6182_v46  ;;  %v7644_v46 = vld [vmem:[%s11013_s28 + $0xa0] ss:$8 sps:$4 sm:$0xff]   ;;  %v1409_v0 = vrot.slane %v6298_v61, 1  ;;  %v7683_v12 = vld [vmem:[%s11013_s28 + $0x2a4] ss:$8 sps:$4 sm:$0xff]  }
  0xab   : > { %1274 = vmatprep.subr.bf16.mxu0 %v7612_v5  ;;  %1347 = vmatprep.mubr.bf16.mxu1 %v8293_v30  ;;  %v7671_v5 = vld [vmem:[%s11013_s28 + $0x264] ss:$8 sps:$4 sm:$0xff]  }
  0xac   : > { %1318 = vmatpush1.bf16.msra.mxu1 %v7607_v9  ;;  %v1411_v4 = vsel %vm1405_vm15, %v1409_v0, %v1410_v1  ;;  %v7675_v9 = vld [vmem:[%s11013_s28 + $0x280] ss:$8 sps:$4 sm:$0xff]   ;;  %v7701_v25 = vld [vmem:[%s11013_s28 + $0x304] ss:$8 sps:$4 sm:$0xff]  }
  0xad   : > { %1643 = vmatprep.subr.bf16.mxu1 %v7615_v11  ;;  %v7678_v11 = vld [vmem:[%s11013_s28 + $0x290] ss:$8 sps:$4 sm:$0xff]   ;;  %v7712_v1 = vld [vmem:[%s11033_s2 + $0x120] ss:$8 sps:$4 sm:$0xff]  }
  0xae   : > { %1275 = vmatpush1.bf16.msra.mxu0 %v7610_v13  ;;  %v7681_v13 = vld [vmem:[%s11013_s28 + $0x2a0] ss:$8 sps:$4 sm:$0xff]  }
  0xaf   : > { %6260 = vmatmul.mubr.msk.bf16.vlgmr.msra.gmra.mrb[4].mxu1 %vm998_vm12, %v6183_v43  ;;  %1276 = vmatprep.subr.bf16.mxu0 %v7618_v14  ;;  %v7646_v43 = vld [vmem:[%s11013_s28 + $0xa4] ss:$8 sps:$4 sm:$0xff]   ;;  %v7686_v14 = vld [vmem:[%s11013_s28 + $0x2b4] ss:$8 sps:$4 sm:$0xff]  }
  0xb0   : > { %1644 = vmatpush1.bf16.msra.mxu1 %v7613_v15  ;;  %1675 = vmatprep.mubr.bf16.mxu1 %v8293_v30  ;;  %v7684_v15 = vld [vmem:[%s11013_s28 + $0x2b0] ss:$8 sps:$4 sm:$0xff]  }
  0xb1   : > { %1645 = vmatprep.subr.bf16.mxu1 %v7621_v16  ;;  %v7689_v16 = vld [vmem:[%s11013_s28 + $0x2c4] ss:$8 sps:$4 sm:$0xff]  }
  0xb2   : > { %1277 = vmatpush1.bf16.msra.mxu0 %v7616_v18  ;;  %v7692_v18 = vld [vmem:[%s11013_s28 + $0x2d4] ss:$8 sps:$4 sm:$0xff]  }
  0xb3   : > { %1278 = vmatprep.subr.bf16.mxu0 %v7624_v19  ;;  %v7690_v19 = vld [vmem:[%s11013_s28 + $0x2d0] ss:$8 sps:$4 sm:$0xff]  }
  0xb4   : > { %1646 = vmatpush1.bf16.msra.mxu1 %v7619_v20  ;;  %v7695_v20 = vld [vmem:[%s11013_s28 + $0x2e4] ss:$8 sps:$4 sm:$0xff]  }
  0xb6   : > { %1279 = vmatpush1.bf16.msra.mxu0 %v7622_v23  ;;  %v7698_v23 = vld [vmem:[%s11013_s28 + $0x2f4] ss:$8 sps:$4 sm:$0xff]  }
  0xb7   : > { %6336 = vmatmul.mubr.msk.bf16.vlgmr.msra.gmra.mrb[8].mxu1 %vm998_vm12, %v1414_v31  ;;  %1280 = vmatprep.subr.bf16.mxu0 %v7628_v24  ;;  %v7696_v24 = vld [vmem:[%s11013_s28 + $0x2f0] ss:$8 sps:$4 sm:$0xff]   ;;  %v7707_v31 = vld [vmem:[%s11013_s28 + $0x324] ss:$8 sps:$4 sm:$0xff]  }
  0xba   : > { %1281 = vmatpush1.bf16.msra.mxu0 %v7626_v28  ;;  %v7704_v28 = vld [vmem:[%s11013_s28 + $0x314] ss:$8 sps:$4 sm:$0xff]  }
  0xbb   : > { %1282 = vmatprep.subr.bf16.mxu0 %v7631_v29  ;;  %v7702_v29 = vld [vmem:[%s11013_s28 + $0x310] ss:$8 sps:$4 sm:$0xff]  }
  0xbe   : > { %1283 = vmatpush1.bf16.msra.mxu0 %v7629_v32  ;;  %v7705_v32 = vld [vmem:[%s11013_s28 + $0x320] ss:$8 sps:$4 sm:$0xff]  }
  0xbf   : > { %1284 = vmatprep.subr.bf16.mxu0 %v7634_v33  ;;  %v7710_v33 = vld [vmem:[%s11013_s28 + $0x334] ss:$8 sps:$4 sm:$0xff]  }
  0xc2   : > { %1285 = vmatpush1.bf16.msra.mxu0 %v7632_v34  ;;  %v6297_v34 = vcombine.low %v8762_v60, %v8628_v44 }
  0xc3   : > { %1286 = vmatprep.subr.bf16.mxu0 %v7637_v35  ;;  %v7708_v35 = vld [vmem:[%s11013_s28 + $0x330] ss:$8 sps:$4 sm:$0xff]  }
  0xc6   : > { %1287 = vmatpush1.bf16.msra.mxu0 %v7635_v36  ;;  %v1406_v36 = vrot.slane %v6297_v34, 1  ;;  %v1691_v34 = vlaneseq }
  0xc7   : > { %1288 = vmatprep.subr.bf16.mxu0 %v7640_v37  ;;  %v1407_v37 = vrot.slane %v8630_v45, 1 }
  0xca   : > { %1289 = vmatpush1.bf16.msra.mxu0 %v7638_v38  ;;  %v1408_v38 = vsel %vm1405_vm15, %v1406_v36, %v1407_v37  ;;  %v678_v37 = vld [vmem:[%s11034_s5] sm:$0x3] }
  0xcb   : > { %1290 = vmatprep.subr.bf16.mxu0 %v7643_v39 }
  0xce   : > { %1291 = vmatpush1.bf16.msra.mxu0 %v7641_v40 }
  0xcf   : > { %1292 = vmatprep.subr.bf16.mxu0 %v7646_v43 }
  0xd2   : > { %1293 = vmatpush1.bf16.msra.mxu0 %v7644_v46 }
  0xd3   : > { %1294 = vmatprep.subr.bf16.mxu0 %v7649_v48 }
  0xd6   : > { %1295 = vmatpush1.bf16.msra.mxu0 %v7647_v49 }
  0xd7   : > { %1296 = vmatprep.subr.bf16.mxu0 %v7652_v51 }
  0xda   : > { %1297 = vmatpush1.bf16.msra.mxu0 %v7650_v53 }
  0xdb   : > { %1298 = vmatprep.subr.bf16.mxu0 %v7655_v54 }
  0xde   : > { %1299 = vmatpush1.bf16.msra.mxu0 %v7653_v55 }
  0xdf   : > { %1300 = vmatprep.subr.bf16.mxu0 %v7658_v56 }
  0xe2   : > { %1301 = vmatpush1.bf16.msra.mxu0 %v7656_v57 }
  0xe3   : > { %1302 = vmatprep.subr.bf16.mxu0 %v7661_v59 }
  0xe6   : > { %1303 = vmatpush1.bf16.msra.mxu0 %v7659_v62 }
  0xe7   : > { %1600 = vmatprep.subr.bf16.mxu0 %v7664_v63 }
  0xe9   : > { %1305 = vmatmul.mubr.bf16.vlgmr.msra.gmra.mrb[4].mxu0 %v8634_v47  ;;  %v7674_v47 = vld [vmem:[%s11013_s28 + $0x274] ss:$8 sps:$4 sm:$0xff]  }
  0xea   : > { %1601 = vmatpush1.bf16.msra.mxu0 %v7662_v2  ;;  %1632 = vmatprep.mubr.bf16.mxu0 %v1411_v4  ;;  %v7714_v2 = vld [vmem:[%s11033_s2 + $0x124] ss:$8 sps:$4 sm:$0xff]   ;;  %v7715_v4 = vld [vmem:[%s11033_s2 + $0x130] ss:$8 sps:$4 sm:$0xff]  }
  0xeb   : > { %1602 = vmatprep.subr.bf16.mxu0 %v7668_v3  ;;  %v7717_v3 = vld [vmem:[%s11033_s2 + $0x134] ss:$8 sps:$4 sm:$0xff]   ;;  %2157 = vmatprep.subr.bf16.mxu1 %v7714_v2 }
  0xec   : > { %2158 = vmatpush1.bf16.msra.mxu1 %v7712_v1 }
  0xed   : > { %2159 = vmatprep.subr.bf16.mxu1 %v7717_v3 }
  0xee   : > { %1603 = vmatpush1.bf16.msra.mxu0 %v7666_v41  ;;  %v7720_v41 = vld [vmem:[%s11033_s2 + $0x144] ss:$8 sps:$4 sm:$0xff]  }
  0xef   : > { %1604 = vmatprep.subr.bf16.mxu0 %v7671_v5  ;;  %v7718_v5 = vld [vmem:[%s11033_s2 + $0x140] ss:$8 sps:$4 sm:$0xff]  }
  0xf0   : > { %2160 = vmatpush1.bf16.msra.mxu1 %v7715_v4 }
  0xf1   : > { %2161 = vmatprep.subr.bf16.mxu1 %v7720_v41  ;;  %v7744_v41 = vld [vmem:[%s11033_s2 + $0x1c4] ss:$8 sps:$4 sm:$0xff]  }
  0xf2   : > { %1605 = vmatpush1.bf16.msra.mxu0 %v7669_v6  ;;  %v7723_v6 = vld [vmem:[%s11033_s2 + $0x154] ss:$8 sps:$4 sm:$0xff]  }
  0xf3   : > { %1606 = vmatprep.subr.bf16.mxu0 %v7674_v47  ;;  %v7721_v47 = vld [vmem:[%s11033_s2 + $0x150] ss:$8 sps:$4 sm:$0xff]  }
  0xf4   : > { %2162 = vmatpush1.bf16.msra.mxu1 %v7718_v5 }
  0xf5   : > { %2163 = vmatprep.subr.bf16.mxu1 %v7723_v6 }
  0xf6   : > { %1607 = vmatpush1.bf16.msra.mxu0 %v7672_v7  ;;  %v7726_v7 = vld [vmem:[%s11033_s2 + $0x164] ss:$8 sps:$4 sm:$0xff]  }
  0xf7   : > { %1608 = vmatprep.subr.bf16.mxu0 %v7677_v8  ;;  %v7724_v8 = vld [vmem:[%s11033_s2 + $0x160] ss:$8 sps:$4 sm:$0xff]  }
  0xf8   : > { %2164 = vmatpush1.bf16.msra.mxu1 %v7721_v47 }
  0xf9   : > { %2165 = vmatprep.subr.bf16.mxu1 %v7726_v7 }
  0xfa   : > { %1609 = vmatpush1.bf16.msra.mxu0 %v7675_v9  ;;  %v7729_v9 = vld [vmem:[%s11033_s2 + $0x174] ss:$8 sps:$4 sm:$0xff]  }
  0xfb   : > { %1610 = vmatprep.subr.bf16.mxu0 %v7680_v10  ;;  %v7727_v10 = vld [vmem:[%s11033_s2 + $0x170] ss:$8 sps:$4 sm:$0xff]  }
  0xfc   : > { %2166 = vmatpush1.bf16.msra.mxu1 %v7724_v8  ;;  %v7747_v8 = vld [vmem:[%s11033_s2 + $0x1d4] ss:$8 sps:$4 sm:$0xff]  }
  0xfd   : > { %2167 = vmatprep.subr.bf16.mxu1 %v7729_v9  ;;  %v7745_v9 = vld [vmem:[%s11033_s2 + $0x1d0] ss:$8 sps:$4 sm:$0xff]  }
  0xfe   : > { %1611 = vmatpush1.bf16.msra.mxu0 %v7678_v11  ;;  %v7732_v11 = vld [vmem:[%s11033_s2 + $0x184] ss:$8 sps:$4 sm:$0xff]  }
  0xff   : > { %1612 = vmatprep.subr.bf16.mxu0 %v7683_v12  ;;  %v7730_v12 = vld [vmem:[%s11033_s2 + $0x180] ss:$8 sps:$4 sm:$0xff]  }
 0x100   : > { %2168 = vmatpush1.bf16.msra.mxu1 %v7727_v10 }
 0x101   : > { %2169 = vmatprep.subr.bf16.mxu1 %v7732_v11 }
 0x102   : > { %1613 = vmatpush1.bf16.msra.mxu0 %v7681_v13  ;;  %v7735_v13 = vld [vmem:[%s11033_s2 + $0x194] ss:$8 sps:$4 sm:$0xff]  }
 0x103   : > { %1614 = vmatprep.subr.bf16.mxu0 %v7686_v14  ;;  %v7733_v14 = vld [vmem:[%s11033_s2 + $0x190] ss:$8 sps:$4 sm:$0xff]  }
 0x104   : > { %2170 = vmatpush1.bf16.msra.mxu1 %v7730_v12  ;;  %v7748_v12 = vld [vmem:[%s11033_s2 + $0x1e0] ss:$8 sps:$4 sm:$0xff]  }
 0x105   : > { %2171 = vmatprep.subr.bf16.mxu1 %v7735_v13  ;;  %v7750_v13 = vld [vmem:[%s11033_s2 + $0x1e4] ss:$8 sps:$4 sm:$0xff]  }
 0x106   : > { %1615 = vmatpush1.bf16.msra.mxu0 %v7684_v15  ;;  %v7738_v15 = vld [vmem:[%s11033_s2 + $0x1a4] ss:$8 sps:$4 sm:$0xff]  }
 0x107   : > { %1616 = vmatprep.subr.bf16.mxu0 %v7689_v16  ;;  %v7736_v16 = vld [vmem:[%s11033_s2 + $0x1a0] ss:$8 sps:$4 sm:$0xff]  }
 0x108   : > { %2172 = vmatpush1.bf16.msra.mxu1 %v7733_v14 }
 0x109   : > { %2173 = vmatprep.subr.bf16.mxu1 %v7738_v15 }
 0x10a   : > { %1617 = vmatpush1.bf16.msra.mxu0 %v7687_v17  ;;  %v7741_v17 = vld [vmem:[%s11033_s2 + $0x1b4] ss:$8 sps:$4 sm:$0xff]  }
 0x10b   : > { %1618 = vmatprep.subr.bf16.mxu0 %v7692_v18  ;;  %v7739_v18 = vld [vmem:[%s11033_s2 + $0x1b0] ss:$8 sps:$4 sm:$0xff]  }
 0x10c   : > { %2174 = vmatpush1.bf16.msra.mxu1 %v7736_v16 }
 0x10d   : > { %2175 = vmatprep.subr.bf16.mxu1 %v7741_v17  ;;  %v7753_v17 = vld [vmem:[%s11033_s2 + $0x1f4] ss:$8 sps:$4 sm:$0xff]  }
 0x10e   : > { %1619 = vmatpush1.bf16.msra.mxu0 %v7690_v19 }
 0x10f   : > { %1620 = vmatprep.subr.bf16.mxu0 %v7695_v20 }
 0x110   : > { %2176 = vmatpush1.bf16.msra.mxu1 %v7739_v18 }
 0x111   : > { %2177 = vmatprep.subr.bf16.mxu1 %v7744_v41 }
 0x112   : > { %1621 = vmatpush1.bf16.msra.mxu0 %v7693_v22 }
 0x113   : > { %1622 = vmatprep.subr.bf16.mxu0 %v7698_v23 }
 0x116   : > { %1623 = vmatpush1.bf16.msra.mxu0 %v7696_v24 }
 0x117   : > { %1624 = vmatprep.subr.bf16.mxu0 %v7701_v25 }
 0x11a   : > { %1625 = vmatpush1.bf16.msra.mxu0 %v7699_v26 }
 0x11b   : > { %1626 = vmatprep.subr.bf16.mxu0 %v7704_v28 }
 0x11e   : > { %1627 = vmatpush1.bf16.msra.mxu0 %v7702_v29 }
 0x11f   : > { %1628 = vmatprep.subr.bf16.mxu0 %v7707_v31 }
 0x122   : > { %1629 = vmatpush1.bf16.msra.mxu0 %v7705_v32 }
 0x123   : > { %1630 = vmatprep.subr.bf16.mxu0 %v7710_v33 }
 0x126   : > { %1631 = vmatpush1.bf16.msra.mxu0 %v7708_v35  ;;  %v1692_v35 = vshrl.u32 %v1691_v34, 7 }
 0x128   : > { %v8940_v36 = vsub.s32 0, %v1692_v35 }
 0x129   : > { %1633 = vmatmul.mubr.bf16.vlgmr.msra.gmra.mrb[8].mxu0 %v1408_v38  ;;  %v8945_v38 = vsub.s32 1, %v1692_v35 }
 0x17a   : > { %v1079_v39 = vpop.f32.mrb[0].mxu1 }
 0x17b   : > { %v1081_v40 = vpop.f32.mrb[1].mxu1 }
 0x17c   : > { %v1036_v43 = vpop.f32.mrb[0].mxu0  ;;  %v1083_v46 = vpop.f32.mrb[2].mxu1 }
 0x17d   : > { %v1080_v48 = vadd.f32 %v1079_v39, %v1036_v43  ;;  %v1038_v49 = vpop.f32.mrb[1].mxu0  ;;  %v1085_v44 = vpop.f32.mrb[3].mxu1  ;;  %v1694_v43 = vrot.slane %v678_v37, %v8940_v36 }
 0x17e   : > { %v1082_v51 = vadd.f32 %v1081_v40, %v1038_v49  ;;  %v1040_v53 = vpop.f32.mrb[2].mxu0  ;;  %v1698_v49 = vrot.slane %v678_v37, %v8945_v38  ;;  %v1824_v37 = vld [vmem:[#allocation2 + $0x8] sm:$0xf] }
 0x17f   : > { %v1084_v54 = vadd.f32 %v1083_v46, %v1040_v53  ;;  %v1042_v55 = vpop.f32.mrb[3].mxu0 }
 0x180   : > { %v1086_v56 = vadd.f32 %v1085_v44, %v1042_v55 }
 0x182   : > { %v1349_v57 = vpop.f32.mrb[4].mxu1 }
 0x183   : > { %v1351_v59 = vpop.f32.mrb[5].mxu1 }
 0x184   : > { %v1353_v60 = vpop.f32.mrb[6].mxu1 }
 0x185   : > { %v1355_v45 = vpop.f32.mrb[7].mxu1 }
 0x18a   : > { %v8872_v61 = vpop.f32.mrb[8].mxu1 }
 0x18b   : > { %v8874_v62 = vpop.f32.mrb[9].mxu1 }
 0x18c   : > { %v8876_v63 = vpop.f32.mrb[10].mxu1 }
 0x18d   : > { %v8878_v0 = vpop.f32.mrb[11].mxu1 }
 0x1bc   : > { %v1306_v19 = vpop.f32.mrb[4].mxu0 }
 0x1bd   : > { %v1307_v20 = vadd.f32 %v1306_v19, %v1080_v48  ;;  %v1308_v22 = vpop.f32.mrb[5].mxu0 }
 0x1be   : > { %v1309_v23 = vadd.f32 %v1308_v22, %v1082_v51  ;;  %v1310_v24 = vpop.f32.mrb[6].mxu0  ;;  %v7751_v22 = vld [vmem:[%s11033_s2 + $0x1f0] ss:$8 sps:$4 sm:$0xff]  }
 0x1bf   : > { %v1311_v25 = vadd.f32 %v1310_v24, %v1084_v54  ;;  %v1312_v26 = vpop.f32.mrb[7].mxu0  ;;  %v1350_v28 = vadd.f32 %v1349_v57, %v1307_v20 }
 0x1c0   : > { %v1313_v29 = vadd.f32 %v1312_v26, %v1086_v56  ;;  %v1352_v31 = vadd.f32 %v1351_v59, %v1309_v23 }
 0x1c1   : > { %v1354_v32 = vadd.f32 %v1353_v60, %v1311_v25  ;;  %v7756_v25 = vld [vmem:[%s11033_s2 + $0x204] ss:$8 sps:$4 sm:$0xff]  }
 0x1c2   : > { %v1356_v33 = vadd.f32 %v1355_v45, %v1313_v29  ;;  %v7754_v29 = vld [vmem:[%s11033_s2 + $0x200] ss:$8 sps:$4 sm:$0xff]  }
 0x1fc   : > { %v1634_v39 = vpop.f32.mrb[8].mxu0 }
 0x1fd   : > { %v7445_v40 = vadd.f32 %v1634_v39, %v1350_v28  ;;  %v1636_v46 = vpop.f32.mrb[9].mxu0 }
 0x1fe   : > { %v7450_v48 = vadd.f32 %v1636_v46, %v1352_v31  ;;  %v1638_v44 = vpop.f32.mrb[10].mxu0  ;;  %v7759_v31 = vld [vmem:[%s11033_s2 + $0x214] ss:$8 sps:$4 sm:$0xff]   ;;  %v8278_v46 = vld [vmem:[#allocation2] sm:$0xff] }
 0x1ff   : > { %v7446_v51 = vadd.f32 %v7445_v40, %v8872_v61  ;;  %v7455_v53 = vadd.f32 %v1638_v44, %v1354_v32  ;;  %v1640_v54 = vpop.f32.mrb[11].mxu0  ;;  %v7757_v32 = vld [vmem:[%s11033_s2 + $0x210] ss:$8 sps:$4 sm:$0xff]  }
 0x200   : > { %v7451_v55 = vadd.f32 %v7450_v48, %v8874_v62  ;;  %v7460_v56 = vadd.f32 %v1640_v54, %v1356_v33  ;;  %v7742_v62 = vld [vmem:[%s11033_s2 + $0x1c0] ss:$8 sps:$4 sm:$0xff]   ;;  %v7764_v33 = vld [vmem:[%s11033_s2 + $0x224] ss:$8 sps:$4 sm:$0xff]  }
 0x201   : > { %v1701_v57 = vadd.f32 %v7446_v51, %v1694_v43  ;;  %v7456_v59 = vadd.f32 %v7455_v53, %v8876_v63  ;;  %2178 = vmatpush1.bf16.msra.mxu1 %v7742_v62  ;;  %v1832_v54 = vld [vmem:[#allocation2 + $0x20] sm:$0x1] }
 0x202   : > { %v1702_v60 = vadd.f32 %v7451_v55, %v1698_v49  ;;  %v7461_v45 = vadd.f32 %v7460_v56, %v8878_v0  ;;  %2179 = vmatprep.subr.bf16.mxu1 %v7747_v8  ;;  %v1829_v55 = vld [vmem:[#allocation2 + $0x18] sm:$0x11] }
 0x203   : > { %v1705_v1 = vmul.f32 0.05, %v1701_v57  ;;  %v1703_v2 = vadd.f32 %v7456_v59, %v1694_v43 }
 0x204   : > { %v1706_v3 = vmul.f32 0.05, %v1702_v60  ;;  %v1704_v4 = vadd.f32 %v7461_v45, %v1698_v49 }
 0x205   : > { %v8956_v61 = vmax.f32 %v1701_v57, %v1705_v1  ;;  %v1707_v5 = vmul.f32 0.05, %v1703_v2  ;;  %2180 = vmatpush1.bf16.msra.mxu1 %v7745_v9 }
 0x206   : > { %v8961_v6 = vmax.f32 %v1702_v60, %v1706_v3  ;;  %v1708_v63 = vmul.f32 0.05, %v1704_v4  ;;  %2181 = vmatprep.subr.bf16.mxu1 %v7750_v13 }
 0x207   : > { %v8963_v0 = vmax.f32 %v1703_v2, %v1707_v5 }
 0x208   : > { %v8965_v47 = vmax.f32 %v1704_v4, %v1708_v63  ;;  %v7091_v7 = vpack.c.bf16 %v8961_v6, %v8956_v61 }
 0x209   : > { %2182 = vmatpush1.bf16.msra.mxu1 %v7748_v12 }
 0x20a   : > { %v7092_v10 = vpack.c.bf16 %v8965_v47, %v8963_v0  ;;  %v1788_v11 = vshrl.u32 %v7091_v7, 16  ;;  %v1791_v15 = vshll.u32 %v7091_v7, 16  ;;  %2183 = vmatprep.subr.bf16.mxu1 %v7753_v17 }
 0x20c   : > { %v1790_v14 = vrot.slane %v1788_v11, 7  ;;  %v1796_v16 = vshrl.u32 %v7092_v10, 16  ;;  %v1799_v20 = vshll.u32 %v7092_v10, 16 }
 0x20d   : > { %2184 = vmatpush1.bf16.msra.mxu1 %v7751_v22 }
 0x20e   : > { %v1793_v18 = vor.u32 %v1791_v15, %v1790_v14  ;;  %v1798_v19 = vrot.slane %v1796_v16, 7  ;;  %v1794_v23 = vrot.slane %v1790_v14, 4  ;;  %2185 = vmatprep.subr.bf16.mxu1 %v7756_v25  ;;  %v7765_v25 = vld [vmem:[%s11033_s2 + $0x230] ss:$8 sps:$4 sm:$0xff]  }
 0x210   : > { %1804 = vrot.lane.b32.xlu1 %v1793_v18, %s11007_s27  ;;  %v1801_v24 = vor.u32 %v1799_v20, %v1798_v19  ;;  %v1803_v28 = vrot.slane %v1798_v19, 4  ;;  %v7762_v18 = vld [vmem:[%s11033_s2 + $0x220] ss:$8 sps:$4 sm:$0xff]   ;;  %v7767_v20 = vld [vmem:[%s11033_s2 + $0x234] ss:$8 sps:$4 sm:$0xff]  }
 0x211   : > { %2186 = vmatpush1.bf16.msra.mxu1 %v7754_v29 }
 0x212   : > { %v1802_v26 = vsel %vm8431_vm4, %v1794_v23, %v1801_v24  ;;  %2187 = vmatprep.subr.bf16.mxu1 %v7759_v31 }
 0x213   : > { %1806 = vrot.lane.b32.xlu0 %v1802_v26, %s11007_s27  ;;  %v7770_v26 = vld [vmem:[%s11033_s2 + $0x4] ss:$8 sps:$4 sm:$0xff]  }
 0x214   : > { %1808 = vrot.lane.b32.xlu1 %v1803_v28, %s11007_s27 }
 0x215   : > { %2188 = vmatpush1.bf16.msra.mxu1 %v7757_v32 }
 0x216   : > { %2200 = vmatprep.subr.bf16.mxu1 %v7764_v33 }
 0x282   : > { %v1805_v34 = vpop.permute.xlu1 %1804 }
 0x283   : > { %v1810_v35 = vrot.slane %v1805_v34, 4 }
 0x285   : > { %v1813_v39 = vsel %vm643_vm0, %v1810_v35, %v1805_v34  ;;  %v1825_v40 = vsel %vm8488_vm3, %v1810_v35, %v1824_v37  ;;  %v1807_v43 = vpop.permute.xlu0 %1806  ;;  %v7768_v34 = vld [vmem:[%s11033_s2] ss:$8 sps:$4 sm:$0xff]   ;;  %v7775_v35 = vld [vmem:[%s11033_s2 + $0x14] ss:$8 sps:$4 sm:$0xff]  }
 0x286   : > { %v1822_v48 = vsel %vm8513_vm11, %v1813_v39, %v8278_v46  ;;  %1826 = vst [vmem:[#allocation2 + $0x8] sm:$0xf] %v1825_v40  ;;  %v1811_v49 = vrot.slane %v1807_v43, 4  ;;  %v1809_v44 = vpop.permute.xlu1 %1808  ;;  %v7773_v39 = vld [vmem:[%s11033_s2 + $0x10] ss:$8 sps:$4 sm:$0xff]  }
 0x287   : > { %1823 = vst [vmem:[#allocation2] sm:$0xff] %v1822_v48  ;;  %v1812_v51 = vrot.slane %v1809_v44, 4  ;;  %v7778_v40 = vld [vmem:[%s11033_s2 + $0x24] ss:$8 sps:$4 sm:$0xff]   ;;  %v7781_v46 = vld [vmem:[%s11033_s2 + $0x34] ss:$8 sps:$4 sm:$0xff]  }
 0x288   : > { %v1814_v53 = vsel %vm643_vm0, %v1811_v49, %v1807_v43  ;;  %1828 = vst.msk [vmem:[#allocation2 + $0x14] sm:$0xf] %vm577_vm8, %v1811_v49  ;;  %v7776_v43 = vld [vmem:[%s11033_s2 + $0x20] ss:$8 sps:$4 sm:$0xff]   ;;  %v7784_v49 = vld [vmem:[%s11033_s2 + $0x44] ss:$8 sps:$4 sm:$0xff]  }
 0x289   : > { %1827 = vst.msk [vmem:[#allocation2 + $0xc] sm:$0xff] %vm8605_vm10, %v1814_v53  ;;  %v1815_v56 = vsel %vm643_vm0, %v1812_v51, %v1809_v44  ;;  %v1833_v57 = vsel %vm8520_vm13, %v1812_v51, %v1832_v54  ;;  %v7782_v44 = vld [vmem:[%s11033_s2 + $0x40] ss:$8 sps:$4 sm:$0xff]   ;;  %v7787_v51 = vld [vmem:[%s11033_s2 + $0x54] ss:$8 sps:$4 sm:$0xff]  }
 0x28a   : > { %v1830_v59 = vsel %vm8536_vm7, %v1815_v56, %v1829_v55  ;;  %1834 = vst [vmem:[#allocation2 + $0x20] sm:$0x1] %v1833_v57  ;;  %v7785_v53 = vld [vmem:[%s11033_s2 + $0x50] ss:$8 sps:$4 sm:$0xff]   ;;  %v7790_v54 = vld [vmem:[%s11033_s2 + $0x64] ss:$8 sps:$4 sm:$0xff]  }
 0x28b   : > { %1831 = vst [vmem:[#allocation2 + $0x18] sm:$0x11] %v1830_v59  ;;  %v7788_v55 = vld [vmem:[%s11033_s2 + $0x60] ss:$8 sps:$4 sm:$0xff]   ;;  %v7793_v56 = vld [vmem:[%s11033_s2 + $0x74] ss:$8 sps:$4 sm:$0xff]  }
 0x28c   : > { %v7791_v57 = vld [vmem:[%s11033_s2 + $0x70] ss:$8 sps:$4 sm:$0xff]   ;;  %v7796_v59 = vld [vmem:[%s11033_s2 + $0x84] ss:$8 sps:$4 sm:$0xff]  }
 0x28d   : > { %v1837_v10 = vld [vmem:[#allocation2 + $0x8] sm:$0xf] }
 0x28f   : > { %v9033_v5 = vld [vmem:[#allocation2 + $0x14] sm:$0xf] }
 0x290   : > { %v9023_v60 = vld [vmem:[#allocation2 + $0xc] sm:$0xff]  ;;  %v9040_v13 = vcombine.low %v1837_v10, %v9033_v5 }
 0x291   : > { %v6376_v45 = vcombine.high %v1822_v48, %v9023_v60  ;;  %v9027_v1 = vcombine.low %v1822_v48, %v9023_v60  ;;  %v9050_v23 = vld [vmem:[#allocation2 + $0x20] ss:$0 sps:$4 sm:$0x11]   ;;  %v7779_v48 = vld [vmem:[%s11033_s2 + $0x30] ss:$8 sps:$4 sm:$0xff]  }
 0x292   : > { %v1876_v2 = vld [vmem:[#allocation2 + $0x18] sm:$0x11]  ;;  %v1963_v24 = vshll.u32 %v9040_v13, 16  ;;  %v1968_v29 = vshll.u32 %v9050_v23, 16  ;;  %v1961_v31 = vshrl.u32 %v9040_v13, 16 }
 0x293   : > { %v9029_v3 = vcombine.high %v1876_v2, %v1876_v2  ;;  %v1951_v4 = vshll.u32 %v6376_v45, 16  ;;  %v9031_v41 = vcombine.low %v1876_v2, %v1876_v2  ;;  %v1939_v62 = vshll.u32 %v9027_v1, 16  ;;  %v6534_v2 = vld [vmem:[%s10996_s9 + $0x218] sm:$0xff] }
 0x294   : > { %v1949_v63 = vshrl.u32 %v6376_v45, 16  ;;  %v1937_v11 = vshrl.u32 %v9027_v1, 16  ;;  %v1965_v28 = vrot.slane %v1963_v24, 1  ;;  %v1970_v33 = vrot.slane %v1968_v29, 1  ;;  %v6544_v24 = vld [vmem:[%s10996_s9 + $0x268] sm:$0xff] }
 0x295   : > { %v1953_v7 = vrot.slane %v1951_v4, 1  ;;  %v1956_v8 = vshll.u32 %v9029_v3, 16  ;;  %v1944_v9 = vshll.u32 %v9031_v41, 16  ;;  %v1941_v12 = vrot.slane %v1939_v62, 1  ;;  %v6531_v4 = vld [vmem:[%s10996_s9 + $0x200] sm:$0xff] }
 0x296   : > { %v1966_v32 = vor.u32 %v1965_v28, %v1961_v31  ;;  %v7797_v28 = vld [vmem:[%s11033_s2 + $0x90] ss:$8 sps:$4 sm:$0xff]   ;;  %v6543_v31 = vld [vmem:[%s10996_s9 + $0x260] sm:$0xff] }
 0x297   : > { %v1954_v14 = vor.u32 %v1953_v7, %v1949_v63  ;;  %v1958_v15 = vrot.slane %v1956_v8, 1  ;;  %v1946_v16 = vrot.slane %v1944_v9, 1  ;;  %v1942_v17 = vor.u32 %v1941_v12, %v1937_v11  ;;  %v6533_v63 = vld [vmem:[%s10996_s9 + $0x210] sm:$0xff]  ;;  %v6536_v7 = vld [vmem:[%s10996_s9 + $0x228] sm:$0xff]  ;;  %v6538_v8 = vld [vmem:[%s10996_s9 + $0x238] sm:$0xff] }
 0x298   : > { %v1971_v37 = vsel %vm779_vm6, %v1966_v32, %v1970_v33  ;;  %v7185_v9 = vpack.c.bf16 %v6533_v63, %v6531_v4  ;;  %v7187_v10 = vpack.c.bf16 %v6538_v8, %v6536_v7  ;;  %v6535_v11 = vld [vmem:[%s10996_s9 + $0x220] sm:$0xff]  ;;  %v6537_v12 = vld [vmem:[%s10996_s9 + $0x230] sm:$0xff] }
 0x299   : > { %v1959_v19 = vsel %vm779_vm6, %v1954_v14, %v1958_v15  ;;  %v1947_v22 = vsel %vm779_vm6, %v1942_v17, %v1946_v16  ;;  %v6540_v14 = vld [vmem:[%s10996_s9 + $0x248] sm:$0xff]  ;;  %v6542_v15 = vld [vmem:[%s10996_s9 + $0x258] sm:$0xff]  ;;  %v7189_v16 = vpack.c.bf16 %v6537_v12, %v6535_v11  ;;  %v6545_v32 = vld [vmem:[%s10996_s9 + $0x270] sm:$0xff] }
 0x29a   : > { %2189 = vmatprep.mubr.bf16.mxu1 %v1959_v19  ;;  %v7794_v17 = vld [vmem:[%s11033_s2 + $0x80] ss:$8 sps:$4 sm:$0xff]   ;;  %v7802_v33 = vld [vmem:[%s11033_s2 + $0xa4] ss:$8 sps:$4 sm:$0xff]   ;;  %v6557_v7 = vld [vmem:[%s10996_s9 + $0x2d0] sm:$0xff] }
 0x29b   : > { %2190 = vmatmul.mubr.bf16.vlgmr.msra.gmra.mrb[12].mxu1 %v1947_v22  ;;  %v6539_v19 = vld [vmem:[%s10996_s9 + $0x240] sm:$0xff]  ;;  %v7799_v22 = vld [vmem:[%s11033_s2 + $0x94] ss:$8 sps:$4 sm:$0xff]   ;;  %v7809_v12 = vld [vmem:[%s11033_s2 + $0xd0] ss:$8 sps:$4 sm:$0xff]  }
 0x29c   : > { %2201 = vmatpush1.bf16.msra.mxu1 %v7762_v18  ;;  %2232 = vmatprep.mubr.bf16.mxu1 %v8293_v30  ;;  %v7191_v18 = vpack.c.bf16 %v6542_v15, %v6540_v14  ;;  %v7806_v4 = vld [vmem:[%s11033_s2 + $0xc0] ss:$8 sps:$4 sm:$0xff]   ;;  %v7811_v8 = vld [vmem:[%s11033_s2 + $0xd4] ss:$8 sps:$4 sm:$0xff]  }
 0x29d   : > { %2202 = vmatprep.subr.bf16.mxu1 %v7767_v20  ;;  %v6541_v20 = vld [vmem:[%s10996_s9 + $0x250] sm:$0xff]  ;;  %v6555_v63 = vld [vmem:[%s10996_s9 + $0x2c0] sm:$0xff] }
 0x29e   : > { %v7209_v11 = vpack.c.bf16 %v6557_v7, %v6555_v63  ;;  %v6559_v15 = vld [vmem:[%s10996_s9 + $0x2e0] sm:$0xff] }
 0x29f   : > { %v9324_v7 = vld [vmem:[#allocation2] sm:$0xee] }
 0x2a0   : > { %2203 = vmatpush1.bf16.msra.mxu1 %v7765_v25  ;;  %v6546_v25 = vld [vmem:[%s10996_s9 + $0x278] sm:$0xff] }
 0x2a1   : > { %2427 = vmatprep.subr.bf16.mxu1 %v7770_v26  ;;  %v7193_v26 = vpack.c.bf16 %v6541_v20, %v6539_v19  ;;  %v7195_v29 = vpack.c.bf16 %v6546_v25, %v6544_v24  ;;  %v6566_v19 = vld [vmem:[%s10996_s9 + $0x318] sm:$0xff]  ;;  %v6563_v25 = vld [vmem:[%s10996_s9 + $0x300] sm:$0xff] }
 0x2a7   : > { %6417 = vmatmul.mubr.msk.bf16.vlgmr.msra.gmra.mrb[12].mxu1 %vm998_vm12, %v1971_v37  ;;  %v7197_v37 = vpack.c.bf16 %v6545_v32, %v6543_v31  ;;  %v6570_v31 = vld [vmem:[%s10996_s9 + $0x338] sm:$0xff] }
 0x2a8   : > { %2428 = vmatpush1.bf16.msra.mxu1 %v7768_v34  ;;  %2459 = vmatprep.mubr.bf16.mxu1 %v6376_v45  ;;  %v6532_v45 = vld [vmem:[%s10996_s9 + $0x208] sm:$0xff] }
 0x2a9   : > { %2429 = vmatprep.subr.bf16.mxu1 %v7775_v35  ;;  %v7183_v62 = vpack.c.bf16 %v6534_v2, %v6532_v45  ;;  %v6548_v34 = vld [vmem:[%s10996_s9 + $0x288] sm:$0xff]  ;;  %v6550_v35 = vld [vmem:[%s10996_s9 + $0x298] sm:$0xff] }
 0x2aa   : > { %v6558_v45 = vld [vmem:[%s10996_s9 + $0x2d8] sm:$0xff] }
 0x2ab   : > { %7184 = vmatprep.subr.bf16.mxu0 %v7183_v62 }
 0x2ac   : > { %2430 = vmatpush1.bf16.msra.mxu1 %v7773_v39  ;;  %7186 = vmatpush1.bf16.msra.mxu0 %v7185_v9  ;;  %v7800_v39 = vld [vmem:[%s11033_s2 + $0xa0] ss:$8 sps:$4 sm:$0xff]  }
 0x2ad   : > { %2431 = vmatprep.subr.bf16.mxu1 %v7778_v40  ;;  %7188 = vmatprep.subr.bf16.mxu0 %v7187_v10  ;;  %v7199_v40 = vpack.c.bf16 %v6550_v35, %v6548_v34  ;;  %v6560_v9 = vld [vmem:[%s10996_s9 + $0x2e8] sm:$0xff]  ;;  %v6562_v10 = vld [vmem:[%s10996_s9 + $0x2f8] sm:$0xff]  ;;  %v6567_v35 = vld [vmem:[%s10996_s9 + $0x320] sm:$0xff] }
 0x2ae   : > { %v7211_v14 = vpack.c.bf16 %v6562_v10, %v6560_v9  ;;  %v6579_v9 = vld [vmem:[%s10996_s9 + $0x380] sm:$0xff]  ;;  %v6581_v10 = vld [vmem:[%s10996_s9 + $0x390] sm:$0xff] }
 0x2b0   : > { %2432 = vmatpush1.bf16.msra.mxu1 %v7776_v43  ;;  %7190 = vmatpush1.bf16.msra.mxu0 %v7189_v16  ;;  %v6547_v43 = vld [vmem:[%s10996_s9 + $0x280] sm:$0xff]  ;;  %v6561_v16 = vld [vmem:[%s10996_s9 + $0x2f0] sm:$0xff] }
 0x2b1   : > { %2433 = vmatprep.subr.bf16.mxu1 %v7781_v46  ;;  %7192 = vmatprep.subr.bf16.mxu0 %v7191_v18  ;;  %v6549_v46 = vld [vmem:[%s10996_s9 + $0x290] sm:$0xff]  ;;  %v6564_v18 = vld [vmem:[%s10996_s9 + $0x308] sm:$0xff]  ;;  %v7213_v20 = vpack.c.bf16 %v6561_v16, %v6559_v15  ;;  %v2564_v15 = vrot.slane %v9029_v3, 1  ;;  %v7233_v16 = vpack.c.bf16 %v6581_v10, %v6579_v9  ;;  %v2561_v9 = vrot.slane %v9031_v41, 1 }
 0x2b2   : > { %v7215_v24 = vpack.c.bf16 %v6566_v19, %v6564_v18  ;;  %v6583_v18 = vld [vmem:[%s10996_s9 + $0x3a0] sm:$0xff]  ;;  %v6585_v19 = vld [vmem:[%s10996_s9 + $0x3b0] sm:$0xff]  ;;  %v2514_v41 = vld [vmem:[#allocation2 + $0x8] sm:$0xe] }
 0x2b3   : > { %v7830_v3 = vld [vmem:[%s11033_s2 + $0x254] ss:$8 sps:$4 sm:$0xff]  }
 0x2b4   : > { %2434 = vmatpush1.bf16.msra.mxu1 %v7779_v48  ;;  %7194 = vmatpush1.bf16.msra.mxu0 %v7193_v26  ;;  %v7805_v48 = vld [vmem:[%s11033_s2 + $0xb4] ss:$8 sps:$4 sm:$0xff]  }
 0x2b5   : > { %2435 = vmatprep.subr.bf16.mxu1 %v7784_v49  ;;  %7196 = vmatprep.subr.bf16.mxu0 %v7195_v29  ;;  %v6552_v49 = vld [vmem:[%s10996_s9 + $0x2a8] sm:$0xff]  ;;  %v6565_v26 = vld [vmem:[%s10996_s9 + $0x310] sm:$0xff] }
 0x2b6   : > { %v6568_v29 = vld [vmem:[%s10996_s9 + $0x328] sm:$0xff]  ;;  %v7217_v32 = vpack.c.bf16 %v6565_v26, %v6563_v25  ;;  %v7237_v25 = vpack.c.bf16 %v6585_v19, %v6583_v18  ;;  %v7828_v26 = vld [vmem:[%s11033_s2 + $0x250] ss:$8 sps:$4 sm:$0xff]  }
 0x2b7   : > { %v7219_v34 = vpack.c.bf16 %v6570_v31, %v6568_v29  ;;  %v7836_v29 = vld [vmem:[%s11033_s2 + $0x274] ss:$8 sps:$4 sm:$0xff]   ;;  %v7834_v31 = vld [vmem:[%s11033_s2 + $0x270] ss:$8 sps:$4 sm:$0xff]   ;;  %v6588_v18 = vld [vmem:[%s10996_s9 + $0x3c8] sm:$0xff] }
 0x2b8   : > { %2436 = vmatpush1.bf16.msra.mxu1 %v7782_v44  ;;  %v6554_v44 = vld [vmem:[%s10996_s9 + $0x2b8] sm:$0xff]  ;;  %7198 = vmatpush1.bf16.msra.mxu0 %v7197_v37  ;;  %v6569_v37 = vld [vmem:[%s10996_s9 + $0x330] sm:$0xff] }
 0x2b9   : > { %2437 = vmatprep.subr.bf16.mxu1 %v7787_v51  ;;  %v7201_v51 = vpack.c.bf16 %v6549_v46, %v6547_v43  ;;  %7200 = vmatprep.subr.bf16.mxu0 %v7199_v40  ;;  %v6572_v40 = vld [vmem:[%s10996_s9 + $0x348] sm:$0xff]  ;;  %v6574_v43 = vld [vmem:[%s10996_s9 + $0x358] sm:$0xff]  ;;  %v7221_v46 = vpack.c.bf16 %v6569_v37, %v6567_v35 }
 0x2ba   : > { %v7840_v35 = vld [vmem:[%s11033_s2 + $0x290] ss:$8 sps:$4 sm:$0xff]   ;;  %v7845_v37 = vld [vmem:[%s11033_s2 + $0x2a4] ss:$8 sps:$4 sm:$0xff]  }
 0x2bb   : > { %v6590_v19 = vld [vmem:[%s10996_s9 + $0x3d8] sm:$0xff] }
 0x2bc   : > { %2438 = vmatpush1.bf16.msra.mxu1 %v7785_v53  ;;  %v7803_v53 = vld [vmem:[%s11033_s2 + $0xb0] ss:$8 sps:$4 sm:$0xff]   ;;  %7202 = vmatpush1.bf16.msra.mxu0 %v7201_v51  ;;  %v7823_v51 = vld [vmem:[%s11033_s2 + $0x114] ss:$8 sps:$4 sm:$0xff]  }
 0x2bd   : > { %2439 = vmatprep.subr.bf16.mxu1 %v7790_v54  ;;  %v7203_v54 = vpack.c.bf16 %v6554_v44, %v6552_v49  ;;  %v6571_v49 = vld [vmem:[%s10996_s9 + $0x340] sm:$0xff]  ;;  %v6573_v44 = vld [vmem:[%s10996_s9 + $0x350] sm:$0xff] }
 0x2bf   : > { %7204 = vmatprep.subr.bf16.mxu0 %v7203_v54  ;;  %v6576_v54 = vld [vmem:[%s10996_s9 + $0x368] sm:$0xff] }
 0x2c0   : > { %2440 = vmatpush1.bf16.msra.mxu1 %v7788_v55  ;;  %v6551_v55 = vld [vmem:[%s10996_s9 + $0x2a0] sm:$0xff] }
 0x2c1   : > { %2441 = vmatprep.subr.bf16.mxu1 %v7793_v56  ;;  %v6553_v56 = vld [vmem:[%s10996_s9 + $0x2b0] sm:$0xff] }
 0x2c2   : > { %v7205_v2 = vpack.c.bf16 %v6553_v56, %v6551_v55  ;;  %v6578_v55 = vld [vmem:[%s10996_s9 + $0x378] sm:$0xff]  ;;  %v7225_v56 = vpack.c.bf16 %v6573_v44, %v6571_v49 }
 0x2c3   : > { %v7854_v49 = vld [vmem:[%s11033_s2 + $0x2d4] ss:$8 sps:$4 sm:$0xff]   ;;  %v7852_v44 = vld [vmem:[%s11033_s2 + $0x2d0] ss:$8 sps:$4 sm:$0xff]  }
 0x2c4   : > { %2442 = vmatpush1.bf16.msra.mxu1 %v7791_v57  ;;  %v7808_v57 = vld [vmem:[%s11033_s2 + $0xc4] ss:$8 sps:$4 sm:$0xff]   ;;  %7206 = vmatpush1.bf16.msra.mxu0 %v7205_v2  ;;  %v6577_v2 = vld [vmem:[%s10996_s9 + $0x370] sm:$0xff] }
 0x2c5   : > { %2443 = vmatprep.subr.bf16.mxu1 %v7796_v59  ;;  %v6556_v59 = vld [vmem:[%s10996_s9 + $0x2c8] sm:$0xff] }
 0x2c6   : > { %v7207_v62 = vpack.c.bf16 %v6558_v45, %v6556_v59  ;;  %v7227_v59 = vpack.c.bf16 %v6578_v55, %v6576_v54  ;;  %v6575_v45 = vld [vmem:[%s10996_s9 + $0x360] sm:$0xff]  ;;  %v7860_v54 = vld [vmem:[%s11033_s2 + $0x2f4] ss:$8 sps:$4 sm:$0xff]   ;;  %v7858_v55 = vld [vmem:[%s11033_s2 + $0x2f0] ss:$8 sps:$4 sm:$0xff]  }
 0x2c7   : > { %v7229_v63 = vpack.c.bf16 %v6577_v2, %v6575_v45  ;;  %v7864_v45 = vld [vmem:[%s11033_s2 + $0x310] ss:$8 sps:$4 sm:$0xff]   ;;  %v7869_v2 = vld [vmem:[%s11033_s2 + $0x324] ss:$8 sps:$4 sm:$0xff]  }
 0x2c8   : > { %2444 = vmatpush1.bf16.msra.mxu1 %v7794_v17  ;;  %7208 = vmatprep.subr.bf16.mxu0 %v7207_v62  ;;  %v7814_v17 = vld [vmem:[%s11033_s2 + $0xe4] ss:$8 sps:$4 sm:$0xff]   ;;  %v6582_v62 = vld [vmem:[%s10996_s9 + $0x398] sm:$0xff] }
 0x2c9   : > { %2445 = vmatprep.subr.bf16.mxu1 %v7799_v22  ;;  %7210 = vmatpush1.bf16.msra.mxu0 %v7209_v11  ;;  %v7812_v22 = vld [vmem:[%s11033_s2 + $0xe0] ss:$8 sps:$4 sm:$0xff]   ;;  %v6492_v11 = vcombine.high %v9324_v7, %v9023_v60 }
 0x2ca   : > { %7212 = vmatprep.subr.bf16.mxu0 %v7211_v14  ;;  %v6586_v14 = vld [vmem:[%s10996_s9 + $0x3b8] sm:$0xff] }
 0x2cc   : > { %2446 = vmatpush1.bf16.msra.mxu1 %v7797_v28  ;;  %v7817_v28 = vld [vmem:[%s11033_s2 + $0xf4] ss:$8 sps:$4 sm:$0xff]  }
 0x2cd   : > { %2447 = vmatprep.subr.bf16.mxu1 %v7802_v33  ;;  %7214 = vmatpush1.bf16.msra.mxu0 %v7213_v20  ;;  %v7815_v33 = vld [vmem:[%s11033_s2 + $0xf0] ss:$8 sps:$4 sm:$0xff]   ;;  %v2563_v20 = vrot.slane %v6492_v11, 1  ;;  %v7874_v11 = vld [vmem:[%s11033_s2 + $0x340] ss:$8 sps:$4 sm:$0xff]  }
 0x2ce   : > { %7216 = vmatprep.subr.bf16.mxu0 %v7215_v24 }
 0x2cf   : > { %v2565_v24 = vsel %vm1405_vm15, %v2563_v20, %v2564_v15  ;;  %v7239_v20 = vpack.c.bf16 %v6590_v19, %v6588_v18  ;;  %v1720_v18 = vld [vmem:[%s10996_s9 + $0x38] sm:$0xff] }
 0x2d0   : > { %2448 = vmatpush1.bf16.msra.mxu1 %v7800_v39  ;;  %v7820_v39 = vld [vmem:[%s11033_s2 + $0x104] ss:$8 sps:$4 sm:$0xff]  }
 0x2d1   : > { %2449 = vmatprep.subr.bf16.mxu1 %v7805_v48  ;;  %7218 = vmatpush1.bf16.msra.mxu0 %v7217_v32  ;;  %v7818_v48 = vld [vmem:[%s11033_s2 + $0x100] ss:$8 sps:$4 sm:$0xff]   ;;  %v7839_v32 = vld [vmem:[%s11033_s2 + $0x284] ss:$8 sps:$4 sm:$0xff]  }
 0x2d2   : > { %7220 = vmatprep.subr.bf16.mxu0 %v7219_v34  ;;  %v7842_v34 = vld [vmem:[%s11033_s2 + $0x294] ss:$8 sps:$4 sm:$0xff]  }
 0x2d4   : > { %2450 = vmatpush1.bf16.msra.mxu1 %v7803_v53  ;;  %v7223_v53 = vpack.c.bf16 %v6574_v43, %v6572_v40  ;;  %v7848_v40 = vld [vmem:[%s11033_s2 + $0x2b4] ss:$8 sps:$4 sm:$0xff]   ;;  %v7846_v43 = vld [vmem:[%s11033_s2 + $0x2b0] ss:$8 sps:$4 sm:$0xff]  }
 0x2d5   : > { %2451 = vmatprep.subr.bf16.mxu1 %v7808_v57  ;;  %7222 = vmatpush1.bf16.msra.mxu0 %v7221_v46  ;;  %v7821_v57 = vld [vmem:[%s11033_s2 + $0x110] ss:$8 sps:$4 sm:$0xff]   ;;  %v7851_v46 = vld [vmem:[%s11033_s2 + $0x2c4] ss:$8 sps:$4 sm:$0xff]  }
 0x2d6   : > { %7224 = vmatprep.subr.bf16.mxu0 %v7223_v53  ;;  %v7855_v53 = vld [vmem:[%s11033_s2 + $0x2e0] ss:$8 sps:$4 sm:$0xff]  }
 0x2d8   : > { %2452 = vmatpush1.bf16.msra.mxu1 %v7806_v4  ;;  %v6580_v4 = vld [vmem:[%s10996_s9 + $0x388] sm:$0xff] }
 0x2d9   : > { %2453 = vmatprep.subr.bf16.mxu1 %v7811_v8  ;;  %7226 = vmatpush1.bf16.msra.mxu0 %v7225_v56  ;;  %v7231_v8 = vpack.c.bf16 %v6582_v62, %v6580_v4  ;;  %v7863_v56 = vld [vmem:[%s11033_s2 + $0x304] ss:$8 sps:$4 sm:$0xff]   ;;  %v7872_v4 = vld [vmem:[%s11033_s2 + $0x334] ss:$8 sps:$4 sm:$0xff]   ;;  %v7870_v62 = vld [vmem:[%s11033_s2 + $0x330] ss:$8 sps:$4 sm:$0xff]  }
 0x2da   : > { %7228 = vmatprep.subr.bf16.mxu0 %v7227_v59  ;;  %v7866_v59 = vld [vmem:[%s11033_s2 + $0x314] ss:$8 sps:$4 sm:$0xff]  }
 0x2dc   : > { %2454 = vmatpush1.bf16.msra.mxu1 %v7809_v12  ;;  %v6584_v12 = vld [vmem:[%s10996_s9 + $0x3a8] sm:$0xff] }
 0x2dd   : > { %2455 = vmatprep.subr.bf16.mxu1 %v7814_v17  ;;  %7230 = vmatpush1.bf16.msra.mxu0 %v7229_v63  ;;  %v7824_v17 = vld [vmem:[%s11033_s2 + $0x240] ss:$8 sps:$4 sm:$0xff]   ;;  %v6491_v63 = vcombine.low %v9324_v7, %v9023_v60  ;;  %v7877_v7 = vld [vmem:[%s11033_s2 + $0x350] ss:$8 sps:$4 sm:$0xff]  }
 0x2de   : > { %7232 = vmatprep.subr.bf16.mxu0 %v7231_v8  ;;  %v7876_v8 = vld [vmem:[%s11033_s2 + $0x344] ss:$8 sps:$4 sm:$0xff]  }
 0x2df   : > { %v2560_v10 = vrot.slane %v6491_v63, 1 }
 0x2e0   : > { %2456 = vmatpush1.bf16.msra.mxu1 %v7812_v22  ;;  %v7235_v22 = vpack.c.bf16 %v6586_v14, %v6584_v12  ;;  %v7879_v12 = vld [vmem:[%s11033_s2 + $0x354] ss:$8 sps:$4 sm:$0xff]   ;;  %v6493_v14 = vcombine.low %v2514_v41, %v9033_v5  ;;  %v6587_v5 = vld [vmem:[%s10996_s9 + $0x3c0] sm:$0xff] }
 0x2e1   : > { %2457 = vmatprep.subr.bf16.mxu1 %v7817_v28  ;;  %7234 = vmatpush1.bf16.msra.mxu0 %v7233_v16  ;;  %v7833_v28 = vld [vmem:[%s11033_s2 + $0x264] ss:$8 sps:$4 sm:$0xff]   ;;  %v2562_v60 = vsel %vm1405_vm15, %v2560_v10, %v2561_v9  ;;  %v2567_v16 = vrot.slane %v9050_v23, 1  ;;  %v6589_v23 = vld [vmem:[%s10996_s9 + $0x3d0] sm:$0xff] }
 0x2e2   : > { %7236 = vmatprep.subr.bf16.mxu0 %v7235_v22  ;;  %v2566_v15 = vrot.slane %v6493_v14, 1  ;;  %v6592_v22 = vld [vmem:[%s10996_s9 + $0x3e8] sm:$0xff]  ;;  %v1713_v41 = vld [vmem:[%s10996_s9] sm:$0xff]  ;;  %v1715_v14 = vld [vmem:[%s10996_s9 + $0x10] sm:$0xff] }
 0x2e4   : > { %2458 = vmatpush1.bf16.msra.mxu1 %v7815_v33  ;;  %v7837_v33 = vld [vmem:[%s11033_s2 + $0x280] ss:$8 sps:$4 sm:$0xff]  }
 0x2e5   : > { %2470 = vmatprep.subr.bf16.mxu1 %v7820_v39  ;;  %7238 = vmatpush1.bf16.msra.mxu0 %v7237_v25  ;;  %v7843_v39 = vld [vmem:[%s11033_s2 + $0x2a0] ss:$8 sps:$4 sm:$0xff]  }
 0x2e6   : > { %7240 = vmatprep.subr.bf16.mxu0 %v7239_v20 }
 0x2e7   : > { %2460 = vmatmul.mubr.bf16.vlgmr.msra.gmra.mrb[12].mxu1 %v9027_v1  ;;  %v7826_v1 = vld [vmem:[%s11033_s2 + $0x244] ss:$8 sps:$4 sm:$0xff]  }
 0x2e8   : > { %2471 = vmatpush1.bf16.msra.mxu1 %v7818_v48  ;;  %2502 = vmatprep.mubr.bf16.mxu1 %v8293_v30  ;;  %v7849_v48 = vld [vmem:[%s11033_s2 + $0x2c0] ss:$8 sps:$4 sm:$0xff]  }
 0x2e9   : > { %2472 = vmatprep.subr.bf16.mxu1 %v7823_v51  ;;  %v7857_v51 = vld [vmem:[%s11033_s2 + $0x2e4] ss:$8 sps:$4 sm:$0xff]  }
 0x2ec   : > { %2473 = vmatpush1.bf16.msra.mxu1 %v7821_v57  ;;  %v7861_v57 = vld [vmem:[%s11033_s2 + $0x300] ss:$8 sps:$4 sm:$0xff]  }
 0x2ed   : > { %2754 = vmatprep.subr.bf16.mxu1 %v7826_v1  ;;  %v7867_v1 = vld [vmem:[%s11033_s2 + $0x320] ss:$8 sps:$4 sm:$0xff]  }
 0x2f3   : > { %6454 = vmatmul.mubr.msk.bf16.vlgmr.msra.gmra.mrb[12].mxu1 %vm998_vm12, %v9040_v13  ;;  %v7831_v13 = vld [vmem:[%s11033_s2 + $0x260] ss:$8 sps:$4 sm:$0xff]  }
 0x2f4   : > { %2755 = vmatpush1.bf16.msra.mxu1 %v7824_v17  ;;  %2786 = vmatprep.mubr.bf16.mxu1 %v2565_v24  ;;  %v2568_v17 = vsel %vm1405_vm15, %v2566_v15, %v2567_v16  ;;  %v6594_v24 = vld [vmem:[%s10996_s9 + $0x3f8] sm:$0xff] }
 0x2f5   : > { %2756 = vmatprep.subr.bf16.mxu1 %v7830_v3  ;;  %v7241_v3 = vpack.c.bf16 %v6589_v23, %v6587_v5  ;;  %v7243_v25 = vpack.c.bf16 %v6594_v24, %v6592_v22  ;;  %v7913_v5 = vld [vmem:[%s10990_s3 + $0x1c4] ss:$8 sps:$4 sm:$0xff]   ;;  %v7249_v22 = vpack.c.bf16 %v1715_v14, %v1713_v41  ;;  %v7911_v24 = vld [vmem:[%s10990_s3 + $0x1c0] ss:$8 sps:$4 sm:$0xff]  }
 0x2f7   : > { %7242 = vmatpush1.bf16.msra.mxu0 %v7241_v3 }
 0x2f8   : > { %2757 = vmatpush1.bf16.msra.mxu1 %v7828_v26  ;;  %v6591_v26 = vld [vmem:[%s10996_s9 + $0x3e0] sm:$0xff]  ;;  %7244 = vmatprep.subr.bf16.mxu0 %v7243_v25 }
 0x2f9   : > { %2758 = vmatprep.subr.bf16.mxu1 %v7833_v28  ;;  %v6593_v28 = vld [vmem:[%s10996_s9 + $0x3f0] sm:$0xff] }
 0x2fc   : > { %2759 = vmatpush1.bf16.msra.mxu1 %v7831_v13  ;;  %v7245_v13 = vpack.c.bf16 %v6593_v28, %v6591_v26  ;;  %v1717_v28 = vld [vmem:[%s10996_s9 + $0x20] sm:$0xff] }
 0x2fd   : > { %2760 = vmatprep.subr.bf16.mxu1 %v7836_v29  ;;  %v1714_v29 = vld [vmem:[%s10996_s9 + $0x8] sm:$0xff] }
 0x2fe   : > { %7246 = vmatpush1.bf16.msra.mxu0 %v7245_v13  ;;  %v1719_v13 = vld [vmem:[%s10996_s9 + $0x30] sm:$0xff] }
 0x300   : > { %2761 = vmatpush1.bf16.msra.mxu1 %v7834_v31  ;;  %v1716_v31 = vld [vmem:[%s10996_s9 + $0x18] sm:$0xff] }
 0x301   : > { %2762 = vmatprep.subr.bf16.mxu1 %v7839_v32  ;;  %v7247_v32 = vpack.c.bf16 %v1716_v31, %v1714_v29 }
 0x303   : > { %7248 = vmatprep.subr.bf16.mxu0 %v7247_v32  ;;  %v1722_v32 = vld [vmem:[%s10996_s9 + $0x48] sm:$0xff] }
 0x304   : > { %2763 = vmatpush1.bf16.msra.mxu1 %v7837_v33  ;;  %v7881_v33 = vld [vmem:[%s10990_s3 + $0x120] ss:$8 sps:$4 sm:$0xff]  }
 0x305   : > { %2764 = vmatprep.subr.bf16.mxu1 %v7842_v34  ;;  %v7883_v34 = vld [vmem:[%s10990_s3 + $0x124] ss:$8 sps:$4 sm:$0xff]  }
 0x308   : > { %2765 = vmatpush1.bf16.msra.mxu1 %v7840_v35  ;;  %v7886_v35 = vld [vmem:[%s10990_s3 + $0x134] ss:$8 sps:$4 sm:$0xff]  }
 0x309   : > { %2766 = vmatprep.subr.bf16.mxu1 %v7845_v37  ;;  %v7884_v37 = vld [vmem:[%s10990_s3 + $0x130] ss:$8 sps:$4 sm:$0xff]  }
 0x30c   : > { %2767 = vmatpush1.bf16.msra.mxu1 %v7843_v39  ;;  %v7889_v39 = vld [vmem:[%s10990_s3 + $0x144] ss:$8 sps:$4 sm:$0xff]  }
 0x30d   : > { %2768 = vmatprep.subr.bf16.mxu1 %v7848_v40  ;;  %v7887_v40 = vld [vmem:[%s10990_s3 + $0x140] ss:$8 sps:$4 sm:$0xff]  }
 0x310   : > { %2769 = vmatpush1.bf16.msra.mxu1 %v7846_v43  ;;  %v7892_v43 = vld [vmem:[%s10990_s3 + $0x154] ss:$8 sps:$4 sm:$0xff]  }
 0x311   : > { %2770 = vmatprep.subr.bf16.mxu1 %v7851_v46  ;;  %v7890_v46 = vld [vmem:[%s10990_s3 + $0x150] ss:$8 sps:$4 sm:$0xff]  }
 0x314   : > { %2771 = vmatpush1.bf16.msra.mxu1 %v7849_v48  ;;  %v7895_v48 = vld [vmem:[%s10990_s3 + $0x164] ss:$8 sps:$4 sm:$0xff]  }
 0x315   : > { %2772 = vmatprep.subr.bf16.mxu1 %v7854_v49  ;;  %v7893_v49 = vld [vmem:[%s10990_s3 + $0x160] ss:$8 sps:$4 sm:$0xff]  }
 0x318   : > { %2773 = vmatpush1.bf16.msra.mxu1 %v7852_v44  ;;  %v7898_v44 = vld [vmem:[%s10990_s3 + $0x174] ss:$8 sps:$4 sm:$0xff]  }
 0x319   : > { %2774 = vmatprep.subr.bf16.mxu1 %v7857_v51  ;;  %v7896_v51 = vld [vmem:[%s10990_s3 + $0x170] ss:$8 sps:$4 sm:$0xff]  }
 0x31c   : > { %2775 = vmatpush1.bf16.msra.mxu1 %v7855_v53  ;;  %v7901_v53 = vld [vmem:[%s10990_s3 + $0x184] ss:$8 sps:$4 sm:$0xff]  }
 0x31d   : > { %2776 = vmatprep.subr.bf16.mxu1 %v7860_v54  ;;  %v7899_v54 = vld [vmem:[%s10990_s3 + $0x180] ss:$8 sps:$4 sm:$0xff]  }
 0x320   : > { %2777 = vmatpush1.bf16.msra.mxu1 %v7858_v55  ;;  %v7904_v55 = vld [vmem:[%s10990_s3 + $0x194] ss:$8 sps:$4 sm:$0xff]  }
 0x321   : > { %2778 = vmatprep.subr.bf16.mxu1 %v7863_v56  ;;  %v7902_v56 = vld [vmem:[%s10990_s3 + $0x190] ss:$8 sps:$4 sm:$0xff]  }
 0x324   : > { %2779 = vmatpush1.bf16.msra.mxu1 %v7861_v57  ;;  %v7907_v57 = vld [vmem:[%s10990_s3 + $0x1a4] ss:$8 sps:$4 sm:$0xff]  }
 0x325   : > { %2780 = vmatprep.subr.bf16.mxu1 %v7866_v59  ;;  %v7905_v59 = vld [vmem:[%s10990_s3 + $0x1a0] ss:$8 sps:$4 sm:$0xff]  }
 0x328   : > { %2781 = vmatpush1.bf16.msra.mxu1 %v7864_v45  ;;  %v7910_v45 = vld [vmem:[%s10990_s3 + $0x1b4] ss:$8 sps:$4 sm:$0xff]  }
 0x329   : > { %2782 = vmatprep.subr.bf16.mxu1 %v7869_v2  ;;  %v7908_v2 = vld [vmem:[%s10990_s3 + $0x1b0] ss:$8 sps:$4 sm:$0xff]  }
 0x32c   : > { %2783 = vmatpush1.bf16.msra.mxu1 %v7867_v1  ;;  %v1835_v1 = vld [vmem:[%s10993_s6] sm:$0x3] }
 0x32d   : > { %2784 = vmatprep.subr.bf16.mxu1 %v7872_v4  ;;  %v2848_v4 = vrot.slane %v1835_v1, %v8940_v36 }
 0x330   : > { %2785 = vmatpush1.bf16.msra.mxu1 %v7870_v62  ;;  %v2852_v62 = vrot.slane %v1835_v1, %v8945_v38 }
 0x331   : > { %2797 = vmatprep.subr.bf16.mxu1 %v7876_v8 }
 0x333   : > { %2787 = vmatmul.mubr.bf16.vlgmr.msra.gmra.mrb[12].mxu1 %v2562_v60 }
 0x334   : > { %2798 = vmatpush1.bf16.msra.mxu1 %v7874_v11  ;;  %2829 = vmatprep.mubr.bf16.mxu1 %v8293_v30 }
 0x335   : > { %2799 = vmatprep.subr.bf16.mxu1 %v7879_v12 }
 0x338   : > { %2800 = vmatpush1.bf16.msra.mxu1 %v7877_v7 }
 0x339   : > { %3466 = vmatprep.subr.bf16.mxu1 %v7883_v34  ;;  %v7916_v34 = vld [vmem:[%s10990_s3 + $0x1d4] ss:$8 sps:$4 sm:$0xff]  }
 0x33f   : > { %6530 = vmatmul.mubr.msk.bf16.vlgmr.msra.gmra.mrb[12].mxu1 %vm998_vm12, %v2568_v17  ;;  %v1718_v17 = vld [vmem:[%s10996_s9 + $0x28] sm:$0xff] }
 0x340   : > { %3467 = vmatpush1.bf16.msra.mxu1 %v7881_v33  ;;  %v7251_v26 = vpack.c.bf16 %v1720_v18, %v1718_v17  ;;  %v1724_v33 = vld [vmem:[%s10996_s9 + $0x58] sm:$0xff]  ;;  %v1734_v17 = vld [vmem:[%s10996_s9 + $0xa8] sm:$0xff] }
 0x341   : > { %3468 = vmatprep.subr.bf16.mxu1 %v7886_v35  ;;  %v1736_v18 = vld [vmem:[%s10996_s9 + $0xb8] sm:$0xff] }
 0x344   : > { %3469 = vmatpush1.bf16.msra.mxu1 %v7884_v37  ;;  %v7253_v37 = vpack.c.bf16 %v1719_v13, %v1717_v28 }
 0x345   : > { %3470 = vmatprep.subr.bf16.mxu1 %v7889_v39 }
 0x348   : > { %3471 = vmatpush1.bf16.msra.mxu1 %v7887_v40  ;;  %v1721_v40 = vld [vmem:[%s10996_s9 + $0x40] sm:$0xff] }
 0x349   : > { %3472 = vmatprep.subr.bf16.mxu1 %v7892_v43  ;;  %v7914_v43 = vld [vmem:[%s10990_s3 + $0x1d0] ss:$8 sps:$4 sm:$0xff]  }
 0x34c   : > { %3473 = vmatpush1.bf16.msra.mxu1 %v7890_v46  ;;  %v7255_v46 = vpack.c.bf16 %v1724_v33, %v1722_v32  ;;  %v7933_v32 = vld [vmem:[%s10990_s3 + $0x224] ss:$8 sps:$4 sm:$0xff]  }
 0x34d   : > { %3474 = vmatprep.subr.bf16.mxu1 %v7895_v48  ;;  %v1723_v48 = vld [vmem:[%s10996_s9 + $0x50] sm:$0xff]  ;;  %v1742_v33 = vld [vmem:[%s10996_s9 + $0xe8] sm:$0xff] }
 0x34e   : > { %v7257_v1 = vpack.c.bf16 %v1723_v48, %v1721_v40  ;;  %v1743_v40 = vld [vmem:[%s10996_s9 + $0xf0] sm:$0xff] }
 0x350   : > { %3475 = vmatpush1.bf16.msra.mxu1 %v7893_v49  ;;  %v1726_v49 = vld [vmem:[%s10996_s9 + $0x68] sm:$0xff] }
 0x351   : > { %3476 = vmatprep.subr.bf16.mxu1 %v7898_v44  ;;  %v7919_v44 = vld [vmem:[%s10990_s3 + $0x1e4] ss:$8 sps:$4 sm:$0xff]  }
 0x354   : > { %3477 = vmatpush1.bf16.msra.mxu1 %v7896_v51 }
 0x355   : > { %3478 = vmatprep.subr.bf16.mxu1 %v7901_v53 }
 0x358   : > { %3479 = vmatpush1.bf16.msra.mxu1 %v7899_v54 }
 0x359   : > { %3480 = vmatprep.subr.bf16.mxu1 %v7904_v55  ;;  %v1728_v55 = vld [vmem:[%s10996_s9 + $0x78] sm:$0xff] }
 0x35c   : > { %3481 = vmatpush1.bf16.msra.mxu1 %v7902_v56  ;;  %v7917_v56 = vld [vmem:[%s10990_s3 + $0x1e0] ss:$8 sps:$4 sm:$0xff]  }
 0x35d   : > { %3482 = vmatprep.subr.bf16.mxu1 %v7907_v57  ;;  %v7922_v57 = vld [vmem:[%s10990_s3 + $0x1f4] ss:$8 sps:$4 sm:$0xff]  }
 0x360   : > { %3483 = vmatpush1.bf16.msra.mxu1 %v7905_v59 }
 0x361   : > { %3484 = vmatprep.subr.bf16.mxu1 %v7910_v45 }
 0x364   : > { %3485 = vmatpush1.bf16.msra.mxu1 %v7908_v2 }
 0x365   : > { %3486 = vmatprep.subr.bf16.mxu1 %v7913_v5 }
 0x368   : > { %3487 = vmatpush1.bf16.msra.mxu1 %v7911_v24  ;;  %v1738_v24 = vld [vmem:[%s10996_s9 + $0xc8] sm:$0xff] }
 0x369   : > { %3488 = vmatprep.subr.bf16.mxu1 %v7916_v34  ;;  %v1744_v34 = vld [vmem:[%s10996_s9 + $0xf8] sm:$0xff] }
 0x36c   : > { %3489 = vmatpush1.bf16.msra.mxu1 %v7914_v43  ;;  %v1746_v43 = vld [vmem:[%s10996_s9 + $0x108] sm:$0xff] }
 0x36d   : > { %3490 = vmatprep.subr.bf16.mxu1 %v7919_v44  ;;  %v1745_v44 = vld [vmem:[%s10996_s9 + $0x100] sm:$0xff] }
 0x370   : > { %3491 = vmatpush1.bf16.msra.mxu1 %v7917_v56 }
 0x371   : > { %3492 = vmatprep.subr.bf16.mxu1 %v7922_v57  ;;  %v1749_v57 = vld [vmem:[%s10996_s9 + $0x120] sm:$0xff] }
 0x412   : > { %v2831_v63 = vpop.f32.mrb[12].mxu1 }
 0x413   : > { %v2855_v8 = vadd.f32 %v2848_v4, %v2831_v63  ;;  %v2833_v9 = vpop.f32.mrb[13].mxu1  ;;  %v1727_v63 = vld [vmem:[%s10996_s9 + $0x70] sm:$0xff] }
 0x414   : > { %v2856_v10 = vadd.f32 %v2852_v62, %v2833_v9  ;;  %v2835_v11 = vpop.f32.mrb[14].mxu1 }
 0x415   : > { %v2859_v12 = vmul.f32 0.05, %v2855_v8  ;;  %v2857_v60 = vadd.f32 %v2848_v4, %v2835_v11  ;;  %v2837_v7 = vpop.f32.mrb[15].mxu1  ;;  %v7259_v4 = vpack.c.bf16 %v1728_v55, %v1726_v49  ;;  %v7920_v11 = vld [vmem:[%s10990_s3 + $0x1f0] ss:$8 sps:$4 sm:$0xff]  }
 0x416   : > { %v2860_v15 = vmul.f32 0.05, %v2856_v10  ;;  %v2858_v16 = vadd.f32 %v2852_v62, %v2837_v7  ;;  %v1725_v62 = vld [vmem:[%s10996_s9 + $0x60] sm:$0xff]  ;;  %3493 = vmatpush1.bf16.msra.mxu1 %v7920_v11 }
 0x417   : > { %v2863_v19 = vmax.f32 %v2855_v8, %v2859_v12  ;;  %v2861_v20 = vmul.f32 0.05, %v2857_v60  ;;  %v7925_v12 = vld [vmem:[%s10990_s3 + $0x204] ss:$8 sps:$4 sm:$0xff]   ;;  %v7261_v41 = vpack.c.bf16 %v1727_v63, %v1725_v62  ;;  %v1755_v63 = vld [vmem:[%s10996_s9 + $0x150] sm:$0xff] }
 0x418   : > { %v2864_v23 = vmax.f32 %v2856_v10, %v2860_v15  ;;  %v2862_v3 = vmul.f32 0.05, %v2858_v16  ;;  %v1732_v10 = vld [vmem:[%s10996_s9 + $0x98] sm:$0xff]  ;;  %v1729_v15 = vld [vmem:[%s10996_s9 + $0x80] sm:$0xff]  ;;  %3494 = vmatprep.subr.bf16.mxu1 %v7925_v12  ;;  %v1759_v12 = vld [vmem:[%s10996_s9 + $0x170] sm:$0xff] }
 0x419   : > { %v2865_v25 = vmax.f32 %v2857_v60, %v2861_v20  ;;  %v7928_v20 = vld [vmem:[%s10990_s3 + $0x214] ss:$8 sps:$4 sm:$0xff]   ;;  %v1753_v62 = vld [vmem:[%s10996_s9 + $0x140] sm:$0xff] }
 0x41a   : > { %v7093_v29 = vpack.c.bf16 %v2864_v23, %v2863_v19  ;;  %v2866_v31 = vmax.f32 %v2858_v16, %v2862_v3  ;;  %2996 = vmatprep.mubr.f32.mxu0 %v2864_v23  ;;  %v1731_v16 = vld [vmem:[%s10996_s9 + $0x90] sm:$0xff]  ;;  %v7267_v23 = vpack.c.bf16 %v1736_v18, %v1734_v17  ;;  %v1733_v3 = vld [vmem:[%s10996_s9 + $0xa0] sm:$0xff]  ;;  %v1766_v17 = vld [vmem:[%s10996_s9 + $0x1a8] sm:$0xff] }
 0x41b   : > { %2997 = vmatmul.mubr.f32.vlgmr.msra.gmra.mrb[12].mxu0 %v2863_v19  ;;  %v7923_v19 = vld [vmem:[%s10990_s3 + $0x200] ss:$8 sps:$4 sm:$0xff]   ;;  %v7265_v5 = vpack.c.bf16 %v1731_v16, %v1729_v15  ;;  %v1763_v16 = vld [vmem:[%s10996_s9 + $0x190] sm:$0xff]  ;;  %v1768_v18 = vld [vmem:[%s10996_s9 + $0x1b8] sm:$0xff] }
 0x41c   : > { %v7094_v35 = vpack.c.bf16 %v2866_v31, %v2865_v25  ;;  %7250 = vmatpush1.bf16.msra.mxu0 %v7249_v22  ;;  %3002 = vmatprep.mubr.f32.mxu0 %v2866_v31  ;;  %v3097_v39 = vshrl.u32 %v7093_v29, 16  ;;  %v3100_v54 = vshll.u32 %v7093_v29, 16  ;;  %v1735_v22 = vld [vmem:[%s10996_s9 + $0xb0] sm:$0xff]  ;;  %v1737_v29 = vld [vmem:[%s10996_s9 + $0xc0] sm:$0xff] }
 0x41d   : > { %7252 = vmatprep.subr.bf16.mxu0 %v7251_v26  ;;  %3495 = vmatpush1.bf16.msra.mxu1 %v7923_v19  ;;  %v7926_v26 = vld [vmem:[%s10990_s3 + $0x210] ss:$8 sps:$4 sm:$0xff]   ;;  %v7269_v28 = vpack.c.bf16 %v1735_v22, %v1733_v3  ;;  %v1757_v11 = vld [vmem:[%s10996_s9 + $0x160] sm:$0xff]  ;;  %v1770_v3 = vld [vmem:[%s10996_s9 + $0x1c8] sm:$0xff] }
 0x41e   : > { %v3105_v51 = vshrl.u32 %v7094_v35, 16  ;;  %v3099_v53 = vrot.slane %v3097_v39, 7  ;;  %v3108_v45 = vshll.u32 %v7094_v35, 16  ;;  %3496 = vmatprep.subr.bf16.mxu1 %v7928_v20  ;;  %v1739_v31 = vld [vmem:[%s10996_s9 + $0xd0] sm:$0xff]  ;;  %v1741_v39 = vld [vmem:[%s10996_s9 + $0xe0] sm:$0xff]  ;;  %v7299_v20 = vpack.c.bf16 %v1768_v18, %v1766_v17  ;;  %v1772_v22 = vld [vmem:[%s10996_s9 + $0x1d8] sm:$0xff] }
 0x41f   : > { %3003 = vmatmul.mubr.f32.gmra.mrb[14].mxu0 %v2865_v25  ;;  %v1740_v25 = vld [vmem:[%s10996_s9 + $0xd8] sm:$0xff]  ;;  %v7273_v35 = vpack.c.bf16 %v1739_v31, %v1737_v29  ;;  %v7277_v48 = vpack.c.bf16 %v1743_v40, %v1741_v39  ;;  %v1761_v15 = vld [vmem:[%s10996_s9 + $0x180] sm:$0xff]  ;;  %v3133_v40 = vld [vmem:[#allocation2 + $0x8] sm:$0xf] }
 0x420   : > { %v3107_v59 = vrot.slane %v3105_v51, 7  ;;  %7254 = vmatpush1.bf16.msra.mxu0 %v7253_v37  ;;  %3073 = vmatprep.mubr.f32.mxu0 %v8961_v6  ;;  %v3102_v2 = vor.u32 %v3100_v54, %v3099_v53  ;;  %v3103_v8 = vrot.slane %v3099_v53, 4  ;;  %v1730_v6 = vld [vmem:[%s10996_s9 + $0x88] sm:$0xff]  ;;  %v7271_v13 = vpack.c.bf16 %v1740_v25, %v1738_v24  ;;  %v1747_v51 = vld [vmem:[%s10996_s9 + $0x110] sm:$0xff]  ;;  %v1752_v54 = vld [vmem:[%s10996_s9 + $0x138] sm:$0xff] }
 0x421   : > { %7256 = vmatprep.subr.bf16.mxu0 %v7255_v46  ;;  %v7263_v14 = vpack.c.bf16 %v1732_v10, %v1730_v6  ;;  %3497 = vmatpush1.bf16.msra.mxu1 %v7926_v26  ;;  %v7275_v37 = vpack.c.bf16 %v1744_v34, %v1742_v33  ;;  %v1748_v46 = vld [vmem:[%s10996_s9 + $0x118] sm:$0xff]  ;;  %v1750_v53 = vld [vmem:[%s10996_s9 + $0x128] sm:$0xff]  ;;  %v7281_v55 = vpack.c.bf16 %v1747_v51, %v1745_v44  ;;  %v1769_v26 = vld [vmem:[%s10996_s9 + $0x1c0] sm:$0xff] }
 0x422   : > { %3113 = vrot.lane.b32.xlu0 %v3102_v2, %s11035_s23  ;;  %v3110_v9 = vor.u32 %v3108_v45, %v3107_v59  ;;  %v3112_v7 = vrot.slane %v3107_v59, 4  ;;  %3509 = vmatprep.subr.bf16.mxu1 %v7933_v32  ;;  %v7279_v49 = vpack.c.bf16 %v1748_v46, %v1746_v43  ;;  %v7283_v56 = vpack.c.bf16 %v1752_v54, %v1750_v53  ;;  %v1751_v59 = vld [vmem:[%s10996_s9 + $0x130] sm:$0xff]  ;;  %v1754_v45 = vld [vmem:[%s10996_s9 + $0x148] sm:$0xff]  ;;  %v1756_v2 = vld [vmem:[%s10996_s9 + $0x158] sm:$0xff] }
 0x423   : > { %v7289_v6 = vpack.c.bf16 %v1755_v63, %v1753_v62  ;;  %v7297_v19 = vpack.c.bf16 %v1763_v16, %v1761_v15  ;;  %v7303_v25 = vpack.c.bf16 %v1772_v22, %v1770_v3  ;;  %v1776_v29 = vld [vmem:[%s10996_s9 + $0x1f8] sm:$0xff]  ;;  %v1773_v33 = vld [vmem:[%s10996_s9 + $0x1e0] sm:$0xff]  ;;  %v1775_v34 = vld [vmem:[%s10996_s9 + $0x1f0] sm:$0xff] }
 0x424   : > { %7258 = vmatpush1.bf16.msra.mxu0 %v7257_v1  ;;  %v3111_v60 = vsel %vm8431_vm4, %v3103_v8, %v3110_v9  ;;  %v7285_v1 = vpack.c.bf16 %v1751_v59, %v1749_v57  ;;  %v1758_v8 = vld [vmem:[%s10996_s9 + $0x168] sm:$0xff]  ;;  %v1760_v9 = vld [vmem:[%s10996_s9 + $0x178] sm:$0xff]  ;;  %v3141_v53 = vld [vmem:[#allocation2 + $0x20] sm:$0x1] }
 0x425   : > { %3115 = vrot.lane.b32.xlu1 %v3111_v60, %s11035_s23  ;;  %7260 = vmatprep.subr.bf16.mxu0 %v7259_v4  ;;  %v7287_v4 = vpack.c.bf16 %v1756_v2, %v1754_v45  ;;  %v7291_v10 = vpack.c.bf16 %v1760_v9, %v1758_v8  ;;  %v1762_v60 = vld [vmem:[%s10996_s9 + $0x188] sm:$0xff]  ;;  %v3138_v54 = vld [vmem:[#allocation2 + $0x18] sm:$0x11] }
 0x426   : > { %3117 = vrot.lane.b32.xlu0 %v3112_v7, %s11035_s23  ;;  %v1764_v7 = vld [vmem:[%s10996_s9 + $0x198] sm:$0xff] }
 0x428   : > { %7262 = vmatpush1.bf16.msra.mxu0 %v7261_v41  ;;  %v7293_v41 = vpack.c.bf16 %v1759_v12, %v1757_v11 }
 0x429   : > { %7264 = vmatprep.subr.bf16.mxu0 %v7263_v14  ;;  %v7295_v14 = vpack.c.bf16 %v1764_v7, %v1762_v60 }
 0x42c   : > { %7266 = vmatpush1.bf16.msra.mxu0 %v7265_v5  ;;  %v1765_v5 = vld [vmem:[%s10996_s9 + $0x1a0] sm:$0xff] }
 0x42d   : > { %7268 = vmatprep.subr.bf16.mxu0 %v7267_v23  ;;  %v1767_v23 = vld [vmem:[%s10996_s9 + $0x1b0] sm:$0xff] }
 0x42e   : > { %v7301_v24 = vpack.c.bf16 %v1767_v23, %v1765_v5  ;;  %v7936_v5 = vld [vmem:[%s10990_s3 + $0x234] ss:$8 sps:$4 sm:$0xff]  }
 0x430   : > { %7270 = vmatpush1.bf16.msra.mxu0 %v7269_v28  ;;  %v1771_v28 = vld [vmem:[%s10996_s9 + $0x1d0] sm:$0xff] }
 0x431   : > { %7272 = vmatprep.subr.bf16.mxu0 %v7271_v13  ;;  %v1774_v13 = vld [vmem:[%s10996_s9 + $0x1e8] sm:$0xff]  ;;  %v7305_v31 = vpack.c.bf16 %v1771_v28, %v1769_v26 }
 0x432   : > { %v7307_v32 = vpack.c.bf16 %v1776_v29, %v1774_v13 }
 0x434   : > { %7274 = vmatpush1.bf16.msra.mxu0 %v7273_v35  ;;  %v7309_v35 = vpack.c.bf16 %v1775_v34, %v1773_v33  ;;  %v7944_v33 = vld [vmem:[%s10990_s3 + $0x14] ss:$8 sps:$4 sm:$0xff]  }
 0x435   : > { %7276 = vmatprep.subr.bf16.mxu0 %v7275_v37 }
 0x438   : > { %7278 = vmatpush1.bf16.msra.mxu0 %v7277_v48 }
 0x439   : > { %7280 = vmatprep.subr.bf16.mxu0 %v7279_v49  ;;  %v8279_v49 = vld [vmem:[#allocation2] sm:$0xff] }
 0x43c   : > { %7282 = vmatpush1.bf16.msra.mxu0 %v7281_v55 }
 0x43d   : > { %7284 = vmatprep.subr.bf16.mxu0 %v7283_v56 }
 0x440   : > { %7286 = vmatpush1.bf16.msra.mxu0 %v7285_v1 }
 0x441   : > { %7288 = vmatprep.subr.bf16.mxu0 %v7287_v4 }
 0x444   : > { %7290 = vmatpush1.bf16.msra.mxu0 %v7289_v6 }
 0x445   : > { %7292 = vmatprep.subr.bf16.mxu0 %v7291_v10 }
 0x448   : > { %7294 = vmatpush1.bf16.msra.mxu0 %v7293_v41 }
 0x449   : > { %7296 = vmatprep.subr.bf16.mxu0 %v7295_v14 }
 0x44c   : > { %7298 = vmatpush1.bf16.msra.mxu0 %v7297_v19  ;;  %v7931_v19 = vld [vmem:[%s10990_s3 + $0x220] ss:$8 sps:$4 sm:$0xff]  }
 0x44d   : > { %7300 = vmatprep.subr.bf16.mxu0 %v7299_v20 }
 0x450   : > { %7302 = vmatpush1.bf16.msra.mxu0 %v7301_v24  ;;  %v7934_v24 = vld [vmem:[%s10990_s3 + $0x230] ss:$8 sps:$4 sm:$0xff]  }
 0x451   : > { %7304 = vmatprep.subr.bf16.mxu0 %v7303_v25  ;;  %v7939_v25 = vld [vmem:[%s10990_s3 + $0x4] ss:$8 sps:$4 sm:$0xff]  }
 0x454   : > { %7306 = vmatpush1.bf16.msra.mxu0 %v7305_v31 }
 0x455   : > { %7308 = vmatprep.subr.bf16.mxu0 %v7307_v32  ;;  %v7937_v32 = vld [vmem:[%s10990_s3] ss:$8 sps:$4 sm:$0xff]  }
 0x458   : > { %7310 = vmatpush1.bf16.msra.mxu0 %v7309_v35  ;;  %v7942_v35 = vld [vmem:[%s10990_s3 + $0x10] ss:$8 sps:$4 sm:$0xff]  }
 0x45b   : > { %3074 = vmatmul.mubr.f32.vlgmr.msra.gmra.mrb[12].mxu0 %v8956_v61 }
 0x45c   : > { %3079 = vmatprep.mubr.f32.mxu0 %v8965_v47 }
 0x45f   : > { %3080 = vmatmul.mubr.f32.gmra.mrb[14].mxu0 %v8963_v0 }
 0x494   : > { %v3114_v37 = vpop.permute.xlu0 %3113 }
 0x495   : > { %v3119_v39 = vrot.slane %v3114_v37, 4 }
 0x497   : > { %v3122_v43 = vsel %vm643_vm0, %v3119_v39, %v3114_v37  ;;  %v3134_v46 = vsel %vm8488_vm3, %v3119_v39, %v3133_v40  ;;  %v3116_v48 = vpop.permute.xlu1 %3115  ;;  %v7947_v37 = vld [vmem:[%s10990_s3 + $0x24] ss:$8 sps:$4 sm:$0xff]   ;;  %v7945_v39 = vld [vmem:[%s10990_s3 + $0x20] ss:$8 sps:$4 sm:$0xff]   ;;  %v7950_v40 = vld [vmem:[%s10990_s3 + $0x34] ss:$8 sps:$4 sm:$0xff]  }
 0x498   : > { %v9798_v44 = vsel %vm8513_vm11, %v3122_v43, %v8279_v49  ;;  %3135 = vst [vmem:[#allocation2 + $0x8] sm:$0xf] %v3134_v46  ;;  %v3120_v61 = vrot.slane %v3116_v48, 4  ;;  %v3118_v51 = vpop.permute.xlu0 %3117  ;;  %v7948_v43 = vld [vmem:[%s10990_s3 + $0x30] ss:$8 sps:$4 sm:$0xff]  }
 0x499   : > { %3132 = vst [vmem:[#allocation2] sm:$0xff] %v9798_v44  ;;  %v3121_v0 = vrot.slane %v3118_v51, 4  ;;  %v7953_v46 = vld [vmem:[%s10990_s3 + $0x44] ss:$8 sps:$4 sm:$0xff]   ;;  %v7956_v49 = vld [vmem:[%s10990_s3 + $0x54] ss:$8 sps:$4 sm:$0xff]  }
 0x49a   : > { %v3123_v47 = vsel %vm643_vm0, %v3120_v61, %v3116_v48  ;;  %3137 = vst.msk [vmem:[#allocation2 + $0x14] sm:$0xf] %vm577_vm8, %v3120_v61  ;;  %v7951_v48 = vld [vmem:[%s10990_s3 + $0x40] ss:$8 sps:$4 sm:$0xff]   ;;  %v7954_v61 = vld [vmem:[%s10990_s3 + $0x50] ss:$8 sps:$4 sm:$0xff]  }
 0x49b   : > { %3136 = vst.msk [vmem:[#allocation2 + $0xc] sm:$0xff] %vm8605_vm10, %v3123_v47  ;;  %v3124_v55 = vsel %vm643_vm0, %v3121_v0, %v3118_v51  ;;  %v3142_v56 = vsel %vm8520_vm13, %v3121_v0, %v3141_v53  ;;  %v7959_v51 = vld [vmem:[%s10990_s3 + $0x64] ss:$8 sps:$4 sm:$0xff]   ;;  %v7957_v0 = vld [vmem:[%s10990_s3 + $0x60] ss:$8 sps:$4 sm:$0xff]  }
 0x49c   : > { %v3139_v57 = vsel %vm8536_vm7, %v3124_v55, %v3138_v54  ;;  %3143 = vst [vmem:[#allocation2 + $0x20] sm:$0x1] %v3142_v56  ;;  %v7962_v47 = vld [vmem:[%s10990_s3 + $0x74] ss:$8 sps:$4 sm:$0xff]   ;;  %v7960_v53 = vld [vmem:[%s10990_s3 + $0x70] ss:$8 sps:$4 sm:$0xff]  }
 0x49d   : > { %3140 = vst [vmem:[#allocation2 + $0x18] sm:$0x11] %v3139_v57  ;;  %v7965_v54 = vld [vmem:[%s10990_s3 + $0x84] ss:$8 sps:$4 sm:$0xff]   ;;  %v6792_v56 = vld [vmem:[%s10996_s9 + $0x418] sm:$0xff] }
 0x49e   : > { %v6790_v55 = vld [vmem:[%s10996_s9 + $0x408] sm:$0xff]  ;;  %v6789_v57 = vld [vmem:[%s10996_s9 + $0x400] sm:$0xff] }
 0x49f   : > { %v3146_v60 = vld [vmem:[#allocation2 + $0x8] sm:$0xf] }
 0x4a1   : > { %v9822_v8 = vld [vmem:[#allocation2 + $0x14] sm:$0xf] }
 0x4a2   : > { %v9810_v59 = vld [vmem:[#allocation2 + $0xc] sm:$0xff]  ;;  %v9829_v14 = vcombine.low %v3146_v60, %v9822_v8 }
 0x4a3   : > { %v6634_v45 = vcombine.high %v9798_v44, %v9810_v59  ;;  %v9816_v2 = vcombine.low %v9798_v44, %v9810_v59  ;;  %v9839_v3 = vld [vmem:[#allocation2 + $0x20] ss:$0 sps:$4 sm:$0x11]   ;;  %v6798_v60 = vld [vmem:[%s10996_s9 + $0x448] sm:$0xff] }
 0x4a4   : > { %v3185_v1 = vld [vmem:[#allocation2 + $0x18] sm:$0x11]  ;;  %v3272_v22 = vshll.u32 %v9829_v14, 16  ;;  %v3277_v28 = vshll.u32 %v9839_v3, 16  ;;  %v3270_v13 = vshrl.u32 %v9829_v14, 16 }
 0x4a5   : > { %v9818_v4 = vcombine.high %v3185_v1, %v3185_v1  ;;  %v3260_v62 = vshll.u32 %v6634_v45, 16  ;;  %v9820_v63 = vcombine.low %v3185_v1, %v3185_v1  ;;  %v3248_v9 = vshll.u32 %v9816_v2, 16  ;;  %v6791_v1 = vld [vmem:[%s10996_s9 + $0x410] sm:$0xff]  ;;  %v4374_v42 = vld [vmem:[#allocation2 + $0x18] sm:$0x11] }
 0x4a6   : > { %v3258_v6 = vshrl.u32 %v6634_v45, 16  ;;  %v3246_v7 = vshrl.u32 %v9816_v2, 16  ;;  %v3274_v26 = vrot.slane %v3272_v22, 1  ;;  %v3279_v31 = vrot.slane %v3277_v28, 1  ;;  %v7966_v22 = vld [vmem:[%s10990_s3 + $0x90] ss:$8 sps:$4 sm:$0xff]  }
 0x4a7   : > { %v3262_v10 = vrot.slane %v3260_v62, 1  ;;  %v3265_v11 = vshll.u32 %v9818_v4, 16  ;;  %v3253_v12 = vshll.u32 %v9820_v63, 16  ;;  %v3250_v41 = vrot.slane %v3248_v9, 1  ;;  %v6794_v62 = vld [vmem:[%s10996_s9 + $0x428] sm:$0xff]  ;;  %v6796_v9 = vld [vmem:[%s10996_s9 + $0x438] sm:$0xff] }
 0x4a8   : > { %v3275_v29 = vor.u32 %v3274_v26, %v3270_v13  ;;  %v6803_v26 = vld [vmem:[%s10996_s9 + $0x470] sm:$0xff]  ;;  %v7971_v28 = vld [vmem:[%s10990_s3 + $0xa4] ss:$8 sps:$4 sm:$0xff]  }
 0x4a9   : > { %v3263_v15 = vor.u32 %v3262_v10, %v3258_v6  ;;  %v3267_v16 = vrot.slane %v3265_v11, 1  ;;  %v3255_v17 = vrot.slane %v3253_v12, 1  ;;  %v3251_v18 = vor.u32 %v3250_v41, %v3246_v7  ;;  %v6793_v11 = vld [vmem:[%s10996_s9 + $0x420] sm:$0xff]  ;;  %v6795_v12 = vld [vmem:[%s10996_s9 + $0x430] sm:$0xff]  ;;  %v6800_v7 = vld [vmem:[%s10996_s9 + $0x458] sm:$0xff] }
 0x4aa   : > { %v3280_v34 = vsel %vm779_vm6, %v3275_v29, %v3279_v31  ;;  %v7313_v6 = vpack.c.bf16 %v6791_v1, %v6789_v57  ;;  %v7315_v10 = vpack.c.bf16 %v6796_v9, %v6794_v62  ;;  %v7317_v41 = vpack.c.bf16 %v6795_v12, %v6793_v11  ;;  %v6806_v13 = vld [vmem:[%s10996_s9 + $0x488] sm:$0xff]  ;;  %v6808_v29 = vld [vmem:[%s10996_s9 + $0x498] sm:$0xff]  ;;  %v6815_v57 = vld [vmem:[%s10996_s9 + $0x4d0] sm:$0xff] }
 0x4ab   : > { %v3268_v20 = vsel %vm779_vm6, %v3263_v15, %v3267_v16  ;;  %v3256_v23 = vsel %vm779_vm6, %v3251_v18, %v3255_v17  ;;  %v7963_v15 = vld [vmem:[%s10990_s3 + $0x80] ss:$8 sps:$4 sm:$0xff]   ;;  %v7319_v16 = vpack.c.bf16 %v6800_v7, %v6798_v60  ;;  %v6799_v18 = vld [vmem:[%s10996_s9 + $0x450] sm:$0xff]  ;;  %v6820_v62 = vld [vmem:[%s10996_s9 + $0x4f8] sm:$0xff] }
 0x4ac   : > { %3498 = vmatprep.mubr.bf16.mxu1 %v3268_v20  ;;  %v6797_v17 = vld [vmem:[%s10996_s9 + $0x440] sm:$0xff]  ;;  %v6802_v20 = vld [vmem:[%s10996_s9 + $0x468] sm:$0xff]  ;;  %v6819_v12 = vld [vmem:[%s10996_s9 + $0x4f0] sm:$0xff] }
 0x4ad   : > { %3499 = vmatmul.mubr.bf16.vlgmr.msra.gmra.mrb[16].mxu1 %v3256_v23  ;;  %v7321_v23 = vpack.c.bf16 %v6799_v18, %v6797_v17  ;;  %v6818_v1 = vld [vmem:[%s10996_s9 + $0x4e8] sm:$0xff]  ;;  %v6817_v11 = vld [vmem:[%s10996_s9 + $0x4e0] sm:$0xff] }
 0x4ae   : > { %3510 = vmatpush1.bf16.msra.mxu1 %v7931_v19  ;;  %3541 = vmatprep.mubr.bf16.mxu1 %v8293_v30  ;;  %v7968_v19 = vld [vmem:[%s10990_s3 + $0x94] ss:$8 sps:$4 sm:$0xff]   ;;  %v7983_v60 = vld [vmem:[%s10990_s3 + $0xe4] ss:$8 sps:$4 sm:$0xff]  }
 0x4af   : > { %3511 = vmatprep.subr.bf16.mxu1 %v7936_v5  ;;  %v6804_v5 = vld [vmem:[%s10996_s9 + $0x478] sm:$0xff]  ;;  %v6822_v7 = vld [vmem:[%s10996_s9 + $0x508] sm:$0xff]  ;;  %v6821_v18 = vld [vmem:[%s10996_s9 + $0x500] sm:$0xff] }
 0x4b2   : > { %3512 = vmatpush1.bf16.msra.mxu1 %v7934_v24  ;;  %v7323_v24 = vpack.c.bf16 %v6804_v5, %v6802_v20  ;;  %v7986_v20 = vld [vmem:[%s10990_s3 + $0xf4] ss:$8 sps:$4 sm:$0xff]   ;;  %v6826_v5 = vld [vmem:[%s10996_s9 + $0x528] sm:$0xff] }
 0x4b3   : > { %3736 = vmatprep.subr.bf16.mxu1 %v7939_v25  ;;  %v6801_v25 = vld [vmem:[%s10996_s9 + $0x460] sm:$0xff] }
 0x4b4   : > { %v7325_v31 = vpack.c.bf16 %v6803_v26, %v6801_v25  ;;  %v6825_v26 = vld [vmem:[%s10996_s9 + $0x520] sm:$0xff] }
 0x4b9   : > { %6675 = vmatmul.mubr.msk.bf16.vlgmr.msra.gmra.mrb[16].mxu1 %vm998_vm12, %v3280_v34  ;;  %v6805_v34 = vld [vmem:[%s10996_s9 + $0x480] sm:$0xff] }
 0x4ba   : > { %3737 = vmatpush1.bf16.msra.mxu1 %v7937_v32  ;;  %3768 = vmatprep.mubr.bf16.mxu1 %v6634_v45  ;;  %v7311_v45 = vpack.c.bf16 %v6792_v56, %v6790_v55  ;;  %v7969_v32 = vld [vmem:[%s10990_s3 + $0xa0] ss:$8 sps:$4 sm:$0xff]  }
 0x4bb   : > { %3738 = vmatprep.subr.bf16.mxu1 %v7944_v33  ;;  %v7327_v33 = vpack.c.bf16 %v6808_v29, %v6806_v13  ;;  %v6813_v56 = vld [vmem:[%s10996_s9 + $0x4c0] sm:$0xff]  ;;  %v6830_v29 = vld [vmem:[%s10996_s9 + $0x548] sm:$0xff] }
 0x4bc   : > { %7312 = vmatprep.subr.bf16.mxu0 %v7311_v45  ;;  %v7980_v45 = vld [vmem:[%s10990_s3 + $0xd4] ss:$8 sps:$4 sm:$0xff]   ;;  %v7337_v9 = vpack.c.bf16 %v6815_v57, %v6813_v56  ;;  %v7989_v13 = vld [vmem:[%s10990_s3 + $0x104] ss:$8 sps:$4 sm:$0xff]  }
 0x4bd   : > { %7314 = vmatpush1.bf16.msra.mxu0 %v7313_v6  ;;  %v7978_v6 = vld [vmem:[%s10990_s3 + $0xd0] ss:$8 sps:$4 sm:$0xff]   ;;  %v6837_v56 = vld [vmem:[%s10996_s9 + $0x580] sm:$0xff] }
 0x4be   : > { %3739 = vmatpush1.bf16.msra.mxu1 %v7942_v35  ;;  %7316 = vmatprep.subr.bf16.mxu0 %v7315_v10  ;;  %v6807_v35 = vld [vmem:[%s10996_s9 + $0x490] sm:$0xff]  ;;  %v7339_v10 = vpack.c.bf16 %v6820_v62, %v6818_v1  ;;  %v6842_v1 = vld [vmem:[%s10996_s9 + $0x5a8] sm:$0xff]  ;;  %v6844_v62 = vld [vmem:[%s10996_s9 + $0x5b8] sm:$0xff] }
 0x4bf   : > { %3740 = vmatprep.subr.bf16.mxu1 %v7947_v37  ;;  %v7974_v37 = vld [vmem:[%s10990_s3 + $0xb4] ss:$8 sps:$4 sm:$0xff]  }
 0x4c0   : > { %v6839_v57 = vld [vmem:[%s10996_s9 + $0x590] sm:$0xff] }
 0x4c1   : > { %7318 = vmatpush1.bf16.msra.mxu0 %v7317_v41  ;;  %v6824_v41 = vld [vmem:[%s10996_s9 + $0x518] sm:$0xff] }
 0x4c2   : > { %3741 = vmatpush1.bf16.msra.mxu1 %v7945_v39  ;;  %7320 = vmatprep.subr.bf16.mxu0 %v7319_v16  ;;  %v6810_v39 = vld [vmem:[%s10996_s9 + $0x4a8] sm:$0xff]  ;;  %v7343_v17 = vpack.c.bf16 %v6824_v41, %v6822_v7  ;;  %v7363_v7 = vpack.c.bf16 %v6844_v62, %v6842_v1  ;;  %v3876_v1 = vrot.slane %v9839_v3, 1  ;;  %v6847_v3 = vld [vmem:[%s10996_s9 + $0x5d0] sm:$0xff] }
 0x4c3   : > { %3742 = vmatprep.subr.bf16.mxu1 %v7950_v40  ;;  %v6812_v40 = vld [vmem:[%s10996_s9 + $0x4b8] sm:$0xff]  ;;  %v7981_v16 = vld [vmem:[%s10990_s3 + $0xe0] ss:$8 sps:$4 sm:$0xff]  }
 0x4c5   : > { %7322 = vmatpush1.bf16.msra.mxu0 %v7321_v23  ;;  %v6828_v23 = vld [vmem:[%s10996_s9 + $0x538] sm:$0xff] }
 0x4c6   : > { %3743 = vmatpush1.bf16.msra.mxu1 %v7948_v43  ;;  %7324 = vmatprep.subr.bf16.mxu0 %v7323_v24  ;;  %v7329_v43 = vpack.c.bf16 %v6807_v35, %v6805_v34  ;;  %v7984_v24 = vld [vmem:[%s10990_s3 + $0xf0] ss:$8 sps:$4 sm:$0xff]   ;;  %v7347_v25 = vpack.c.bf16 %v6828_v23, %v6826_v5  ;;  %v6829_v34 = vld [vmem:[%s10996_s9 + $0x540] sm:$0xff]  ;;  %v8011_v23 = vld [vmem:[%s10990_s3 + $0x294] ss:$8 sps:$4 sm:$0xff]  }
 0x4c7   : > { %3744 = vmatprep.subr.bf16.mxu1 %v7953_v46  ;;  %v7972_v46 = vld [vmem:[%s10990_s3 + $0xb0] ss:$8 sps:$4 sm:$0xff]   ;;  %v8006_v5 = vld [vmem:[%s10990_s3 + $0x280] ss:$8 sps:$4 sm:$0xff]  }
 0x4c8   : > { %v6831_v35 = vld [vmem:[%s10996_s9 + $0x550] sm:$0xff] }
 0x4c9   : > { %7326 = vmatpush1.bf16.msra.mxu0 %v7325_v31  ;;  %v6832_v31 = vld [vmem:[%s10996_s9 + $0x558] sm:$0xff] }
 0x4ca   : > { %3745 = vmatpush1.bf16.msra.mxu1 %v7951_v48  ;;  %7328 = vmatprep.subr.bf16.mxu0 %v7327_v33  ;;  %v7331_v48 = vpack.c.bf16 %v6812_v40, %v6810_v39  ;;  %v7987_v33 = vld [vmem:[%s10990_s3 + $0x100] ss:$8 sps:$4 sm:$0xff]   ;;  %v7351_v39 = vpack.c.bf16 %v6832_v31, %v6830_v29  ;;  %v8023_v31 = vld [vmem:[%s10990_s3 + $0x2d4] ss:$8 sps:$4 sm:$0xff]  }
 0x4cb   : > { %3746 = vmatprep.subr.bf16.mxu1 %v7956_v49  ;;  %v6809_v49 = vld [vmem:[%s10996_s9 + $0x4a0] sm:$0xff]  ;;  %v6834_v40 = vld [vmem:[%s10996_s9 + $0x568] sm:$0xff] }
 0x4cc   : > { %v8018_v29 = vld [vmem:[%s10990_s3 + $0x2c0] ss:$8 sps:$4 sm:$0xff]  }
 0x4cd   : > { %7330 = vmatpush1.bf16.msra.mxu0 %v7329_v43  ;;  %v6836_v43 = vld [vmem:[%s10996_s9 + $0x578] sm:$0xff] }
 0x4ce   : > { %3747 = vmatpush1.bf16.msra.mxu1 %v7954_v61  ;;  %v6811_v61 = vld [vmem:[%s10996_s9 + $0x4b0] sm:$0xff]  ;;  %7332 = vmatprep.subr.bf16.mxu0 %v7331_v48 }
 0x4cf   : > { %3748 = vmatprep.subr.bf16.mxu1 %v7959_v51  ;;  %v7977_v51 = vld [vmem:[%s10990_s3 + $0xc4] ss:$8 sps:$4 sm:$0xff]   ;;  %v7990_v48 = vld [vmem:[%s10990_s3 + $0x110] ss:$8 sps:$4 sm:$0xff]  }
 0x4d2   : > { %3749 = vmatpush1.bf16.msra.mxu1 %v7957_v0  ;;  %v6814_v0 = vld [vmem:[%s10996_s9 + $0x4c8] sm:$0xff] }
 0x4d3   : > { %3750 = vmatprep.subr.bf16.mxu1 %v7962_v47  ;;  %v6816_v47 = vld [vmem:[%s10996_s9 + $0x4d8] sm:$0xff] }
 0x4d4   : > { %v7335_v55 = vpack.c.bf16 %v6816_v47, %v6814_v0  ;;  %v6838_v0 = vld [vmem:[%s10996_s9 + $0x588] sm:$0xff]  ;;  %v6840_v47 = vld [vmem:[%s10996_s9 + $0x598] sm:$0xff] }
 0x4d6   : > { %3751 = vmatpush1.bf16.msra.mxu1 %v7960_v53  ;;  %v7333_v53 = vpack.c.bf16 %v6811_v61, %v6809_v49  ;;  %v7355_v49 = vpack.c.bf16 %v6836_v43, %v6834_v40  ;;  %v6833_v61 = vld [vmem:[%s10996_s9 + $0x560] sm:$0xff]  ;;  %v8035_v43 = vld [vmem:[%s10990_s3 + $0x314] ss:$8 sps:$4 sm:$0xff]  }
 0x4d7   : > { %3752 = vmatprep.subr.bf16.mxu1 %v7965_v54  ;;  %v7975_v54 = vld [vmem:[%s10990_s3 + $0xc0] ss:$8 sps:$4 sm:$0xff]  }
 0x4d8   : > { %7334 = vmatpush1.bf16.msra.mxu0 %v7333_v53  ;;  %v8030_v40 = vld [vmem:[%s10990_s3 + $0x300] ss:$8 sps:$4 sm:$0xff]  }
 0x4d9   : > { %7336 = vmatprep.subr.bf16.mxu0 %v7335_v55  ;;  %v7359_v55 = vpack.c.bf16 %v6840_v47, %v6838_v0  ;;  %v8045_v0 = vld [vmem:[%s10990_s3 + $0x344] ss:$8 sps:$4 sm:$0xff]   ;;  %v3870_v47 = vrot.slane %v9820_v63, 1  ;;  %v3823_v63 = vld [vmem:[#allocation2 + $0x8] sm:$0xe] }
 0x4da   : > { %3753 = vmatpush1.bf16.msra.mxu1 %v7963_v15  ;;  %v7341_v15 = vpack.c.bf16 %v6819_v12, %v6817_v11  ;;  %v6841_v11 = vld [vmem:[%s10996_s9 + $0x5a0] sm:$0xff]  ;;  %v6843_v12 = vld [vmem:[%s10996_s9 + $0x5b0] sm:$0xff] }
 0x4db   : > { %3754 = vmatprep.subr.bf16.mxu1 %v7968_v19  ;;  %v6823_v19 = vld [vmem:[%s10996_s9 + $0x510] sm:$0xff] }
 0x4dc   : > { %7338 = vmatpush1.bf16.msra.mxu0 %v7337_v9  ;;  %v3873_v9 = vrot.slane %v9818_v4, 1  ;;  %v7999_v4 = vld [vmem:[%s10990_s3 + $0x254] ss:$8 sps:$4 sm:$0xff]  }
 0x4dd   : > { %7340 = vmatprep.subr.bf16.mxu0 %v7339_v10  ;;  %v7993_v10 = vld [vmem:[%s10990_s3 + $0x240] ss:$8 sps:$4 sm:$0xff]  }
 0x4de   : > { %3755 = vmatpush1.bf16.msra.mxu1 %v7966_v22  ;;  %v7345_v22 = vpack.c.bf16 %v6823_v19, %v6821_v18  ;;  %v8005_v18 = vld [vmem:[%s10990_s3 + $0x274] ss:$8 sps:$4 sm:$0xff]   ;;  %v8003_v19 = vld [vmem:[%s10990_s3 + $0x270] ss:$8 sps:$4 sm:$0xff]  }
 0x4df   : > { %3756 = vmatprep.subr.bf16.mxu1 %v7971_v28  ;;  %v6827_v28 = vld [vmem:[%s10996_s9 + $0x530] sm:$0xff] }
 0x4e0   : > { %7342 = vmatpush1.bf16.msra.mxu0 %v7341_v15  ;;  %v7365_v15 = vpack.c.bf16 %v6843_v12, %v6841_v11  ;;  %v6850_v12 = vld [vmem:[%s10996_s9 + $0x5e8] sm:$0xff] }
 0x4e1   : > { %7344 = vmatprep.subr.bf16.mxu0 %v7343_v17  ;;  %v8002_v17 = vld [vmem:[%s10990_s3 + $0x264] ss:$8 sps:$4 sm:$0xff]  }
 0x4e2   : > { %3757 = vmatpush1.bf16.msra.mxu1 %v7969_v32  ;;  %v7349_v32 = vpack.c.bf16 %v6827_v28, %v6825_v26  ;;  %v8017_v26 = vld [vmem:[%s10990_s3 + $0x2b4] ss:$8 sps:$4 sm:$0xff]   ;;  %v8015_v28 = vld [vmem:[%s10990_s3 + $0x2b0] ss:$8 sps:$4 sm:$0xff]  }
 0x4e3   : > { %3758 = vmatprep.subr.bf16.mxu1 %v7974_v37  ;;  %v7992_v37 = vld [vmem:[%s10990_s3 + $0x114] ss:$8 sps:$4 sm:$0xff]  }
 0x4e4   : > { %7346 = vmatpush1.bf16.msra.mxu0 %v7345_v22  ;;  %v8009_v22 = vld [vmem:[%s10990_s3 + $0x290] ss:$8 sps:$4 sm:$0xff]  }
 0x4e5   : > { %7348 = vmatprep.subr.bf16.mxu0 %v7347_v25  ;;  %v8012_v25 = vld [vmem:[%s10990_s3 + $0x2a0] ss:$8 sps:$4 sm:$0xff]  }
 0x4e6   : > { %3759 = vmatpush1.bf16.msra.mxu1 %v7972_v46  ;;  %v7353_v46 = vpack.c.bf16 %v6831_v35, %v6829_v34  ;;  %v8024_v34 = vld [vmem:[%s10990_s3 + $0x2e0] ss:$8 sps:$4 sm:$0xff]   ;;  %v8029_v35 = vld [vmem:[%s10990_s3 + $0x2f4] ss:$8 sps:$4 sm:$0xff]  }
 0x4e7   : > { %3760 = vmatprep.subr.bf16.mxu1 %v7977_v51  ;;  %v6835_v51 = vld [vmem:[%s10996_s9 + $0x570] sm:$0xff] }
 0x4e8   : > { %7350 = vmatpush1.bf16.msra.mxu0 %v7349_v32  ;;  %v7357_v53 = vpack.c.bf16 %v6835_v51, %v6833_v61  ;;  %v8021_v32 = vld [vmem:[%s10990_s3 + $0x2d0] ss:$8 sps:$4 sm:$0xff]   ;;  %v8041_v61 = vld [vmem:[%s10990_s3 + $0x334] ss:$8 sps:$4 sm:$0xff]  }
 0x4e9   : > { %7352 = vmatprep.subr.bf16.mxu0 %v7351_v39  ;;  %v8032_v39 = vld [vmem:[%s10990_s3 + $0x304] ss:$8 sps:$4 sm:$0xff]   ;;  %v8039_v51 = vld [vmem:[%s10990_s3 + $0x330] ss:$8 sps:$4 sm:$0xff]  }
 0x4ea   : > { %3761 = vmatpush1.bf16.msra.mxu1 %v7975_v54  ;;  %v10113_v54 = vld [vmem:[#allocation2] sm:$0xee] }
 0x4eb   : > { %3762 = vmatprep.subr.bf16.mxu1 %v7980_v45  ;;  %v6750_v45 = vcombine.high %v10113_v54, %v9810_v59 }
 0x4ec   : > { %7354 = vmatpush1.bf16.msra.mxu0 %v7353_v46  ;;  %v8033_v46 = vld [vmem:[%s10990_s3 + $0x310] ss:$8 sps:$4 sm:$0xff]  }
 0x4ed   : > { %7356 = vmatprep.subr.bf16.mxu0 %v7355_v49  ;;  %v8036_v49 = vld [vmem:[%s10990_s3 + $0x320] ss:$8 sps:$4 sm:$0xff]  }
 0x4ee   : > { %3763 = vmatpush1.bf16.msra.mxu1 %v7978_v6  ;;  %v7361_v6 = vpack.c.bf16 %v6839_v57, %v6837_v56  ;;  %v8048_v56 = vld [vmem:[%s10990_s3 + $0x354] ss:$8 sps:$4 sm:$0xff]   ;;  %v6751_v57 = vcombine.low %v3823_v63, %v9822_v8  ;;  %v6845_v8 = vld [vmem:[%s10996_s9 + $0x5c0] sm:$0xff] }
 0x4ef   : > { %3764 = vmatprep.subr.bf16.mxu1 %v7983_v60  ;;  %v3872_v60 = vrot.slane %v6750_v45, 1  ;;  %v7369_v11 = vpack.c.bf16 %v6847_v3, %v6845_v8  ;;  %v8073_v8 = vld [vmem:[%s10991_s4 + $0x194] ss:$8 sps:$4 sm:$0xff]   ;;  %v8071_v3 = vld [vmem:[%s10991_s4 + $0x190] ss:$8 sps:$4 sm:$0xff]  }
 0x4f0   : > { %7358 = vmatpush1.bf16.msra.mxu0 %v7357_v53  ;;  %v3875_v45 = vrot.slane %v6751_v57, 1 }
 0x4f1   : > { %7360 = vmatprep.subr.bf16.mxu0 %v7359_v55  ;;  %v3874_v41 = vsel %vm1405_vm15, %v3872_v60, %v3873_v9  ;;  %v8043_v55 = vld [vmem:[%s10990_s3 + $0x340] ss:$8 sps:$4 sm:$0xff]   ;;  %v6852_v60 = vld [vmem:[%s10996_s9 + $0x5f8] sm:$0xff] }
 0x4f2   : > { %3765 = vmatpush1.bf16.msra.mxu1 %v7981_v16  ;;  %v7997_v16 = vld [vmem:[%s10990_s3 + $0x250] ss:$8 sps:$4 sm:$0xff]   ;;  %v3877_v62 = vsel %vm1405_vm15, %v3875_v45, %v3876_v1  ;;  %v6846_v9 = vld [vmem:[%s10996_s9 + $0x5c8] sm:$0xff] }
 0x4f3   : > { %3766 = vmatprep.subr.bf16.mxu1 %v7986_v20  ;;  %v8008_v20 = vld [vmem:[%s10990_s3 + $0x284] ss:$8 sps:$4 sm:$0xff]   ;;  %v8059_v45 = vld [vmem:[%s10991_s4 + $0x150] ss:$8 sps:$4 sm:$0xff]  }
 0x4f4   : > { %7362 = vmatpush1.bf16.msra.mxu0 %v7361_v6  ;;  %v6848_v6 = vld [vmem:[%s10996_s9 + $0x5d8] sm:$0xff]  ;;  %v8064_v1 = vld [vmem:[%s10991_s4 + $0x164] ss:$8 sps:$4 sm:$0xff]  }
 0x4f5   : > { %7364 = vmatprep.subr.bf16.mxu0 %v7363_v7  ;;  %v6849_v7 = vld [vmem:[%s10996_s9 + $0x5e0] sm:$0xff] }
 0x4f6   : > { %3767 = vmatpush1.bf16.msra.mxu1 %v7984_v24  ;;  %v8014_v24 = vld [vmem:[%s10990_s3 + $0x2a4] ss:$8 sps:$4 sm:$0xff]  }
 0x4f7   : > { %3779 = vmatprep.subr.bf16.mxu1 %v7989_v13  ;;  %v8020_v13 = vld [vmem:[%s10990_s3 + $0x2c4] ss:$8 sps:$4 sm:$0xff]  }
 0x4f8   : > { %7366 = vmatpush1.bf16.msra.mxu0 %v7365_v15 }
 0x4f9   : > { %3769 = vmatmul.mubr.bf16.vlgmr.msra.gmra.mrb[16].mxu1 %v9816_v2  ;;  %v7995_v2 = vld [vmem:[%s10990_s3 + $0x244] ss:$8 sps:$4 sm:$0xff]  }
 0x4fa   : > { %3780 = vmatpush1.bf16.msra.mxu1 %v7987_v33  ;;  %3811 = vmatprep.mubr.bf16.mxu1 %v8293_v30  ;;  %v8026_v33 = vld [vmem:[%s10990_s3 + $0x2e4] ss:$8 sps:$4 sm:$0xff]  }
 0x4fb   : > { %3781 = vmatprep.subr.bf16.mxu1 %v7992_v37  ;;  %v8027_v37 = vld [vmem:[%s10990_s3 + $0x2f0] ss:$8 sps:$4 sm:$0xff]  }
 0x4fe   : > { %3782 = vmatpush1.bf16.msra.mxu1 %v7990_v48  ;;  %v8038_v48 = vld [vmem:[%s10990_s3 + $0x324] ss:$8 sps:$4 sm:$0xff]  }
 0x4ff   : > { %4063 = vmatprep.subr.bf16.mxu1 %v7995_v2  ;;  %v6749_v2 = vcombine.low %v10113_v54, %v9810_v59  ;;  %v8046_v54 = vld [vmem:[%s10990_s3 + $0x350] ss:$8 sps:$4 sm:$0xff]  }
 0x501   : > { %v3869_v53 = vrot.slane %v6749_v2, 1 }
 0x503   : > { %v3871_v59 = vsel %vm1405_vm15, %v3869_v53, %v3870_v47 }
 0x505   : > { %6712 = vmatmul.mubr.msk.bf16.vlgmr.msra.gmra.mrb[16].mxu1 %vm998_vm12, %v9829_v14  ;;  %v8000_v14 = vld [vmem:[%s10990_s3 + $0x260] ss:$8 sps:$4 sm:$0xff]  }
 0x506   : > { %4064 = vmatpush1.bf16.msra.mxu1 %v7993_v10  ;;  %4095 = vmatprep.mubr.bf16.mxu1 %v3874_v41  ;;  %v7367_v10 = vpack.c.bf16 %v6848_v6, %v6846_v9  ;;  %v6851_v41 = vld [vmem:[%s10996_s9 + $0x5f0] sm:$0xff]  ;;  %v8070_v6 = vld [vmem:[%s10991_s4 + $0x184] ss:$8 sps:$4 sm:$0xff]  }
 0x507   : > { %4065 = vmatprep.subr.bf16.mxu1 %v7999_v4  ;;  %v7371_v4 = vpack.c.bf16 %v6852_v60, %v6850_v12  ;;  %v7373_v15 = vpack.c.bf16 %v6851_v41, %v6849_v7  ;;  %v8065_v9 = vld [vmem:[%s10991_s4 + $0x170] ss:$8 sps:$4 sm:$0xff]   ;;  %v8074_v12 = vld [vmem:[%s10991_s4 + $0x1a0] ss:$8 sps:$4 sm:$0xff]   ;;  %v8079_v60 = vld [vmem:[%s10991_s4 + $0x1b4] ss:$8 sps:$4 sm:$0xff]  }
 0x508   : > { %7368 = vmatprep.subr.bf16.mxu0 %v7367_v10  ;;  %v8068_v10 = vld [vmem:[%s10991_s4 + $0x180] ss:$8 sps:$4 sm:$0xff]   ;;  %v8082_v7 = vld [vmem:[%s10991_s4 + $0x1c4] ss:$8 sps:$4 sm:$0xff]  }
 0x509   : > { %7370 = vmatpush1.bf16.msra.mxu0 %v7369_v11  ;;  %v8076_v11 = vld [vmem:[%s10991_s4 + $0x1a4] ss:$8 sps:$4 sm:$0xff]   ;;  %v8080_v41 = vld [vmem:[%s10991_s4 + $0x1c0] ss:$8 sps:$4 sm:$0xff]  }
 0x50a   : > { %4066 = vmatpush1.bf16.msra.mxu1 %v7997_v16  ;;  %7372 = vmatprep.subr.bf16.mxu0 %v7371_v4  ;;  %v8052_v16 = vld [vmem:[%s10991_s4 + $0x124] ss:$8 sps:$4 sm:$0xff]   ;;  %v8077_v4 = vld [vmem:[%s10991_s4 + $0x1b0] ss:$8 sps:$4 sm:$0xff]  }
 0x50b   : > { %4067 = vmatprep.subr.bf16.mxu1 %v8002_v17  ;;  %v3144_v17 = vld [vmem:[%s10994_s7] sm:$0x3] }
 0x50d   : > { %7374 = vmatpush1.bf16.msra.mxu0 %v7373_v15  ;;  %v8085_v15 = vld [vmem:[%s10991_s4 + $0x1d4] ss:$8 sps:$4 sm:$0xff]  }
 0x50e   : > { %4068 = vmatpush1.bf16.msra.mxu1 %v8000_v14  ;;  %4702 = vmatprep.subr.bf16.mxu0 %v8052_v16  ;;  %v4157_v14 = vrot.slane %v3144_v17, %v8940_v36  ;;  %v8083_v16 = vld [vmem:[%s10991_s4 + $0x1d0] ss:$8 sps:$4 sm:$0xff]  }
 0x50f   : > { %4069 = vmatprep.subr.bf16.mxu1 %v8005_v18  ;;  %v4161_v18 = vrot.slane %v3144_v17, %v8945_v38  ;;  %v8088_v17 = vld [vmem:[%s10991_s4 + $0x1e4] ss:$8 sps:$4 sm:$0xff]  }
 0x512   : > { %4070 = vmatpush1.bf16.msra.mxu1 %v8003_v19 }
 0x513   : > { %4071 = vmatprep.subr.bf16.mxu1 %v8008_v20 }
 0x516   : > { %4072 = vmatpush1.bf16.msra.mxu1 %v8006_v5 }
 0x517   : > { %4073 = vmatprep.subr.bf16.mxu1 %v8011_v23 }
 0x51a   : > { %4074 = vmatpush1.bf16.msra.mxu1 %v8009_v22 }
 0x51b   : > { %4075 = vmatprep.subr.bf16.mxu1 %v8014_v24 }
 0x51e   : > { %4076 = vmatpush1.bf16.msra.mxu1 %v8012_v25 }
 0x51f   : > { %4077 = vmatprep.subr.bf16.mxu1 %v8017_v26 }
 0x522   : > { %4078 = vmatpush1.bf16.msra.mxu1 %v8015_v28 }
 0x523   : > { %4079 = vmatprep.subr.bf16.mxu1 %v8020_v13 }
 0x526   : > { %4080 = vmatpush1.bf16.msra.mxu1 %v8018_v29 }
 0x527   : > { %4081 = vmatprep.subr.bf16.mxu1 %v8023_v31 }
 0x52a   : > { %4082 = vmatpush1.bf16.msra.mxu1 %v8021_v32 }
 0x52b   : > { %4083 = vmatprep.subr.bf16.mxu1 %v8026_v33 }
 0x52e   : > { %4084 = vmatpush1.bf16.msra.mxu1 %v8024_v34  ;;  %v8050_v34 = vld [vmem:[%s10991_s4 + $0x120] ss:$8 sps:$4 sm:$0xff]  }
 0x52f   : > { %4085 = vmatprep.subr.bf16.mxu1 %v8029_v35 }
 0x532   : > { %4086 = vmatpush1.bf16.msra.mxu1 %v8027_v37  ;;  %v8055_v37 = vld [vmem:[%s10991_s4 + $0x134] ss:$8 sps:$4 sm:$0xff]  }
 0x533   : > { %4087 = vmatprep.subr.bf16.mxu1 %v8032_v39 }
 0x536   : > { %4088 = vmatpush1.bf16.msra.mxu1 %v8030_v40 }
 0x537   : > { %4089 = vmatprep.subr.bf16.mxu1 %v8035_v43 }
 0x53a   : > { %4090 = vmatpush1.bf16.msra.mxu1 %v8033_v46 }
 0x53b   : > { %4091 = vmatprep.subr.bf16.mxu1 %v8038_v48  ;;  %v8053_v48 = vld [vmem:[%s10991_s4 + $0x130] ss:$8 sps:$4 sm:$0xff]  }
 0x53e   : > { %4092 = vmatpush1.bf16.msra.mxu1 %v8036_v49  ;;  %v8058_v49 = vld [vmem:[%s10991_s4 + $0x144] ss:$8 sps:$4 sm:$0xff]  }
 0x53f   : > { %4093 = vmatprep.subr.bf16.mxu1 %v8041_v61 }
 0x542   : > { %4094 = vmatpush1.bf16.msra.mxu1 %v8039_v51 }
 0x543   : > { %4106 = vmatprep.subr.bf16.mxu1 %v8045_v0 }
 0x545   : > { %4096 = vmatmul.mubr.bf16.vlgmr.msra.gmra.mrb[16].mxu1 %v3871_v59 }
 0x546   : > { %4107 = vmatpush1.bf16.msra.mxu1 %v8043_v55  ;;  %4138 = vmatprep.mubr.bf16.mxu1 %v8293_v30  ;;  %v8056_v55 = vld [vmem:[%s10991_s4 + $0x140] ss:$8 sps:$4 sm:$0xff]  }
 0x547   : > { %4108 = vmatprep.subr.bf16.mxu1 %v8048_v56  ;;  %v8061_v56 = vld [vmem:[%s10991_s4 + $0x154] ss:$8 sps:$4 sm:$0xff]  }
 0x54a   : > { %4109 = vmatpush1.bf16.msra.mxu1 %v8046_v54 }
 0x551   : > { %6788 = vmatmul.mubr.msk.bf16.vlgmr.msra.gmra.mrb[16].mxu1 %vm998_vm12, %v3877_v62  ;;  %v8067_v62 = vld [vmem:[%s10991_s4 + $0x174] ss:$8 sps:$4 sm:$0xff]  }
 0x624   : > { %v4140_v19 = vpop.f32.mrb[16].mxu1 }
 0x625   : > { %v4164_v20 = vadd.f32 %v4157_v14, %v4140_v19  ;;  %v4142_v5 = vpop.f32.mrb[17].mxu1  ;;  %v8089_v19 = vld [vmem:[%s10991_s4 + $0x1f0] ss:$8 sps:$4 sm:$0xff]  }
 0x626   : > { %v4165_v23 = vadd.f32 %v4161_v18, %v4142_v5  ;;  %v4144_v22 = vpop.f32.mrb[18].mxu1  ;;  %v8092_v5 = vld [vmem:[%s10991_s4 + $0x200] ss:$8 sps:$4 sm:$0xff]  }
 0x627   : > { %v4168_v24 = vmul.f32 0.05, %v4164_v20  ;;  %v4166_v25 = vadd.f32 %v4157_v14, %v4144_v22  ;;  %v4146_v26 = vpop.f32.mrb[19].mxu1  ;;  %v8086_v14 = vld [vmem:[%s10991_s4 + $0x1e0] ss:$8 sps:$4 sm:$0xff]  }
 0x628   : > { %v4169_v28 = vmul.f32 0.05, %v4165_v23  ;;  %v4167_v13 = vadd.f32 %v4161_v18, %v4146_v26  ;;  %v8091_v18 = vld [vmem:[%s10991_s4 + $0x1f4] ss:$8 sps:$4 sm:$0xff]   ;;  %v8095_v22 = vld [vmem:[%s10991_s4 + $0x210] ss:$8 sps:$4 sm:$0xff]  }
 0x629   : > { %v4172_v29 = vmax.f32 %v4164_v20, %v4168_v24  ;;  %v4170_v31 = vmul.f32 0.05, %v4166_v25  ;;  %v8094_v20 = vld [vmem:[%s10991_s4 + $0x204] ss:$8 sps:$4 sm:$0xff]  }
 0x62a   : > { %v4173_v32 = vmax.f32 %v4165_v23, %v4169_v28  ;;  %v4171_v33 = vmul.f32 0.05, %v4167_v13  ;;  %v8097_v23 = vld [vmem:[%s10991_s4 + $0x214] ss:$8 sps:$4 sm:$0xff]   ;;  %v8102_v24 = vld [vmem:[%s10991_s4 + $0x224] ss:$8 sps:$4 sm:$0xff]  }
 0x62b   : > { %v4174_v35 = vmax.f32 %v4166_v25, %v4170_v31  ;;  %v4369_v28 = vld [vmem:[#allocation2 + $0x8] sm:$0xf] }
 0x62c   : > { %v7095_v39 = vpack.c.bf16 %v4173_v32, %v4172_v29  ;;  %v4175_v40 = vmax.f32 %v4167_v13, %v4171_v33  ;;  %4305 = vmatprep.mubr.f32.mxu0 %v4173_v32 }
 0x62d   : > { %4306 = vmatmul.mubr.f32.vlgmr.msra.gmra.mrb[12].mxu0 %v4172_v29 }
 0x62e   : > { %v7096_v43 = vpack.c.bf16 %v4175_v40, %v4174_v35  ;;  %4311 = vmatprep.mubr.f32.mxu0 %v4175_v40  ;;  %v4333_v46 = vshrl.u32 %v7095_v39, 16  ;;  %4703 = vmatpush1.bf16.msra.mxu0 %v8050_v34  ;;  %v4336_v2 = vshll.u32 %v7095_v39, 16  ;;  %v4377_v39 = vld [vmem:[#allocation2 + $0x20] sm:$0x1] }
 0x62f   : > { %4704 = vmatprep.subr.bf16.mxu0 %v8055_v37 }
 0x630   : > { %v4341_v61 = vshrl.u32 %v7096_v43, 16  ;;  %v4335_v51 = vrot.slane %v4333_v46, 7  ;;  %v4344_v47 = vshll.u32 %v7096_v43, 16 }
 0x631   : > { %4312 = vmatmul.mubr.f32.gmra.mrb[14].mxu0 %v4174_v35 }
 0x632   : > { %v4343_v0 = vrot.slane %v4341_v61, 7  ;;  %v4338_v53 = vor.u32 %v4336_v2, %v4335_v51  ;;  %4705 = vmatpush1.bf16.msra.mxu0 %v8053_v48  ;;  %v4339_v59 = vrot.slane %v4335_v51, 4 }
 0x633   : > { %4706 = vmatprep.subr.bf16.mxu0 %v8058_v49 }
 0x634   : > { %4349 = vrot.lane.b32.xlu1 %v4338_v53, %s11035_s23  ;;  %v4346_v54 = vor.u32 %v4344_v47, %v4343_v0  ;;  %v4348_v57 = vrot.slane %v4343_v0, 4 }
 0x636   : > { %v4347_v63 = vsel %vm8431_vm4, %v4339_v59, %v4346_v54  ;;  %4707 = vmatpush1.bf16.msra.mxu0 %v8056_v55  ;;  %vm8295_vm4 = vmmov 0  }
 0x637   : > { %4351 = vrot.lane.b32.xlu0 %v4347_v63, %s11035_s23  ;;  %4708 = vmatprep.subr.bf16.mxu0 %v8061_v56 }
 0x638   : > { %4353 = vrot.lane.b32.xlu1 %v4348_v57, %s11035_s23 }
 0x63a   : > { %4709 = vmatpush1.bf16.msra.mxu0 %v8059_v45 }
 0x63b   : > { %4710 = vmatprep.subr.bf16.mxu0 %v8064_v1 }
 0x63e   : > { %4711 = vmatpush1.bf16.msra.mxu0 %v8062_v21 }
 0x63f   : > { %4712 = vmatprep.subr.bf16.mxu0 %v8067_v62 }
 0x642   : > { %4713 = vmatpush1.bf16.msra.mxu0 %v8065_v9 }
 0x643   : > { %4714 = vmatprep.subr.bf16.mxu0 %v8070_v6 }
 0x646   : > { %4715 = vmatpush1.bf16.msra.mxu0 %v8068_v10 }
 0x647   : > { %4716 = vmatprep.subr.bf16.mxu0 %v8073_v8 }
 0x64a   : > { %4717 = vmatpush1.bf16.msra.mxu0 %v8071_v3 }
 0x64b   : > { %4718 = vmatprep.subr.bf16.mxu0 %v8076_v11 }
 0x64e   : > { %4719 = vmatpush1.bf16.msra.mxu0 %v8074_v12 }
 0x64f   : > { %4720 = vmatprep.subr.bf16.mxu0 %v8079_v60  ;;  %v8100_v60 = vld [vmem:[%s10991_s4 + $0x220] ss:$8 sps:$4 sm:$0xff]  }
 0x652   : > { %4721 = vmatpush1.bf16.msra.mxu0 %v8077_v4 }
 0x653   : > { %4722 = vmatprep.subr.bf16.mxu0 %v8082_v7 }
 0x656   : > { %4723 = vmatpush1.bf16.msra.mxu0 %v8080_v41 }
 0x657   : > { %4724 = vmatprep.subr.bf16.mxu0 %v8085_v15 }
 0x65a   : > { %4725 = vmatpush1.bf16.msra.mxu0 %v8083_v16  ;;  %v8105_v16 = vld [vmem:[%s10991_s4 + $0x234] ss:$8 sps:$4 sm:$0xff]  }
 0x65b   : > { %4726 = vmatprep.subr.bf16.mxu0 %v8088_v17 }
 0x65e   : > { %4727 = vmatpush1.bf16.msra.mxu0 %v8086_v14 }
 0x65f   : > { %4728 = vmatprep.subr.bf16.mxu0 %v8091_v18 }
 0x662   : > { %4729 = vmatpush1.bf16.msra.mxu0 %v8089_v19 }
 0x663   : > { %4730 = vmatprep.subr.bf16.mxu0 %v8094_v20 }
 0x666   : > { %4731 = vmatpush1.bf16.msra.mxu0 %v8092_v5  ;;  %v8103_v5 = vld [vmem:[%s10991_s4 + $0x230] ss:$8 sps:$4 sm:$0xff]  }
 0x667   : > { %4732 = vmatprep.subr.bf16.mxu0 %v8097_v23  ;;  %v8108_v23 = vld [vmem:[%s10991_s4 + $0x4] ss:$8 sps:$4 sm:$0xff]  }
 0x66a   : > { %4733 = vmatpush1.bf16.msra.mxu0 %v8095_v22 }
 0x66b   : > { %4745 = vmatprep.subr.bf16.mxu0 %v8102_v24 }
 0x6a6   : > { %v4350_v25 = vpop.permute.xlu1 %4349 }
 0x6a7   : > { %v4355_v26 = vrot.slane %v4350_v25, 4 }
 0x6a9   : > { %v4358_v13 = vsel %vm643_vm0, %v4355_v26, %v4350_v25  ;;  %v4370_v29 = vsel %vm8488_vm3, %v4355_v26, %v4369_v28  ;;  %v4352_v31 = vpop.permute.xlu0 %4351 }
 0x6aa   : > { %v4367_v32 = vsel %vm8513_vm11, %v4358_v13, %v9798_v44  ;;  %4371 = vst [vmem:[#allocation2 + $0x8] sm:$0xf] %v4370_v29  ;;  %v4356_v33 = vrot.slane %v4352_v31, 4  ;;  %v4354_v34 = vpop.permute.xlu1 %4353  ;;  %v8106_v13 = vld [vmem:[%s10991_s4] ss:$8 sps:$4 sm:$0xff]  }
 0x6ab   : > { %4368 = vst [vmem:[#allocation2] sm:$0xff] %v4367_v32  ;;  %v4357_v35 = vrot.slane %v4354_v34, 4  ;;  %v8113_v29 = vld [vmem:[%s10991_s4 + $0x14] ss:$8 sps:$4 sm:$0xff]  }
 0x6ac   : > { %v4359_v37 = vsel %vm643_vm0, %v4356_v33, %v4352_v31  ;;  %4373 = vst.msk [vmem:[#allocation2 + $0x14] sm:$0xf] %vm577_vm8, %v4356_v33  ;;  %v8116_v33 = vld [vmem:[%s10991_s4 + $0x24] ss:$8 sps:$4 sm:$0xff]  }
 0x6ad   : > { %4372 = vst.msk [vmem:[#allocation2 + $0xc] sm:$0xff] %vm8605_vm10, %v4359_v37  ;;  %v4360_v40 = vsel %vm643_vm0, %v4357_v35, %v4354_v34  ;;  %v4378_v50 = vsel %vm8520_vm13, %v4357_v35, %v4377_v39  ;;  %v8114_v34 = vld [vmem:[%s10991_s4 + $0x20] ss:$8 sps:$4 sm:$0xff]   ;;  %v8119_v35 = vld [vmem:[%s10991_s4 + $0x34] ss:$8 sps:$4 sm:$0xff]  }
 0x6ae   : > { %v4375_v44 = vsel %vm8536_vm7, %v4360_v40, %v4374_v42  ;;  %4379 = vst [vmem:[#allocation2 + $0x20] sm:$0x1] %v4378_v50  ;;  %v8117_v37 = vld [vmem:[%s10991_s4 + $0x30] ss:$8 sps:$4 sm:$0xff]   ;;  %v8122_v39 = vld [vmem:[%s10991_s4 + $0x44] ss:$8 sps:$4 sm:$0xff]  }
 0x6af   : > { %4376 = vst [vmem:[#allocation2 + $0x18] sm:$0x11] %v4375_v44  ;;  %v8120_v42 = vld [vmem:[%s10991_s4 + $0x40] ss:$8 sps:$4 sm:$0xff]   ;;  %v8125_v40 = vld [vmem:[%s10991_s4 + $0x54] ss:$8 sps:$4 sm:$0xff]  }
 0x6b0   : > { %v8123_v50 = vld [vmem:[%s10991_s4 + $0x50] ss:$8 sps:$4 sm:$0xff]   ;;  %v8128_v44 = vld [vmem:[%s10991_s4 + $0x64] ss:$8 sps:$4 sm:$0xff]  }
 0x6b1   : > { %v5059_v2 = vld [vmem:[#allocation2 + $0x8] sm:$0xe] }
 0x6b2   : > { %v5058_v61 = vld [vmem:[#allocation2] sm:$0xee]  ;;  %v4382_v55 = vld [vmem:[#allocation2 + $0x8] sm:$0xf] }
 0x6b3   : > { %v4384_v46 = vld [vmem:[#allocation2 + $0x14] sm:$0xf] }
 0x6b4   : > { %v4383_v43 = vld [vmem:[#allocation2 + $0xc] sm:$0xff]  ;;  %v7009_v52 = vcombine.low %v5059_v2, %v4384_v46  ;;  %v10404_v58 = vcombine.low %v4382_v55, %v4384_v46  ;;  %v8131_v46 = vld [vmem:[%s10991_s4 + $0x74] ss:$8 sps:$4 sm:$0xff]   ;;  %v5408_v2 = vld [vmem:[%s10997_s10] sm:$0xff] }
 0x6b5   : > { %v10401_v48 = vcombine.low %v4367_v32, %v4383_v43  ;;  %v6892_v49 = vcombine.high %v4367_v32, %v4383_v43  ;;  %v7008_v27 = vcombine.high %v5058_v61, %v4383_v43  ;;  %v8110_v59 = vld [vmem:[#allocation2 + $0x20] ss:$0 sps:$4 sm:$0x11]   ;;  %v7007_v54 = vcombine.low %v5058_v61, %v4383_v43  ;;  %v8111_v32 = vld [vmem:[%s10991_s4 + $0x10] ss:$8 sps:$4 sm:$0xff]  }
 0x6b6   : > { %v4421_v51 = vld [vmem:[#allocation2 + $0x18] sm:$0x11]  ;;  %v5111_v11 = vrot.slane %v7009_v52, 1  ;;  %v5112_v17 = vrot.slane %v8110_v59, 1  ;;  %v4508_v18 = vshll.u32 %v10404_v58, 16  ;;  %v4513_v24 = vshll.u32 %v8110_v59, 16 }
 0x6b7   : > { %v6894_v0 = vcombine.low %v4421_v51, %v4421_v51  ;;  %v6895_v47 = vcombine.high %v4421_v51, %v4421_v51  ;;  %v4496_v53 = vshll.u32 %v6892_v49, 16  ;;  %v4484_v56 = vshll.u32 %v10401_v48, 16  ;;  %v8126_v43 = vld [vmem:[%s10991_s4 + $0x60] ss:$8 sps:$4 sm:$0xff]   ;;  %v8134_v61 = vld [vmem:[%s10991_s4 + $0x84] ss:$8 sps:$4 sm:$0xff]  }
 0x6b8   : > { %v4494_v63 = vshrl.u32 %v6892_v49, 16  ;;  %v4482_v21 = vshrl.u32 %v10401_v48, 16  ;;  %v5108_v9 = vrot.slane %v7008_v27, 1  ;;  %v5105_v7 = vrot.slane %v7007_v54, 1  ;;  %v5424_v51 = vld [vmem:[%s10997_s10 + $0x80] sm:$0xff]  ;;  %v5425_v27 = vld [vmem:[%s10997_s10 + $0x88] sm:$0xff] }
 0x6b9   : > { %v4498_v57 = vrot.slane %v4496_v53, 1  ;;  %v4501_v45 = vshll.u32 %v6895_v47, 16  ;;  %v4489_v1 = vshll.u32 %v6894_v0, 16  ;;  %v4486_v62 = vrot.slane %v4484_v56, 1  ;;  %v5426_v53 = vld [vmem:[%s10997_s10 + $0x90] sm:$0xff]  ;;  %v5427_v55 = vld [vmem:[%s10997_s10 + $0x98] sm:$0xff] }
 0x6ba   : > { %v5109_v6 = vrot.slane %v6895_v47, 1  ;;  %v5106_v41 = vrot.slane %v6894_v0, 1  ;;  %v10423_v20 = vsel %vm1405_vm15, %v5111_v11, %v5112_v17  ;;  %v4510_v22 = vrot.slane %v4508_v18, 1  ;;  %v5409_v47 = vld [vmem:[%s10997_s10 + $0x8] sm:$0xff]  ;;  %v5410_v59 = vld [vmem:[%s10997_s10 + $0x10] sm:$0xff]  ;;  %v5411_v54 = vld [vmem:[%s10997_s10 + $0x18] sm:$0xff] }
 0x6bb   : > { %v4499_v10 = vor.u32 %v4498_v57, %v4494_v63  ;;  %v4503_v8 = vrot.slane %v4501_v45, 1  ;;  %v4491_v3 = vrot.slane %v4489_v1, 1  ;;  %v4487_v12 = vor.u32 %v4486_v62, %v4482_v21  ;;  %v5428_v63 = vld [vmem:[%s10997_s10 + $0xa0] sm:$0xff]  ;;  %v5429_v57 = vld [vmem:[%s10997_s10 + $0xa8] sm:$0xff]  ;;  %v8135_v11 = vld [vmem:[%s10991_s4 + $0x90] ss:$8 sps:$4 sm:$0xff]  }
 0x6bc   : > { %v10411_v4 = vsel %vm1405_vm15, %v5108_v9, %v5109_v6  ;;  %v10420_v19 = vsel %vm1405_vm15, %v5105_v7, %v5106_v41  ;;  %v4506_v25 = vshrl.u32 %v10404_v58, 16  ;;  %v4515_v28 = vrot.slane %v4513_v24, 1  ;;  %v8132_v1 = vld [vmem:[%s10991_s4 + $0x80] ss:$8 sps:$4 sm:$0xff]   ;;  %v8137_v6 = vld [vmem:[%s10991_s4 + $0x94] ss:$8 sps:$4 sm:$0xff]  }
 0x6bd   : > { %v4504_v15 = vsel %vm779_vm6, %v4499_v10, %v4503_v8  ;;  %v4492_v14 = vsel %vm779_vm6, %v4487_v12, %v4491_v3  ;;  %v10492_v0 = vpack.c.bf16 %v5425_v27, %v5424_v51  ;;  %v10503_v52 = vpack.c.bf16 %v5409_v47, %v5408_v2  ;;  %v5412_v62 = vld [vmem:[%s10997_s10 + $0x20] sm:$0xff]  ;;  %v5413_v9 = vld [vmem:[%s10997_s10 + $0x28] sm:$0xff]  ;;  %v5430_v10 = vld [vmem:[%s10997_s10 + $0xb0] sm:$0xff] }
 0x6be   : > { %4734 = vmatprep.mubr.bf16.mxu0 %v4504_v15  ;;  %v4511_v26 = vor.u32 %v4510_v22, %v4506_v25  ;;  %v10505_v56 = vpack.c.bf16 %v5427_v55, %v5426_v53  ;;  %v10521_v45 = vpack.c.bf16 %v5411_v54, %v5410_v59  ;;  %v10527_v21 = vpack.c.bf16 %v5429_v57, %v5428_v63  ;;  %v5431_v8 = vld [vmem:[%s10997_s10 + $0xb8] sm:$0xff]  ;;  %v8140_v41 = vld [vmem:[%s10991_s4 + $0xa4] ss:$8 sps:$4 sm:$0xff]   ;;  %v5434_v24 = vld [vmem:[%s10997_s10 + $0xd0] sm:$0xff] }
 0x6bf   : > { %4735 = vmatmul.mubr.bf16.vlgmr.msra.gmra.mrb[16].mxu0 %v4492_v14  ;;  %7376 = vmatprep.subr.bf16.mxu1 %v10492_v0  ;;  %v10545_v3 = vpack.c.bf16 %v5413_v9, %v5412_v62  ;;  %v10551_v12 = vpack.c.bf16 %v5431_v8, %v5430_v10  ;;  %v5415_v7 = vld [vmem:[%s10997_s10 + $0x38] sm:$0xff]  ;;  %v5432_v15 = vld [vmem:[%s10997_s10 + $0xc0] sm:$0xff] }
 0x6c0   : > { %4746 = vmatpush1.bf16.msra.mxu0 %v8100_v60  ;;  %4777 = vmatprep.mubr.bf16.mxu0 %v8293_v30  ;;  %v4516_v31 = vsel %vm779_vm6, %v4511_v26, %v4515_v28  ;;  %v5414_v60 = vld [vmem:[%s10997_s10 + $0x30] sm:$0xff]  ;;  %v8138_v14 = vld [vmem:[%s10991_s4 + $0xa0] ss:$8 sps:$4 sm:$0xff]   ;;  %v5435_v25 = vld [vmem:[%s10997_s10 + $0xd8] sm:$0xff] }
 0x6c1   : > { %4747 = vmatprep.subr.bf16.mxu0 %v8105_v16  ;;  %7378 = vmatpush3.bf16.msra.mxu1 %v10503_v52  ;;  %v5433_v16 = vld [vmem:[%s10997_s10 + $0xc8] sm:$0xff]  ;;  %v10569_v17 = vpack.c.bf16 %v5415_v7, %v5414_v60  ;;  %v8143_v22 = vld [vmem:[%s10991_s4 + $0xb4] ss:$8 sps:$4 sm:$0xff]   ;;  %v8141_v28 = vld [vmem:[%s10991_s4 + $0xb0] ss:$8 sps:$4 sm:$0xff]  }
 0x6c2   : > { %7380 = vmatprep.subr.bf16.mxu1 %v10505_v56  ;;  %v10575_v18 = vpack.c.bf16 %v5433_v16, %v5432_v15  ;;  %v8155_v27 = vld [vmem:[%s10991_s4 + $0xf4] ss:$8 sps:$4 sm:$0xff]   ;;  %v8153_v47 = vld [vmem:[%s10991_s4 + $0xf0] ss:$8 sps:$4 sm:$0xff]   ;;  %v8158_v55 = vld [vmem:[%s10991_s4 + $0x104] ss:$8 sps:$4 sm:$0xff]  }
 0x6c3   : > { %v8156_v59 = vld [vmem:[%s10991_s4 + $0x100] ss:$8 sps:$4 sm:$0xff]   ;;  %v8161_v54 = vld [vmem:[%s10991_s4 + $0x114] ss:$8 sps:$4 sm:$0xff]   ;;  %v8159_v63 = vld [vmem:[%s10991_s4 + $0x110] ss:$8 sps:$4 sm:$0xff]  }
 0x6c4   : > { %4748 = vmatpush1.bf16.msra.mxu0 %v8103_v5  ;;  %v5416_v5 = vld [vmem:[%s10997_s10 + $0x40] sm:$0xff]  ;;  %v8166_v62 = vld [vmem:[%s10991_s4 + $0x250] ss:$8 sps:$4 sm:$0xff]   ;;  %v8186_v15 = vld [vmem:[%s10991_s4 + $0x2b4] ss:$8 sps:$4 sm:$0xff]  }
 0x6c5   : > { %4972 = vmatprep.subr.bf16.mxu0 %v8108_v23  ;;  %7382 = vmatpush3.bf16.msra.mxu1 %v10521_v45  ;;  %v5417_v23 = vld [vmem:[%s10997_s10 + $0x48] sm:$0xff]  ;;  %v8178_v60 = vld [vmem:[%s10991_s4 + $0x290] ss:$8 sps:$4 sm:$0xff]  }
 0x6c6   : > { %7384 = vmatprep.subr.bf16.mxu1 %v10527_v21  ;;  %v10593_v26 = vpack.c.bf16 %v5417_v23, %v5416_v5  ;;  %v8164_v57 = vld [vmem:[%s10991_s4 + $0x244] ss:$8 sps:$4 sm:$0xff]   ;;  %v8175_v8 = vld [vmem:[%s10991_s4 + $0x280] ss:$8 sps:$4 sm:$0xff]   ;;  %v8184_v16 = vld [vmem:[%s10991_s4 + $0x2b0] ss:$8 sps:$4 sm:$0xff]  }
 0x6c7   : > { %v8171_v9 = vld [vmem:[%s10991_s4 + $0x264] ss:$8 sps:$4 sm:$0xff]   ;;  %v8187_v5 = vld [vmem:[%s10991_s4 + $0x2c0] ss:$8 sps:$4 sm:$0xff]   ;;  %v8192_v23 = vld [vmem:[%s10991_s4 + $0x2d4] ss:$8 sps:$4 sm:$0xff]  }
 0x6c8   : > { %v8177_v10 = vld [vmem:[%s10991_s4 + $0x284] ss:$8 sps:$4 sm:$0xff]  }
 0x6c9   : > { %7386 = vmatpush3.bf16.msra.mxu1 %v10545_v3  ;;  %v8183_v7 = vld [vmem:[%s10991_s4 + $0x2a4] ss:$8 sps:$4 sm:$0xff]  }
 0x6ca   : > { %7388 = vmatprep.subr.bf16.mxu1 %v10551_v12 }
 0x6cb   : > { %6933 = vmatmul.mubr.msk.bf16.vlgmr.msra.gmra.mrb[16].mxu0 %vm998_vm12, %v4516_v31  ;;  %v5419_v31 = vld [vmem:[%s10997_s10 + $0x58] sm:$0xff] }
 0x6cc   : > { %4973 = vmatpush1.bf16.msra.mxu0 %v8106_v13  ;;  %5004 = vmatprep.mubr.bf16.mxu0 %v6892_v49  ;;  %v8129_v49 = vld [vmem:[%s10991_s4 + $0x70] ss:$8 sps:$4 sm:$0xff]   ;;  %v10599_v13 = vpack.c.bf16 %v5435_v25, %v5434_v24  ;;  %v8195_v24 = vld [vmem:[%s10991_s4 + $0x2e4] ss:$8 sps:$4 sm:$0xff]   ;;  %v8193_v25 = vld [vmem:[%s10991_s4 + $0x2e0] ss:$8 sps:$4 sm:$0xff]  }
 0x6cd   : > { %4974 = vmatprep.subr.bf16.mxu0 %v8113_v29  ;;  %7390 = vmatpush3.bf16.msra.mxu1 %v10569_v17  ;;  %v5418_v29 = vld [vmem:[%s10997_s10 + $0x50] sm:$0xff] }
 0x6ce   : > { %7392 = vmatprep.subr.bf16.mxu1 %v10575_v18 }
 0x6d0   : > { %4975 = vmatpush1.bf16.msra.mxu0 %v8111_v32  ;;  %v8146_v32 = vld [vmem:[%s10991_s4 + $0xc4] ss:$8 sps:$4 sm:$0xff]  }
 0x6d1   : > { %4976 = vmatprep.subr.bf16.mxu0 %v8116_v33  ;;  %v5436_v33 = vld [vmem:[%s10997_s10 + $0xe0] sm:$0xff]  ;;  %7394 = vmatpush3.bf16.msra.mxu1 %v10593_v26 }
 0x6d2   : > { %7396 = vmatprep.subr.bf16.mxu1 %v10599_v13 }
 0x6d4   : > { %4977 = vmatpush1.bf16.msra.mxu0 %v8114_v34  ;;  %v5437_v34 = vld [vmem:[%s10997_s10 + $0xe8] sm:$0xff] }
 0x6d5   : > { %4978 = vmatprep.subr.bf16.mxu0 %v8119_v35  ;;  %v10617_v35 = vpack.c.bf16 %v5419_v31, %v5418_v29  ;;  %v8196_v29 = vld [vmem:[%s10991_s4 + $0x2f0] ss:$8 sps:$4 sm:$0xff]   ;;  %v8201_v31 = vld [vmem:[%s10991_s4 + $0x304] ss:$8 sps:$4 sm:$0xff]  }
 0x6d7   : > { %7398 = vmatpush3.bf16.msra.mxu1 %v10617_v35 }
 0x6d8   : > { %4979 = vmatpush1.bf16.msra.mxu0 %v8117_v37  ;;  %v8144_v37 = vld [vmem:[%s10991_s4 + $0xc0] ss:$8 sps:$4 sm:$0xff]  }
 0x6d9   : > { %4980 = vmatprep.subr.bf16.mxu0 %v8122_v39  ;;  %v10623_v39 = vpack.c.bf16 %v5437_v34, %v5436_v33  ;;  %v8204_v33 = vld [vmem:[%s10991_s4 + $0x314] ss:$8 sps:$4 sm:$0xff]   ;;  %v8202_v34 = vld [vmem:[%s10991_s4 + $0x310] ss:$8 sps:$4 sm:$0xff]  }
 0x6db   : > { %7400 = vmatprep.subr.bf16.mxu1 %v10623_v39 }
 0x6dc   : > { %4981 = vmatpush1.bf16.msra.mxu0 %v8120_v42  ;;  %v5420_v42 = vld [vmem:[%s10997_s10 + $0x60] sm:$0xff] }
 0x6dd   : > { %4982 = vmatprep.subr.bf16.mxu0 %v8125_v40  ;;  %v5421_v40 = vld [vmem:[%s10997_s10 + $0x68] sm:$0xff] }
 0x6e0   : > { %4983 = vmatpush1.bf16.msra.mxu0 %v8123_v50  ;;  %v8149_v50 = vld [vmem:[%s10991_s4 + $0xd4] ss:$8 sps:$4 sm:$0xff]  }
 0x6e1   : > { %4984 = vmatprep.subr.bf16.mxu0 %v8128_v44  ;;  %v10635_v44 = vpack.c.bf16 %v5421_v40, %v5420_v42  ;;  %v8205_v42 = vld [vmem:[%s10991_s4 + $0x320] ss:$8 sps:$4 sm:$0xff]   ;;  %v8210_v40 = vld [vmem:[%s10991_s4 + $0x334] ss:$8 sps:$4 sm:$0xff]  }
 0x6e3   : > { %7402 = vmatpush3.bf16.msra.mxu1 %v10635_v44 }
 0x6e4   : > { %4985 = vmatpush1.bf16.msra.mxu0 %v8126_v43  ;;  %v8147_v43 = vld [vmem:[%s10991_s4 + $0xd0] ss:$8 sps:$4 sm:$0xff]  }
 0x6e5   : > { %4986 = vmatprep.subr.bf16.mxu0 %v8131_v46  ;;  %v8152_v46 = vld [vmem:[%s10991_s4 + $0xe4] ss:$8 sps:$4 sm:$0xff]  }
 0x6e8   : > { %4987 = vmatpush1.bf16.msra.mxu0 %v8129_v49 }
 0x6e9   : > { %4988 = vmatprep.subr.bf16.mxu0 %v8134_v61  ;;  %v8150_v61 = vld [vmem:[%s10991_s4 + $0xe0] ss:$8 sps:$4 sm:$0xff]  }
 0x6ec   : > { %4989 = vmatpush1.bf16.msra.mxu0 %v8132_v1  ;;  %v8162_v1 = vld [vmem:[%s10991_s4 + $0x240] ss:$8 sps:$4 sm:$0xff]  }
 0x6ed   : > { %4990 = vmatprep.subr.bf16.mxu0 %v8137_v6  ;;  %v8169_v6 = vld [vmem:[%s10991_s4 + $0x260] ss:$8 sps:$4 sm:$0xff]  }
 0x6f0   : > { %4991 = vmatpush1.bf16.msra.mxu0 %v8135_v11  ;;  %v8180_v11 = vld [vmem:[%s10991_s4 + $0x294] ss:$8 sps:$4 sm:$0xff]  }
 0x6f1   : > { %4992 = vmatprep.subr.bf16.mxu0 %v8140_v41  ;;  %v8181_v41 = vld [vmem:[%s10991_s4 + $0x2a0] ss:$8 sps:$4 sm:$0xff]  }
 0x6f4   : > { %4993 = vmatpush1.bf16.msra.mxu0 %v8138_v14  ;;  %v8189_v14 = vld [vmem:[%s10991_s4 + $0x2c4] ss:$8 sps:$4 sm:$0xff]  }
 0x6f5   : > { %4994 = vmatprep.subr.bf16.mxu0 %v8143_v22  ;;  %v8190_v22 = vld [vmem:[%s10991_s4 + $0x2d0] ss:$8 sps:$4 sm:$0xff]  }
 0x6f8   : > { %4995 = vmatpush1.bf16.msra.mxu0 %v8141_v28  ;;  %v8198_v28 = vld [vmem:[%s10991_s4 + $0x2f4] ss:$8 sps:$4 sm:$0xff]  }
 0x6f9   : > { %4996 = vmatprep.subr.bf16.mxu0 %v8146_v32  ;;  %v8199_v32 = vld [vmem:[%s10991_s4 + $0x300] ss:$8 sps:$4 sm:$0xff]  }
 0x6fc   : > { %4997 = vmatpush1.bf16.msra.mxu0 %v8144_v37  ;;  %v8207_v37 = vld [vmem:[%s10991_s4 + $0x324] ss:$8 sps:$4 sm:$0xff]  }
 0x6fd   : > { %4998 = vmatprep.subr.bf16.mxu0 %v8149_v50  ;;  %v8208_v50 = vld [vmem:[%s10991_s4 + $0x330] ss:$8 sps:$4 sm:$0xff]  }
 0x700   : > { %4999 = vmatpush1.bf16.msra.mxu0 %v8147_v43  ;;  %v10645_v49 = vpop.f32.mrb[12].mxu0  ;;  %v8214_v43 = vld [vmem:[%s10991_s4 + $0x344] ss:$8 sps:$4 sm:$0xff]  }
 0x701   : > { %v10650_v51 = vpop.f32.mrb[13].mxu0  ;;  %5000 = vmatprep.subr.bf16.mxu0 %v8152_v46  ;;  %v8212_v46 = vld [vmem:[%s10991_s4 + $0x340] ss:$8 sps:$4 sm:$0xff]  }
 0x704   : > { %5001 = vmatpush1.bf16.msra.mxu0 %v8150_v61  ;;  %v10655_v2 = vpop.f32.mrb[14].mxu0  ;;  %v8217_v61 = vld [vmem:[%s10991_s4 + $0x354] ss:$8 sps:$4 sm:$0xff]  }
 0x705   : > { %v10660_v53 = vpop.f32.mrb[15].mxu0  ;;  %5002 = vmatprep.subr.bf16.mxu0 %v8155_v27  ;;  %v8215_v27 = vld [vmem:[%s10991_s4 + $0x350] ss:$8 sps:$4 sm:$0xff]  }
 0x708   : > { %5003 = vmatpush1.bf16.msra.mxu0 %v8153_v47  ;;  %v5438_v47 = vld [vmem:[%s10997_s10 + $0xf0] sm:$0xff] }
 0x709   : > { %5015 = vmatprep.subr.bf16.mxu0 %v8158_v55 }
 0x70b   : > { %5005 = vmatmul.mubr.bf16.vlgmr.msra.gmra.mrb[16].mxu0 %v10401_v48  ;;  %v8168_v48 = vld [vmem:[%s10991_s4 + $0x254] ss:$8 sps:$4 sm:$0xff]  }
 0x70c   : > { %5016 = vmatpush1.bf16.msra.mxu0 %v8156_v59  ;;  %5047 = vmatprep.mubr.bf16.mxu0 %v8293_v30  ;;  %v5422_v59 = vld [vmem:[%s10997_s10 + $0x70] sm:$0xff] }
 0x70d   : > { %5017 = vmatprep.subr.bf16.mxu0 %v8161_v54 }
 0x710   : > { %5018 = vmatpush1.bf16.msra.mxu0 %v8159_v63 }
 0x711   : > { %5299 = vmatprep.subr.bf16.mxu0 %v8164_v57 }
 0x717   : > { %6970 = vmatmul.mubr.msk.bf16.vlgmr.msra.gmra.mrb[16].mxu0 %vm998_vm12, %v10404_v58  ;;  %v8174_v58 = vld [vmem:[%s10991_s4 + $0x274] ss:$8 sps:$4 sm:$0xff]  }
 0x718   : > { %5300 = vmatpush1.bf16.msra.mxu0 %v8162_v1  ;;  %5331 = vmatprep.mubr.bf16.mxu0 %v10411_v4  ;;  %v8172_v4 = vld [vmem:[%s10991_s4 + $0x270] ss:$8 sps:$4 sm:$0xff]  }
 0x719   : > { %5301 = vmatprep.subr.bf16.mxu0 %v8168_v48 }
 0x71c   : > { %5302 = vmatpush1.bf16.msra.mxu0 %v8166_v62 }
 0x71d   : > { %5303 = vmatprep.subr.bf16.mxu0 %v8171_v9 }
 0x720   : > { %5304 = vmatpush1.bf16.msra.mxu0 %v8169_v6 }
 0x721   : > { %5305 = vmatprep.subr.bf16.mxu0 %v8174_v58 }
 0x724   : > { %5306 = vmatpush1.bf16.msra.mxu0 %v8172_v4 }
 0x725   : > { %5307 = vmatprep.subr.bf16.mxu0 %v8177_v10 }
 0x728   : > { %5308 = vmatpush1.bf16.msra.mxu0 %v8175_v8 }
 0x729   : > { %5309 = vmatprep.subr.bf16.mxu0 %v8180_v11 }
 0x72c   : > { %5310 = vmatpush1.bf16.msra.mxu0 %v8178_v60 }
 0x72d   : > { %5311 = vmatprep.subr.bf16.mxu0 %v8183_v7 }
 0x730   : > { %5312 = vmatpush1.bf16.msra.mxu0 %v8181_v41 }
 0x731   : > { %5313 = vmatprep.subr.bf16.mxu0 %v8186_v15 }
 0x734   : > { %5314 = vmatpush1.bf16.msra.mxu0 %v8184_v16 }
 0x735   : > { %5315 = vmatprep.subr.bf16.mxu0 %v8189_v14 }
 0x738   : > { %5316 = vmatpush1.bf16.msra.mxu0 %v8187_v5 }
 0x739   : > { %5317 = vmatprep.subr.bf16.mxu0 %v8192_v23 }
 0x73c   : > { %5318 = vmatpush1.bf16.msra.mxu0 %v8190_v22 }
 0x73d   : > { %5319 = vmatprep.subr.bf16.mxu0 %v8195_v24 }
 0x740   : > { %5320 = vmatpush1.bf16.msra.mxu0 %v8193_v25 }
 0x741   : > { %5321 = vmatprep.subr.bf16.mxu0 %v8198_v28 }
 0x744   : > { %5322 = vmatpush1.bf16.msra.mxu0 %v8196_v29 }
 0x745   : > { %5323 = vmatprep.subr.bf16.mxu0 %v8201_v31 }
 0x748   : > { %5324 = vmatpush1.bf16.msra.mxu0 %v8199_v32 }
 0x749   : > { %5325 = vmatprep.subr.bf16.mxu0 %v8204_v33 }
 0x74c   : > { %5326 = vmatpush1.bf16.msra.mxu0 %v8202_v34 }
 0x74d   : > { %5327 = vmatprep.subr.bf16.mxu0 %v8207_v37 }
 0x750   : > { %5328 = vmatpush1.bf16.msra.mxu0 %v8205_v42 }
 0x751   : > { %5329 = vmatprep.subr.bf16.mxu0 %v8210_v40 }
 0x754   : > { %5330 = vmatpush1.bf16.msra.mxu0 %v8208_v50 }
 0x755   : > { %5342 = vmatprep.subr.bf16.mxu0 %v8214_v43 }
 0x757   : > { %5332 = vmatmul.mubr.bf16.vlgmr.msra.gmra.mrb[16].mxu0 %v10420_v19  ;;  %v5439_v19 = vld [vmem:[%s10997_s10 + $0xf8] sm:$0xff] }
 0x758   : > { %5343 = vmatpush1.bf16.msra.mxu0 %v8212_v46  ;;  %5374 = vmatprep.mubr.bf16.mxu0 %v8293_v30  ;;  %v7403_v55 = vpack.c.bf16 %v5439_v19, %v5438_v47  ;;  %v5423_v30 = vld [vmem:[%s10997_s10 + $0x78] sm:$0xff] }
 0x759   : > { %5344 = vmatprep.subr.bf16.mxu0 %v8217_v61  ;;  %v7405_v54 = vpack.c.bf16 %v5423_v30, %v5422_v59 }
 0x75a   : > { %7404 = vmatprep.subr.bf16.mxu1 %v7403_v55 }
 0x75b   : > { %7406 = vmatpush3.bf16.msra.mxu1 %v7405_v54 }
 0x75c   : > { %5345 = vmatpush1.bf16.msra.mxu0 %v8215_v27  ;;  %7408 = vmatprep.subr.bf16.mxu1 %v10492_v0 }
 0x763   : > { %7046 = vmatmul.mubr.msk.bf16.vlgmr.msra.gmra.mrb[16].mxu0 %vm998_vm12, %v10423_v20  ;;  %v4380_v20 = vld [vmem:[%s10995_s8] sm:$0x3] }
 0x764   : > { %v5393_v63 = vrot.slane %v4380_v20, %v8940_v36  ;;  %v5397_v57 = vrot.slane %v4380_v20, %v8945_v38 }
 0x836   : > { %v5376_v1 = vpop.f32.mrb[16].mxu0 }
 0x837   : > { %v5400_v48 = vadd.f32 %v5393_v63, %v5376_v1  ;;  %v5378_v62 = vpop.f32.mrb[17].mxu0  ;;  %v5703_v1 = vld [vmem:[%s11000_s13] sm:$0xff] }
 0x838   : > { %v5401_v9 = vadd.f32 %v5397_v57, %v5378_v62  ;;  %v5380_v6 = vpop.f32.mrb[18].mxu0  ;;  %v8222_v62 = vld [vmem:[%s11002_s15 + $0x4] ss:$8 sps:$4 sm:$0xff]  }
 0x839   : > { %v10810_v58 = vadd.f32 %v5400_v48, %v10645_v49  ;;  %v5402_v4 = vadd.f32 %v5393_v63, %v5380_v6  ;;  %v5382_v10 = vpop.f32.mrb[19].mxu0  ;;  %v5706_v48 = vcombine.high %v5703_v1, %v5703_v1 }
 0x83a   : > { %v10813_v0 = vadd.f32 %v5401_v9, %v10650_v51  ;;  %v5403_v8 = vadd.f32 %v5397_v57, %v5382_v10  ;;  %v5628_v9 = vld [vmem:[%s10999_s12] sm:$0x1] }
 0x83b   : > { %v10816_v11 = vadd.f32 %v5402_v4, %v10655_v2 }
 0x83c   : > { %v10819_v60 = vadd.f32 %v5403_v8, %v10660_v53  ;;  %5504 = vmatprep.mubr.f32.mxu1 %v10813_v0  ;;  %v5526_v49 = vmul.f32 %v10813_v0, %v10813_v0  ;;  %v8220_v8 = vld [vmem:[%s11002_s15] ss:$8 sps:$4 sm:$0xff]  }
 0x83d   : > { %5505 = vmatmul.mubr.f32.vlgmr.msra.gmra.mrb[20].mxu1 %v10810_v58 }
 0x83e   : > { %7410 = vmatpush3.bf16.msra.mxu1 %v10503_v52  ;;  %5509 = vmatprep.mubr.f32.mxu1 %v10819_v60  ;;  %v5525_v52 = vmul.f32 %v10810_v58, %v10810_v58 }
 0x83f   : > { %7412 = vmatprep.subr.bf16.mxu1 %v10505_v56  ;;  %v5528_v56 = vmul.f32 %v10819_v60, %v10819_v60 }
 0x841   : > { %5510 = vmatmul.mubr.f32.gmra.mrb[22].mxu1 %v10816_v11 }
 0x842   : > { %7414 = vmatpush3.bf16.msra.mxu1 %v10521_v45  ;;  %5593 = vmatprep.mubr.f32.mxu1 %v5526_v49  ;;  %v5527_v45 = vmul.f32 %v10816_v11, %v10816_v11 }
 0x843   : > { %7416 = vmatprep.subr.bf16.mxu1 %v10527_v21  ;;  %v5626_v21 = vld [vmem:[%s10998_s11] sm:$0xff] }
 0x846   : > { %7418 = vmatpush3.bf16.msra.mxu1 %v10545_v3  ;;  %v5627_v3 = vld [vmem:[%s10998_s11 + $0x8] sm:$0xff] }
 0x847   : > { %7420 = vmatprep.subr.bf16.mxu1 %v10551_v12  ;;  %v8294_v12 = vmov 0.0|0.0  }
 0x84a   : > { %7422 = vmatpush3.bf16.msra.mxu1 %v10569_v17  ;;  %v7440_v17 = vpack.c.bf16 %v5627_v3, %v5626_v21  ;;  %v8226_v21 = vld [vmem:[%s11002_s15 + $0x20] ss:$8 sps:$4 sm:$0xff]   ;;  %v8231_v3 = vld [vmem:[%s11002_s15 + $0x34] ss:$8 sps:$4 sm:$0xff]  }
 0x84b   : > { %7424 = vmatprep.subr.bf16.mxu1 %v10575_v18  ;;  %v8296_v18 = vmov 0.0  }
 0x84e   : > { %7426 = vmatpush3.bf16.msra.mxu1 %v10593_v26 }
 0x84f   : > { %7428 = vmatprep.subr.bf16.mxu1 %v10599_v13 }
 0x852   : > { %7430 = vmatpush3.bf16.msra.mxu1 %v10617_v35 }
 0x853   : > { %7432 = vmatprep.subr.bf16.mxu1 %v10623_v39 }
 0x856   : > { %7434 = vmatpush3.bf16.msra.mxu1 %v10635_v44 }
 0x857   : > { %7436 = vmatprep.subr.bf16.mxu1 %v7403_v55 }
 0x85a   : > { %7438 = vmatpush3.bf16.msra.mxu1 %v7405_v54 }
 0x85b   : > { %7439 = vmatprep.subr.bf16.mxu1 %v8294_v12  ;;  %v8229_v12 = vld [vmem:[%s11002_s15 + $0x30] ss:$8 sps:$4 sm:$0xff]  }
 0x85d   : > { %5594 = vmatmul.mubr.f32.vlgmr.msra.gmra.mrb[24].mxu1 %v5525_v52  ;;  %v8225_v52 = vld [vmem:[%s11002_s15 + $0x14] ss:$8 sps:$4 sm:$0xff]  }
 0x85e   : > { %5598 = vmatprep.mubr.f32.mxu1 %v5528_v56  ;;  %7441 = vmatpush3.bf16.msra.mxu1 %v7440_v17  ;;  %v8223_v56 = vld [vmem:[%s11002_s15 + $0x10] ss:$8 sps:$4 sm:$0xff]   ;;  %v8234_v17 = vld [vmem:[%s11002_s15 + $0x44] ss:$8 sps:$4 sm:$0xff]  }
 0x85f   : > { %7048 = vmatprep.subr.msk.mxu1 %vm5722_vm9, %v5706_v48 }
 0x861   : > { %5599 = vmatmul.mubr.f32.gmra.mrb[26].mxu1 %v5527_v45  ;;  %v8228_v45 = vld [vmem:[%s11002_s15 + $0x24] ss:$8 sps:$4 sm:$0xff]  }
 0x862   : > { %7180 = vmatprep.mubr.msk.f32.mxu1 %vm8295_vm4, %v8296_v18 }
 0x910   : > { %v7129_v26 = vpop.f32.mrb[20].mxu1 }
 0x911   : > { %v7130_v13 = vpop.f32.mrb[21].mxu1 }
 0x912   : > { %v7131_v35 = vadd.f32 %v7130_v13, %v7129_v26  ;;  %v8237_v26 = vld [vmem:[%s11002_s15 + $0x54] ss:$8 sps:$4 sm:$0xff]   ;;  %v8235_v13 = vld [vmem:[%s11002_s15 + $0x50] ss:$8 sps:$4 sm:$0xff]  }
 0x914   : > { %v7132_v39 = vpop.f32.mrb[22].mxu1  ;;  %v5516_v2 = vsel %vm643_vm0, %v7131_v35, 0.0  ;;  %v8240_v35 = vld [vmem:[%s11002_s15 + $0x64] ss:$8 sps:$4 sm:$0xff]  }
 0x915   : > { %v7133_v44 = vpop.f32.mrb[23].mxu1 }
 0x916   : > { %v7134_v51 = vadd.f32 %v7133_v44, %v7132_v39  ;;  %v8238_v39 = vld [vmem:[%s11002_s15 + $0x60] ss:$8 sps:$4 sm:$0xff]   ;;  %v8243_v44 = vld [vmem:[%s11002_s15 + $0x74] ss:$8 sps:$4 sm:$0xff]  }
 0x918   : > { %v5517_v53 = vsel %vm643_vm0, %v7134_v51, 0.0  ;;  %v8241_v51 = vld [vmem:[%s11002_s15 + $0x70] ss:$8 sps:$4 sm:$0xff]  }
 0x919   : > { %v5518_v7 = vadd.f32 %v5517_v53, %v5516_v2  ;;  %v8246_v2 = vld [vmem:[%s11002_s15 + $0x84] ss:$8 sps:$4 sm:$0xff]   ;;  %v8244_v53 = vld [vmem:[%s11002_s15 + $0x80] ss:$8 sps:$4 sm:$0xff]  }
 0x91b   : > { %v5519_v41 = vrot.slane %v5518_v7, 4 }
 0x91d   : > { %v5520_v15 = vadd.f32 %v5519_v41, %v5518_v7  ;;  %v8249_v7 = vld [vmem:[%s11002_s15 + $0x94] ss:$8 sps:$4 sm:$0xff]   ;;  %v8247_v41 = vld [vmem:[%s11002_s15 + $0x90] ss:$8 sps:$4 sm:$0xff]  }
 0x91f   : > { %v5521_v23 = vrot.slane %v5520_v15, 2 }
 0x921   : > { %v5522_v28 = vadd.f32 %v5521_v23, %v5520_v15  ;;  %v8252_v15 = vld [vmem:[%s11002_s15 + $0xa4] ss:$8 sps:$4 sm:$0xff]  }
 0x922   : > { %v8258_v23 = vld [vmem:[%s11002_s15 + $0xc4] ss:$8 sps:$4 sm:$0xff]  }
 0x923   : > { %v5523_v33 = vrot.slane %v5522_v28, 1 }
 0x925   : > { %v5524_v42 = vadd.f32 %v5523_v33, %v5522_v28  ;;  %v8264_v28 = vld [vmem:[%s11002_s15 + $0xe4] ss:$8 sps:$4 sm:$0xff]   ;;  %v5704_v33 = vld [vmem:[%s11001_s14] sm:$0x3] }
 0x927   : > { %v5613_v43 = vmul.f32 0.00390625, %v5524_v42 }
 0x929   : > { %v5615_v27 = vmul.f32 %v5613_v43, %v5613_v43 }
 0x930   : > { %v7167_v16 = vpop.f32.mrb[24].mxu1 }
 0x931   : > { %v7168_v14 = vpop.f32.mrb[25].mxu1 }
 0x932   : > { %v7169_v5 = vadd.f32 %v7168_v14, %v7167_v16  ;;  %v8250_v16 = vld [vmem:[%s11002_s15 + $0xa0] ss:$8 sps:$4 sm:$0xff]   ;;  %v8255_v14 = vld [vmem:[%s11002_s15 + $0xb4] ss:$8 sps:$4 sm:$0xff]  }
 0x934   : > { %v7170_v22 = vpop.f32.mrb[26].mxu1  ;;  %v5604_v29 = vsel %vm643_vm0, %v7169_v5, 0.0  ;;  %v8253_v5 = vld [vmem:[%s11002_s15 + $0xb0] ss:$8 sps:$4 sm:$0xff]  }
 0x935   : > { %v7171_v24 = vpop.f32.mrb[27].mxu1 }
 0x936   : > { %v7172_v25 = vadd.f32 %v7171_v24, %v7170_v22  ;;  %v8256_v22 = vld [vmem:[%s11002_s15 + $0xc0] ss:$8 sps:$4 sm:$0xff]   ;;  %v8261_v24 = vld [vmem:[%s11002_s15 + $0xd4] ss:$8 sps:$4 sm:$0xff]  }
 0x938   : > { %v5605_v31 = vsel %vm643_vm0, %v7172_v25, 0.0  ;;  %v8259_v25 = vld [vmem:[%s11002_s15 + $0xd0] ss:$8 sps:$4 sm:$0xff]  }
 0x939   : > { %v5606_v32 = vadd.f32 %v5605_v31, %v5604_v29  ;;  %v8262_v29 = vld [vmem:[%s11002_s15 + $0xe0] ss:$8 sps:$4 sm:$0xff]   ;;  %v8267_v31 = vld [vmem:[%s11002_s15 + $0xf4] ss:$8 sps:$4 sm:$0xff]  }
 0x93b   : > { %v5607_v34 = vrot.slane %v5606_v32, 4 }
 0x93d   : > { %v5608_v37 = vadd.f32 %v5607_v34, %v5606_v32  ;;  %v8265_v32 = vld [vmem:[%s11002_s15 + $0xf0] ss:$8 sps:$4 sm:$0xff]   ;;  %v5711_v34 = vrot.slane %v5704_v33, %v8940_v36 }
 0x93f   : > { %v5609_v40 = vrot.slane %v5608_v37, 2 }
 0x941   : > { %v5610_v50 = vadd.f32 %v5609_v40, %v5608_v37  ;;  %v5715_v37 = vrot.slane %v5704_v33, %v8945_v38 }
 0x943   : > { %v5611_v46 = vrot.slane %v5610_v50, 1 }
 0x945   : > { %v5612_v61 = vadd.f32 %v5611_v46, %v5610_v50 }
 0x947   : > { %v5614_v47 = vmul.f32 0.00390625, %v5612_v61 }
 0x949   : > { %v5616_v19 = vsub.f32 %v5614_v47, %v5615_v27 }
 0x94b   : > { %v5617_v55 = vmax.f32 %v5616_v19, 0.0 }
 0x94d   : > { %8268 = vrsqrt.f32 %v5617_v55  ;;  %vm5620_vm8 = vcmp.eq.f32.partialorder %v5617_v55, inf  ;;  %v5623_v54 = vand.u32 2147483648, %v5617_v55  ;;  %vm5622_vm3 = vcmp.eq.f32.partialorder %v5617_v55, 0.0 }
 0x957   : > { %v8269_v59 = vpop.eup %8268 }
 0x958   : > { %v5619_v30 = vmul.f32 %v8269_v59, %v5617_v55 }
 0x95a   : > { %v5621_v20 = vsel %vm5620_vm8, %v5617_v55, %v5619_v30 }
 0x95b   : > { %v5624_v63 = vsel %vm5622_vm3, %v5623_v54, %v5621_v20 }
 0x95c   : > { %v5625_v57 = vadd.f32 %v5624_v63, %v5613_v43 }
 0x95e   : > { %7181 = vmatmul.mubr.msk.f32.vlgmr.msra.gmra.mrb[28].mxu1 %vm643_vm0, %v5625_v57 }
 0x95f   : > { %5791 = vmatprep.mubr.f32.mxu1 %v8296_v18  ;;  %7049 = vmatpush1.msk.msra.mxu1 %vm5722_vm9, %v5703_v1  ;;  %v8232_v18 = vld [vmem:[%s11002_s15 + $0x40] ss:$8 sps:$4 sm:$0xff]  }
 0x960   : > { %6028 = vmatprep.subr.bf16.mxu1 %v8222_v62 }
 0xa31   : > { %v5698_v6 = vpop.f32.mrb[28].mxu1 }
 0xa32   : > { %v5699_v4 = vadd.f32 %v5698_v6, %v5628_v9  ;;  %v7182_v10 = vpop.f32.mrb[29].mxu1  ;;  %v5856_v6 = vld [vmem:[%s11003_s16] sm:$0x3] }
 0xa34   : > { %v5702_v49 = vmax.f32 %v5699_v4, 0.0  ;;  %v5861_v4 = vrot.slane %v5856_v6, %v8940_v36 }
 0xa36   : > { %7050 = vmatmul.mubr.msk.f32.vlgmr.msra.gmra.mrb[30].mxu1 %vm5718_vm1, %v5702_v49  ;;  %v8280_v49 = vld [vmem:[%s8415_s26] sm:$0xff] }
 0xa37   : > { %6029 = vmatpush1.bf16.msra.mxu1 %v8220_v8 }
 0xa38   : > { %6030 = vmatprep.subr.bf16.mxu1 %v8225_v52 }
 0xa3b   : > { %6031 = vmatpush1.bf16.msra.mxu1 %v8223_v56 }
 0xa3c   : > { %6032 = vmatprep.subr.bf16.mxu1 %v8228_v45 }
 0xa3f   : > { %6033 = vmatpush1.bf16.msra.mxu1 %v8226_v21  ;;  %v8281_v21 = vld [vmem:[%s8415_s26 + $0x8] sm:$0xff] }
 0xa40   : > { %6034 = vmatprep.subr.bf16.mxu1 %v8231_v3 }
 0xa43   : > { %6035 = vmatpush1.bf16.msra.mxu1 %v8229_v12 }
 0xa44   : > { %6036 = vmatprep.subr.bf16.mxu1 %v8234_v17  ;;  %v8283_v17 = vld [vmem:[%s8415_s26 + $0x18] sm:$0xff] }
 0xa47   : > { %6037 = vmatpush1.bf16.msra.mxu1 %v8232_v18 }
 0xa48   : > { %6038 = vmatprep.subr.bf16.mxu1 %v8237_v26 }
 0xa4b   : > { %6039 = vmatpush1.bf16.msra.mxu1 %v8235_v13 }
 0xa4c   : > { %6040 = vmatprep.subr.bf16.mxu1 %v8240_v35 }
 0xa4f   : > { %6041 = vmatpush1.bf16.msra.mxu1 %v8238_v39 }
 0xa50   : > { %6042 = vmatprep.subr.bf16.mxu1 %v8243_v44 }
 0xa53   : > { %6043 = vmatpush1.bf16.msra.mxu1 %v8241_v51 }
 0xa54   : > { %6044 = vmatprep.subr.bf16.mxu1 %v8246_v2 }
 0xa57   : > { %6045 = vmatpush1.bf16.msra.mxu1 %v8244_v53 }
 0xa58   : > { %6046 = vmatprep.subr.bf16.mxu1 %v8249_v7 }
 0xa5b   : > { %6047 = vmatpush1.bf16.msra.mxu1 %v8247_v41 }
 0xa5c   : > { %6048 = vmatprep.subr.bf16.mxu1 %v8252_v15 }
 0xa5f   : > { %6049 = vmatpush1.bf16.msra.mxu1 %v8250_v16 }
 0xa60   : > { %6050 = vmatprep.subr.bf16.mxu1 %v8255_v14 }
 0xa63   : > { %6051 = vmatpush1.bf16.msra.mxu1 %v8253_v5 }
 0xa64   : > { %6052 = vmatprep.subr.bf16.mxu1 %v8258_v23 }
 0xa67   : > { %6053 = vmatpush1.bf16.msra.mxu1 %v8256_v22 }
 0xa68   : > { %6054 = vmatprep.subr.bf16.mxu1 %v8261_v24 }
 0xa6b   : > { %6055 = vmatpush1.bf16.msra.mxu1 %v8259_v25 }
 0xa6c   : > { %6056 = vmatprep.subr.bf16.mxu1 %v8264_v28 }
 0xa6f   : > { %6057 = vmatpush1.bf16.msra.mxu1 %v8262_v29 }
 0xa70   : > { %6058 = vmatprep.subr.bf16.mxu1 %v8267_v31 }
 0xa73   : > { %6059 = vmatpush1.bf16.msra.mxu1 %v8265_v32 }
 0xb09   : > { %v5793_v42 = vpop.f32.mrb[30].mxu1 }
 0xb0a   : > { %v5794_v40 = vadd.f32 %v5793_v42, %v5711_v34  ;;  %v5795_v50 = vpop.f32.mrb[31].mxu1 }
 0xb0b   : > { %v5796_v43 = vadd.f32 %v5795_v50, %v5715_v37 }
 0xb0c   : > { %v7051_v46 = vmul.f32 -1.442695, %v5794_v40 }
 0xb0d   : > { %v7052_v61 = vmul.f32 -1.442695, %v5796_v43 }
 0xb0e   : > { %8270 = vpow2.f32 %v7051_v46 }
 0xb0f   : > { %8272 = vpow2.f32 %v7052_v61 }
 0xb18   : > { %v8271_v27 = vpop.eup %8270 }
 0xb19   : > { %v8273_v47 = vpop.eup %8272  ;;  %v5804_v19 = vadd.f32 1.0, %v8271_v27 }
 0xb1a   : > { %v5805_v55 = vadd.f32 1.0, %v8273_v47 }
 0xb1b   : > { %8274 = vrcp.f32 %v5804_v19 }
 0xb1c   : > { %8276 = vrcp.f32 %v5805_v55 }
 0xb25   : > { %v8275_v59 = vpop.eup %8274 }
 0xb26   : > { %v8277_v30 = vpop.eup %8276  ;;  %v5813_v54 = vrot.slane %v8275_v59, %v8940_v36 }
 0xb27   : > { %v5817_v20 = vrot.slane %v8277_v30, %v8940_v36 }
 0xb28   : > { %v5818_v63 = vmul.f32 %v5813_v54, %v10810_v58  ;;  %v5820_v57 = vmul.f32 %v5813_v54, %v10816_v11  ;;  %v5865_v58 = vrot.slane %v5856_v6, %v8945_v38  ;;  %v8282_v38 = vld [vmem:[%s8415_s26 + $0x10] sm:$0xff] }
 0xb29   : > { %v5819_v1 = vmul.f32 %v5817_v20, %v10813_v0  ;;  %v5821_v48 = vmul.f32 %v5817_v20, %v10819_v60 }
 0xb2a   : > { %v5822_v9 = vpack.c.bf16 %v5820_v57, %v5818_v63 }
 0xb2b   : > { %v5823_v62 = vpack.c.bf16 %v5821_v48, %v5819_v1 }
 0xb2d   : > { %6060 = vmatprep.mubr.bf16.mxu1 %v5823_v62 }
 0xb2e   : > { %6061 = vmatmul.mubr.bf16.vlgmr.msra.gmra.mrb[32].mxu1 %v5822_v9 }
 0xc01   : > { %v6062_v11 = vpop.f32.mrb[32].mxu1 }
 0xc02   : > { %v6063_v10 = vadd.f32 %v6062_v11, %v5861_v4  ;;  %v6064_v0 = vpop.f32.mrb[33].mxu1 }
 0xc03   : > { %v6065_v60 = vadd.f32 %v6064_v0, %v5865_v58  ;;  %v6066_v8 = vpop.f32.mrb[34].mxu1 }
 0xc04   : > { %v6071_v52 = vadd.f32 %v8280_v49, %v6063_v10  ;;  %v6067_v56 = vadd.f32 %v6066_v8, %v5861_v4  ;;  %v6068_v45 = vpop.f32.mrb[35].mxu1 }
 0xc05   : > { %v6072_v36 = vadd.f32 %v8281_v21, %v6065_v60  ;;  %v6069_v3 = vadd.f32 %v6068_v45, %v5865_v58 }
 0xc06   : > { %6075 = vst [vmem:[%s548_s18] sm:$0xff] %v6071_v52  ;;  %v6073_v12 = vadd.f32 %v8282_v38, %v6067_v56 }
 0xc07   : > { %6076 = vst [vmem:[%s548_s18 + $0x8] sm:$0xff] %v6072_v36  ;;  %v6074_v18 = vadd.f32 %v8283_v17, %v6069_v3 }
 0xc08   : > { %6077 = vst [vmem:[%s548_s18 + $0x10] sm:$0xff] %v6073_v12 }
 0xc09   : > { %6078 = vst [vmem:[%s548_s18 + $0x18] sm:$0xff] %v6074_v18 }
 0xc0a PF: > { %s27_s24 = sadd.s32 1, %s8290_s24  }
 0xc0b   : > { %p24_p4 = scmp.ge.s32.totalorder %s27_s24, 4  }
 0xc0d   :  { %26 = sbr.rel (!%p24_p4) target bundleno = 5 (0x5), region = 128 }

</bundles_post_ra>
